<compile_context>
chip_gen: v6e
topology: v6e:2x2x1
jax: 0.10.0
libtpu: 0.0.40
codegen_flags: <defaults>
</compile_context>

<pallas_src>
import functools

import numpy as np
import jax
import jax.numpy as jnp
from jax.experimental import pallas as pl
from jax.experimental.pallas import tpu as pltpu


# ---------------------------------------------------------------------------
# Constant-matrix construction (plain numpy glue, all tiny / separable)
# ---------------------------------------------------------------------------
def _bilinear_matrix(out_size, in_size):
    """1-D bilinear interpolation matrix, align_corners=True (matches F.interpolate)."""
    A = np.zeros((out_size, in_size), dtype=np.float32)
    if in_size == 1:
        A[:, 0] = 1.0
        return A
    if out_size == 1:
        A[0, 0] = 1.0
        return A
    scale = (in_size - 1) / (out_size - 1)
    for i in range(out_size):
        src = i * scale
        i0 = min(int(np.floor(src)), in_size - 1)
        i1 = min(i0 + 1, in_size - 1)
        w1 = src - i0
        A[i, i0] += 1.0 - w1
        A[i, i1] += w1
    return A


def _dilate_matrix(n):
    """1-D '3-tap ones conv with replication padding' matrix (entries are small ints)."""
    D = np.zeros((n, n), dtype=np.float32)
    for i in range(n):
        for d in (-1, 0, 1):
            j = min(max(i + d, 0), n - 1)
            D[i, j] += 1.0
    return D


# ---------------------------------------------------------------------------
# Pallas kernel.  grid = (B, H // tile_h); one row-tile of one batch per step.
# ---------------------------------------------------------------------------
def _loss_kernel(bt_ref, a_ref, x_ref, bnd_ref, sem_ref, dv_ref, dht_ref,
                 lnw_ref, lnb_ref, sum_ref, cnt_ref, u_sc,
                 *, L, H2, W, ignore_label):
    f32 = jnp.float32
    bf16 = jnp.bfloat16

    # ---- (1a) W-axis bilinear interp, staged ONCE per batch (first H tile only) ----
    # one wide bf16 MXU matmul  [L*H2, W2] @ [W2, W] -> [L*H2, W]  (f32 accumulate),
    # then relayout channel-major rows into a channels-in-lanes [H2, L*W] scratch so
    # the dominant H-interp below can be a single wide matmul per row tile.
    @pl.when(pl.program_id(1) == 0)
    def _stage_w_interp():
        u = jnp.dot(x_ref[...], bt_ref[...], preferred_element_type=f32)
        for l in range(L):  # H2 is a multiple of 8 -> aligned sublane slices
            u_sc[:, l * W:(l + 1) * W] = u[l * H2:(l + 1) * H2, :]

    # ---- (1b) H-axis bilinear interp for this row tile: ONE wide bf16 MXU matmul ----
    #      [tH, H2] @ [H2, L*W] -> [tH, L*W]   (f32 accumulate)
    v_all = jnp.dot(a_ref[...].astype(bf16), u_sc[...].astype(bf16),
                    preferred_element_type=f32)

    # ---- (2) ReplicationPad2d(1) + 3x3 all-ones conv, exact separable bf16 matmuls ----
    # (Dv/Dht entries and all partial sums are small integers <= 9 -> exact in bf16.)
    bnd = (bnd_ref[...] == 1).astype(bf16)                                    # [H, W]
    tmp = jnp.dot(dv_ref[...].astype(bf16), bnd, preferred_element_type=f32)  # [tH, W]
    conv = jnp.dot(tmp.astype(bf16), dht_ref[...], preferred_element_type=f32)
    sem = sem_ref[...]                                                        # [tH, W] int32
    valid_f = jnp.logical_and(conv > 0.0, sem != ignore_label).astype(f32)

    # ---- (3) LayerNorm stats over channels: fused single pass (E[x], E[x^2]) ----
    planes = [v_all[:, l * W:(l + 1) * W] for l in range(L)]                  # L x [tH, W]
    s1 = planes[0]
    s2 = planes[0] * planes[0]
    for l in range(1, L):
        s1 = s1 + planes[l]
        s2 = s2 + planes[l] * planes[l]
    inv_l = 1.0 / float(L)
    mu = s1 * inv_l
    var = s2 * inv_l - mu * mu                       # biased variance, as nn.LayerNorm
    rstd = jax.lax.rsqrt(var + 1e-5)

    # ---- (4) softmax cross-entropy over channels.  LN affine is folded into the loops
    #      (recomputed), so only the running m / se / y_t planes are live -> half the
    #      working set of materializing a second list of L planes.  LN scale/bias are
    #      SMEM scalars broadcast into the VPU for free. ----
    def y_plane(l):
        return (planes[l] - mu) * (rstd * lnw_ref[l]) + lnb_ref[l]

    m = y_plane(0)
    for l in range(1, L):
        m = jnp.maximum(m, y_plane(l))
    se = jnp.zeros_like(m)
    y_t = jnp.zeros_like(m)
    for l in range(L):
        yl = y_plane(l)
        se = se + jnp.exp(yl - m)          # f32 exp: correct on all generations (v5e EUP)
        y_t = y_t + jnp.where(sem == l, yl, 0.0)
    ce = (m + jnp.log(se)) - y_t                                               # [tH, W]

    sum_ref[...] = jnp.sum(ce * valid_f, axis=(0, 1), keepdims=True)          # (1, 1)
    cnt_ref[...] = jnp.sum(valid_f, axis=(0, 1), keepdims=True)               # (1, 1)


def boundary_contrastive_loss(contrast_logits, boundary_gt, sem_gt,
                              ln_weight, ln_bias, ignore_label=-1, tile_h=None):
    B, H2, W2, L = (int(s) for s in contrast_logits.shape)
    H, W = int(sem_gt.shape[1]), int(sem_gt.shape[2])

    # Row-tile size along H: multiple of 8 (f32 sublane granule) or full H.
    # Pick per TPU generation so (logits block + [H2,L*W] scratch + L live [tH,W] planes)
    # stays well under the VMEM budget (v7x: 64 MiB physical).
    if tile_h is None:
        tile_h = H
    assert H % tile_h == 0, "tile_h must divide H"
    assert tile_h == H or tile_h % 8 == 0, "tile_h must be a multiple of 8"
    n_h = H // tile_h

    # Tiny separable constants (1-D bilinear interp + 1-D replication-pad dilation).
    A = jnp.asarray(_bilinear_matrix(H, H2), dtype=jnp.float32)          # [H, H2]  (row-tiled)
    Bt = jnp.asarray(_bilinear_matrix(W, W2).T, dtype=jnp.bfloat16)      # [W2, W]
    Dv = jnp.asarray(_dilate_matrix(H), dtype=jnp.float32)               # [H, H]   (row-tiled)
    Dht = jnp.asarray(_dilate_matrix(W).T, dtype=jnp.bfloat16)           # [W, W]

    # Channel-major logits: [B, L, H2, W2] -> [B, L*H2, W2], bf16 MXU operand.
    x2 = jnp.transpose(contrast_logits, (0, 3, 1, 2)).reshape(B, L * H2, W2)
    x2 = x2.astype(jnp.bfloat16)
    bnd = boundary_gt.astype(jnp.int32)
    sem = sem_gt.astype(jnp.int32)
    lnw = ln_weight.astype(jnp.float32).reshape(L)      # [L] SMEM scalars
    lnb = ln_bias.astype(jnp.float32).reshape(L)

    kernel = functools.partial(_loss_kernel, L=L, H2=H2, W=W,
                               ignore_label=int(ignore_label))

    sums, cnts = pl.pallas_call(
        kernel,
        out_shape=(jax.ShapeDtypeStruct((B, n_h, 1, 1), jnp.float32),
                   jax.ShapeDtypeStruct((B, n_h, 1, 1), jnp.float32)),
        grid_spec=pltpu.PrefetchScalarGridSpec(
            num_scalar_prefetch=0,
            grid=(B, n_h),
            in_specs=[
                pl.BlockSpec((W2, W), lambda b, h: (0, 0)),                  # Bt (bf16)
                pl.BlockSpec((tile_h, H2), lambda b, h: (h, 0)),             # A row tile (f32)
                pl.BlockSpec((None, L * H2, W2), lambda b, h: (b, 0, 0)),    # logits (bf16)
                pl.BlockSpec((None, H, W), lambda b, h: (b, 0, 0)),          # boundary (full H)
                pl.BlockSpec((None, tile_h, W), lambda b, h: (b, h, 0)),     # sem row tile
                pl.BlockSpec((tile_h, H), lambda b, h: (h, 0)),              # Dv row tile (f32)
                pl.BlockSpec((W, W), lambda b, h: (0, 0)),                   # Dh^T (bf16)
                pl.BlockSpec(memory_space=pltpu.MemorySpace.SMEM),           # LN weight [L]
                pl.BlockSpec(memory_space=pltpu.MemorySpace.SMEM),           # LN bias   [L]
            ],
            out_specs=[
                pl.BlockSpec((None, None, 1, 1), lambda b, h: (b, h, 0, 0)),  # CE partial sum
                pl.BlockSpec((None, None, 1, 1), lambda b, h: (b, h, 0, 0)),  # pixel count
            ],
            # W-interp result in channels-in-lanes layout, persistent across H tiles.
            scratch_shapes=[pltpu.VMEM((H2, L * W), jnp.float32)],
        ),
        compiler_params=pltpu.CompilerParams(
            # batch axis parallel (megacore on v7x); H-tile axis ordered because the
            # staged scratch is written at h == 0 and read by the later tiles.
            dimension_semantics=("parallel", "arbitrary"),
            vmem_limit_bytes=64 * 1024 * 1024,   # raise above 16/32 MiB scoped defaults
        ),
    )(Bt, A, x2, bnd, sem, Dv, Dht, lnw, lnb)

    return jnp.sum(sums) / jnp.sum(cnts)


# ---------------------------------------------------------------------------
# Pure-JAX f32 reference (for correctness check)
# ---------------------------------------------------------------------------
def _reference_loss(contrast_logits, boundary_gt, sem_gt, ln_w, ln_b, ignore_label=-1):
    B, H2, W2, L = contrast_logits.shape
    H, W = int(sem_gt.shape[1]), int(sem_gt.shape[2])
    A = jnp.asarray(_bilinear_matrix(H, H2))
    Bm = jnp.asarray(_bilinear_matrix(W, W2))
    hi = jnp.einsum('hp,wq,bpql->bhwl', A, Bm, contrast_logits.astype(jnp.float32))
    bnd = (boundary_gt == 1).astype(jnp.float32)
    Dv = jnp.asarray(_dilate_matrix(H))
    Dh = jnp.asarray(_dilate_matrix(W))
    conv = jnp.einsum('ip,jq,bpq->bij', Dv, Dh, bnd)
    mask = conv > 0
    valid = jnp.logical_and(mask, sem_gt != ignore_label)
    mu = hi.mean(-1, keepdims=True)
    var = ((hi - mu) ** 2).mean(-1, keepdims=True)
    y = (hi - mu) * jax.lax.rsqrt(var + 1e-5) * ln_w + ln_b
    lse = jax.scipy.special.logsumexp(y, axis=-1)
    tgt = jnp.clip(sem_gt, 0, L - 1)
    yt = jnp.take_along_axis(y, tgt[..., None], axis=-1)[..., 0]
    ce = lse - yt
    vf = valid.astype(jnp.float32)
    return jnp.sum(ce * vf) / jnp.sum(vf)


if __name__ == "__main__":
    # config: num_classes=4, num_prototype=8 -> L = 32 ; ignore_label = -1
    num_classes, num_prototype = 4, 8
    L = num_classes * num_prototype
    B, H, W = 2, 16, 16
    H2, W2 = 8, 8

    key = jax.random.PRNGKey(0)
    k1, k2, k3 = jax.random.split(key, 3)

    contrast_logits = jax.random.normal(k1, (B, H2, W2, L), dtype=jnp.float32)
    boundary_gt = jax.random.bernoulli(k2, p=0.1, shape=(B, H, W)).astype(jnp.int32)
    boundary_gt = boundary_gt.at[0, 8, 8].set(1)  # guarantee a non-empty selection
    sem_gt = jax.random.randint(k3, (B, H, W), -1, num_classes).astype(jnp.int32)

    # deterministic params (matches nn.LayerNorm default init)
    ln_weight = jnp.ones((L,), dtype=jnp.float32)
    ln_bias = jnp.zeros((L,), dtype=jnp.float32)

    # tile_h=8 exercises the H-tile grid axis (nH=2) and the pl.when staging path.
    loss = boundary_contrastive_loss(contrast_logits, boundary_gt, sem_gt,
                                     ln_weight, ln_bias, ignore_label=-1, tile_h=8)
    loss = jax.block_until_ready(loss)

    ref = jax.block_until_ready(
        _reference_loss(contrast_logits, boundary_gt, sem_gt, ln_weight, ln_bias, -1))

    # All MXU operands are bf16 (logits, interp matrices, staged interp result), so the
    # end-to-end tolerance vs the all-f32 reference is ~1e-2 relative; LN/CE stay f32.
    np.testing.assert_allclose(np.asarray(loss), np.asarray(ref), rtol=2e-2, atol=2e-2)
    print("KERNEL_OK")
</pallas_src>

<mosaic_0001>
module attributes {stable_mosaic.version = 11 : i64} {
  func.func @_loss_kernel(%arg0: i32, %arg1: i32, %arg2: memref<8x16xbf16, #tpu.memory_space<vmem>>, %arg3: memref<8x8xf32, #tpu.memory_space<vmem>>, %arg4: memref<1x256x8xbf16, #tpu.memory_space<vmem>>, %arg5: memref<1x16x16xi32, #tpu.memory_space<vmem>>, %arg6: memref<1x8x16xi32, #tpu.memory_space<vmem>>, %arg7: memref<8x16xf32, #tpu.memory_space<vmem>>, %arg8: memref<16x16xbf16, #tpu.memory_space<vmem>>, %arg9: memref<32xf32, #tpu.memory_space<smem>>, %arg10: memref<32xf32, #tpu.memory_space<smem>>, %arg11: memref<1x1x1x1xf32, #tpu.memory_space<vmem>>, %arg12: memref<1x1x1x1xf32, #tpu.memory_space<vmem>>, %arg13: memref<8x512xf32, #tpu.memory_space<vmem>>) attributes {dimension_semantics = [#tpu.dimension_semantics<parallel>, #tpu.dimension_semantics<arbitrary>], iteration_bounds = array<i64: 2, 2>, scalar_prefetch = 0 : i64, scratch_operands = 1 : i64, tpu.core_type = #tpu.core_type<tc>, window_params = [{pipeline_mode = #tpu.pipeline_mode<synchronous>, transform_indices = @transform_0, window_bounds = array<i64: 8, 16>}, {transform_indices = @transform_1, window_bounds = array<i64: 8, 8>}, {transform_indices = @transform_2, window_bounds = array<i64: 1, 256, 8>}, {transform_indices = @transform_3, window_bounds = array<i64: 1, 16, 16>}, {transform_indices = @transform_4, window_bounds = array<i64: 1, 8, 16>}, {transform_indices = @transform_5, window_bounds = array<i64: 8, 16>}, {pipeline_mode = #tpu.pipeline_mode<synchronous>, transform_indices = @transform_6, window_bounds = array<i64: 16, 16>}, {transform_indices = @transform_7, window_bounds = array<i64: 32>}, {transform_indices = @transform_8, window_bounds = array<i64: 32>}, {transform_indices = @transform_9, window_bounds = array<i64: 1, 1, 1, 1>}, {transform_indices = @transform_10, window_bounds = array<i64: 1, 1, 1, 1>}]} {
    %c0_i32 = arith.constant 0 : i32
    %0 = arith.cmpi eq, %arg1, %c0_i32 : i32
    %1 = arith.extui %0 : i1 to i32
    %c0_i32_0 = arith.constant 0 : i32
    %2 = arith.cmpi ne, %1, %c0_i32_0 : i32
    scf.if %2 {
      %c0_163 = arith.constant 0 : index
      %c0_164 = arith.constant 0 : index
      %c0_165 = arith.constant 0 : index
      %986 = vector.load %arg4[%c0_163, %c0_164, %c0_165] : memref<1x256x8xbf16, #tpu.memory_space<vmem>>, vector<1x256x8xbf16>
      %987 = vector.shape_cast %986 : vector<1x256x8xbf16> to vector<256x8xbf16>
      %c0_166 = arith.constant 0 : index
      %c0_167 = arith.constant 0 : index
      %988 = vector.load %arg2[%c0_166, %c0_167] : memref<8x16xbf16, #tpu.memory_space<vmem>>, vector<8x16xbf16>
      %cst_168 = arith.constant dense<0.000000e+00> : vector<256x16xf32>
      %989 = tpu.matmul %987, %988, %cst_168 {dimension_numbers = #tpu.dot_dimension_numbers<[1], [0], [0], [1], [0, 0, 1, 1], [], []>} : vector<256x8xbf16>, vector<8x16xbf16>, vector<256x16xf32> -> vector<256x16xf32>
      %990 = vector.extract_strided_slice %989 {offsets = [0, 0], sizes = [8, 16], strides = [1, 1]} : vector<256x16xf32> to vector<8x16xf32>
      %c0_169 = arith.constant 0 : index
      %c0_170 = arith.constant 0 : index
      %991 = vector.load %arg13[%c0_169, %c0_170] : memref<8x512xf32, #tpu.memory_space<vmem>>, vector<8x16xf32>
      tpu.vector_store %arg13[%c0_169, %c0_170], %990 {strides = array<i32>} : memref<8x512xf32, #tpu.memory_space<vmem>>, vector<8x16xf32>,
      %992 = vector.extract_strided_slice %989 {offsets = [8, 0], sizes = [8, 16], strides = [1, 1]} : vector<256x16xf32> to vector<8x16xf32>
      %c0_171 = arith.constant 0 : index
      %c16_172 = arith.constant 16 : index
      %993 = vector.load %arg13[%c0_171, %c16_172] : memref<8x512xf32, #tpu.memory_space<vmem>>, vector<8x16xf32>
      tpu.vector_store %arg13[%c0_171, %c16_172], %992 {strides = array<i32>} : memref<8x512xf32, #tpu.memory_space<vmem>>, vector<8x16xf32>,
      %994 = vector.extract_strided_slice %989 {offsets = [16, 0], sizes = [8, 16], strides = [1, 1]} : vector<256x16xf32> to vector<8x16xf32>
      %c0_173 = arith.constant 0 : index
      %c32 = arith.constant 32 : index
      %995 = vector.load %arg13[%c0_173, %c32] : memref<8x512xf32, #tpu.memory_space<vmem>>, vector<8x16xf32>
      tpu.vector_store %arg13[%c0_173, %c32], %994 {strides = array<i32>} : memref<8x512xf32, #tpu.memory_space<vmem>>, vector<8x16xf32>,
      %996 = vector.extract_strided_slice %989 {offsets = [24, 0], sizes = [8, 16], strides = [1, 1]} : vector<256x16xf32> to vector<8x16xf32>
      %c0_174 = arith.constant 0 : index
      %c48 = arith.constant 48 : index
      %997 = vector.load %arg13[%c0_174, %c48] : memref<8x512xf32, #tpu.memory_space<vmem>>, vector<8x16xf32>
      tpu.vector_store %arg13[%c0_174, %c48], %996 {strides = array<i32>} : memref<8x512xf32, #tpu.memory_space<vmem>>, vector<8x16xf32>,
      %998 = vector.extract_strided_slice %989 {offsets = [32, 0], sizes = [8, 16], strides = [1, 1]} : vector<256x16xf32> to vector<8x16xf32>
      %c0_175 = arith.constant 0 : index
      %c64 = arith.constant 64 : index
      %999 = vector.load %arg13[%c0_175, %c64] : memref<8x512xf32, #tpu.memory_space<vmem>>, vector<8x16xf32>
      tpu.vector_store %arg13[%c0_175, %c64], %998 {strides = array<i32>} : memref<8x512xf32, #tpu.memory_space<vmem>>, vector<8x16xf32>,
      %1000 = vector.extract_strided_slice %989 {offsets = [40, 0], sizes = [8, 16], strides = [1, 1]} : vector<256x16xf32> to vector<8x16xf32>
      %c0_176 = arith.constant 0 : index
      %c80 = arith.constant 80 : index
      %1001 = vector.load %arg13[%c0_176, %c80] : memref<8x512xf32, #tpu.memory_space<vmem>>, vector<8x16xf32>
      tpu.vector_store %arg13[%c0_176, %c80], %1000 {strides = array<i32>} : memref<8x512xf32, #tpu.memory_space<vmem>>, vector<8x16xf32>,
      %1002 = vector.extract_strided_slice %989 {offsets = [48, 0], sizes = [8, 16], strides = [1, 1]} : vector<256x16xf32> to vector<8x16xf32>
      %c0_177 = arith.constant 0 : index
      %c96 = arith.constant 96 : index
      %1003 = vector.load %arg13[%c0_177, %c96] : memref<8x512xf32, #tpu.memory_space<vmem>>, vector<8x16xf32>
      tpu.vector_store %arg13[%c0_177, %c96], %1002 {strides = array<i32>} : memref<8x512xf32, #tpu.memory_space<vmem>>, vector<8x16xf32>,
      %1004 = vector.extract_strided_slice %989 {offsets = [56, 0], sizes = [8, 16], strides = [1, 1]} : vector<256x16xf32> to vector<8x16xf32>
      %c0_178 = arith.constant 0 : index
      %c112 = arith.constant 112 : index
      %1005 = vector.load %arg13[%c0_178, %c112] : memref<8x512xf32, #tpu.memory_space<vmem>>, vector<8x16xf32>
      tpu.vector_store %arg13[%c0_178, %c112], %1004 {strides = array<i32>} : memref<8x512xf32, #tpu.memory_space<vmem>>, vector<8x16xf32>,
      %1006 = vector.extract_strided_slice %989 {offsets = [64, 0], sizes = [8, 16], strides = [1, 1]} : vector<256x16xf32> to vector<8x16xf32>
      %c0_179 = arith.constant 0 : index
      %c128 = arith.constant 128 : index
      %1007 = vector.load %arg13[%c0_179, %c128] : memref<8x512xf32, #tpu.memory_space<vmem>>, vector<8x16xf32>
      tpu.vector_store %arg13[%c0_179, %c128], %1006 {strides = array<i32>} : memref<8x512xf32, #tpu.memory_space<vmem>>, vector<8x16xf32>,
      %1008 = vector.extract_strided_slice %989 {offsets = [72, 0], sizes = [8, 16], strides = [1, 1]} : vector<256x16xf32> to vector<8x16xf32>
      %c0_180 = arith.constant 0 : index
      %c144 = arith.constant 144 : index
      %1009 = vector.load %arg13[%c0_180, %c144] : memref<8x512xf32, #tpu.memory_space<vmem>>, vector<8x16xf32>
      tpu.vector_store %arg13[%c0_180, %c144], %1008 {strides = array<i32>} : memref<8x512xf32, #tpu.memory_space<vmem>>, vector<8x16xf32>,
      %1010 = vector.extract_strided_slice %989 {offsets = [80, 0], sizes = [8, 16], strides = [1, 1]} : vector<256x16xf32> to vector<8x16xf32>
      %c0_181 = arith.constant 0 : index
      %c160 = arith.constant 160 : index
      %1011 = vector.load %arg13[%c0_181, %c160] : memref<8x512xf32, #tpu.memory_space<vmem>>, vector<8x16xf32>
      tpu.vector_store %arg13[%c0_181, %c160], %1010 {strides = array<i32>} : memref<8x512xf32, #tpu.memory_space<vmem>>, vector<8x16xf32>,
      %1012 = vector.extract_strided_slice %989 {offsets = [88, 0], sizes = [8, 16], strides = [1, 1]} : vector<256x16xf32> to vector<8x16xf32>
      %c0_182 = arith.constant 0 : index
      %c176 = arith.constant 176 : index
      %1013 = vector.load %arg13[%c0_182, %c176] : memref<8x512xf32, #tpu.memory_space<vmem>>, vector<8x16xf32>
      tpu.vector_store %arg13[%c0_182, %c176], %1012 {strides = array<i32>} : memref<8x512xf32, #tpu.memory_space<vmem>>, vector<8x16xf32>,
      %1014 = vector.extract_strided_slice %989 {offsets = [96, 0], sizes = [8, 16], strides = [1, 1]} : vector<256x16xf32> to vector<8x16xf32>
      %c0_183 = arith.constant 0 : index
      %c192 = arith.constant 192 : index
      %1015 = vector.load %arg13[%c0_183, %c192] : memref<8x512xf32, #tpu.memory_space<vmem>>, vector<8x16xf32>
      tpu.vector_store %arg13[%c0_183, %c192], %1014 {strides = array<i32>} : memref<8x512xf32, #tpu.memory_space<vmem>>, vector<8x16xf32>,
      %1016 = vector.extract_strided_slice %989 {offsets = [104, 0], sizes = [8, 16], strides = [1, 1]} : vector<256x16xf32> to vector<8x16xf32>
      %c0_184 = arith.constant 0 : index
      %c208 = arith.constant 208 : index
      %1017 = vector.load %arg13[%c0_184, %c208] : memref<8x512xf32, #tpu.memory_space<vmem>>, vector<8x16xf32>
      tpu.vector_store %arg13[%c0_184, %c208], %1016 {strides = array<i32>} : memref<8x512xf32, #tpu.memory_space<vmem>>, vector<8x16xf32>,
      %1018 = vector.extract_strided_slice %989 {offsets = [112, 0], sizes = [8, 16], strides = [1, 1]} : vector<256x16xf32> to vector<8x16xf32>
      %c0_185 = arith.constant 0 : index
      %c224 = arith.constant 224 : index
      %1019 = vector.load %arg13[%c0_185, %c224] : memref<8x512xf32, #tpu.memory_space<vmem>>, vector<8x16xf32>
      tpu.vector_store %arg13[%c0_185, %c224], %1018 {strides = array<i32>} : memref<8x512xf32, #tpu.memory_space<vmem>>, vector<8x16xf32>,
      %1020 = vector.extract_strided_slice %989 {offsets = [120, 0], sizes = [8, 16], strides = [1, 1]} : vector<256x16xf32> to vector<8x16xf32>
      %c0_186 = arith.constant 0 : index
      %c240 = arith.constant 240 : index
      %1021 = vector.load %arg13[%c0_186, %c240] : memref<8x512xf32, #tpu.memory_space<vmem>>, vector<8x16xf32>
      tpu.vector_store %arg13[%c0_186, %c240], %1020 {strides = array<i32>} : memref<8x512xf32, #tpu.memory_space<vmem>>, vector<8x16xf32>,
      %1022 = vector.extract_strided_slice %989 {offsets = [128, 0], sizes = [8, 16], strides = [1, 1]} : vector<256x16xf32> to vector<8x16xf32>
      %c0_187 = arith.constant 0 : index
      %c256 = arith.constant 256 : index
      %1023 = vector.load %arg13[%c0_187, %c256] : memref<8x512xf32, #tpu.memory_space<vmem>>, vector<8x16xf32>
      tpu.vector_store %arg13[%c0_187, %c256], %1022 {strides = array<i32>} : memref<8x512xf32, #tpu.memory_space<vmem>>, vector<8x16xf32>,
      %1024 = vector.extract_strided_slice %989 {offsets = [136, 0], sizes = [8, 16], strides = [1, 1]} : vector<256x16xf32> to vector<8x16xf32>
      %c0_188 = arith.constant 0 : index
      %c272 = arith.constant 272 : index
      %1025 = vector.load %arg13[%c0_188, %c272] : memref<8x512xf32, #tpu.memory_space<vmem>>, vector<8x16xf32>
      tpu.vector_store %arg13[%c0_188, %c272], %1024 {strides = array<i32>} : memref<8x512xf32, #tpu.memory_space<vmem>>, vector<8x16xf32>,
      %1026 = vector.extract_strided_slice %989 {offsets = [144, 0], sizes = [8, 16], strides = [1, 1]} : vector<256x16xf32> to vector<8x16xf32>
      %c0_189 = arith.constant 0 : index
      %c288 = arith.constant 288 : index
      %1027 = vector.load %arg13[%c0_189, %c288] : memref<8x512xf32, #tpu.memory_space<vmem>>, vector<8x16xf32>
      tpu.vector_store %arg13[%c0_189, %c288], %1026 {strides = array<i32>} : memref<8x512xf32, #tpu.memory_space<vmem>>, vector<8x16xf32>,
      %1028 = vector.extract_strided_slice %989 {offsets = [152, 0], sizes = [8, 16], strides = [1, 1]} : vector<256x16xf32> to vector<8x16xf32>
      %c0_190 = arith.constant 0 : index
      %c304 = arith.constant 304 : index
      %1029 = vector.load %arg13[%c0_190, %c304] : memref<8x512xf32, #tpu.memory_space<vmem>>, vector<8x16xf32>
      tpu.vector_store %arg13[%c0_190, %c304], %1028 {strides = array<i32>} : memref<8x512xf32, #tpu.memory_space<vmem>>, vector<8x16xf32>,
      %1030 = vector.extract_strided_slice %989 {offsets = [160, 0], sizes = [8, 16], strides = [1, 1]} : vector<256x16xf32> to vector<8x16xf32>
      %c0_191 = arith.constant 0 : index
      %c320 = arith.constant 320 : index
      %1031 = vector.load %arg13[%c0_191, %c320] : memref<8x512xf32, #tpu.memory_space<vmem>>, vector<8x16xf32>
      tpu.vector_store %arg13[%c0_191, %c320], %1030 {strides = array<i32>} : memref<8x512xf32, #tpu.memory_space<vmem>>, vector<8x16xf32>,
      %1032 = vector.extract_strided_slice %989 {offsets = [168, 0], sizes = [8, 16], strides = [1, 1]} : vector<256x16xf32> to vector<8x16xf32>
      %c0_192 = arith.constant 0 : index
      %c336 = arith.constant 336 : index
      %1033 = vector.load %arg13[%c0_192, %c336] : memref<8x512xf32, #tpu.memory_space<vmem>>, vector<8x16xf32>
      tpu.vector_store %arg13[%c0_192, %c336], %1032 {strides = array<i32>} : memref<8x512xf32, #tpu.memory_space<vmem>>, vector<8x16xf32>,
      %1034 = vector.extract_strided_slice %989 {offsets = [176, 0], sizes = [8, 16], strides = [1, 1]} : vector<256x16xf32> to vector<8x16xf32>
      %c0_193 = arith.constant 0 : index
      %c352 = arith.constant 352 : index
      %1035 = vector.load %arg13[%c0_193, %c352] : memref<8x512xf32, #tpu.memory_space<vmem>>, vector<8x16xf32>
      tpu.vector_store %arg13[%c0_193, %c352], %1034 {strides = array<i32>} : memref<8x512xf32, #tpu.memory_space<vmem>>, vector<8x16xf32>,
      %1036 = vector.extract_strided_slice %989 {offsets = [184, 0], sizes = [8, 16], strides = [1, 1]} : vector<256x16xf32> to vector<8x16xf32>
      %c0_194 = arith.constant 0 : index
      %c368 = arith.constant 368 : index
      %1037 = vector.load %arg13[%c0_194, %c368] : memref<8x512xf32, #tpu.memory_space<vmem>>, vector<8x16xf32>
      tpu.vector_store %arg13[%c0_194, %c368], %1036 {strides = array<i32>} : memref<8x512xf32, #tpu.memory_space<vmem>>, vector<8x16xf32>,
      %1038 = vector.extract_strided_slice %989 {offsets = [192, 0], sizes = [8, 16], strides = [1, 1]} : vector<256x16xf32> to vector<8x16xf32>
      %c0_195 = arith.constant 0 : index
      %c384 = arith.constant 384 : index
      %1039 = vector.load %arg13[%c0_195, %c384] : memref<8x512xf32, #tpu.memory_space<vmem>>, vector<8x16xf32>
      tpu.vector_store %arg13[%c0_195, %c384], %1038 {strides = array<i32>} : memref<8x512xf32, #tpu.memory_space<vmem>>, vector<8x16xf32>,
      %1040 = vector.extract_strided_slice %989 {offsets = [200, 0], sizes = [8, 16], strides = [1, 1]} : vector<256x16xf32> to vector<8x16xf32>
      %c0_196 = arith.constant 0 : index
      %c400 = arith.constant 400 : index
      %1041 = vector.load %arg13[%c0_196, %c400] : memref<8x512xf32, #tpu.memory_space<vmem>>, vector<8x16xf32>
      tpu.vector_store %arg13[%c0_196, %c400], %1040 {strides = array<i32>} : memref<8x512xf32, #tpu.memory_space<vmem>>, vector<8x16xf32>,
      %1042 = vector.extract_strided_slice %989 {offsets = [208, 0], sizes = [8, 16], strides = [1, 1]} : vector<256x16xf32> to vector<8x16xf32>
      %c0_197 = arith.constant 0 : index
      %c416 = arith.constant 416 : index
      %1043 = vector.load %arg13[%c0_197, %c416] : memref<8x512xf32, #tpu.memory_space<vmem>>, vector<8x16xf32>
      tpu.vector_store %arg13[%c0_197, %c416], %1042 {strides = array<i32>} : memref<8x512xf32, #tpu.memory_space<vmem>>, vector<8x16xf32>,
      %1044 = vector.extract_strided_slice %989 {offsets = [216, 0], sizes = [8, 16], strides = [1, 1]} : vector<256x16xf32> to vector<8x16xf32>
      %c0_198 = arith.constant 0 : index
      %c432 = arith.constant 432 : index
      %1045 = vector.load %arg13[%c0_198, %c432] : memref<8x512xf32, #tpu.memory_space<vmem>>, vector<8x16xf32>
      tpu.vector_store %arg13[%c0_198, %c432], %1044 {strides = array<i32>} : memref<8x512xf32, #tpu.memory_space<vmem>>, vector<8x16xf32>,
      %1046 = vector.extract_strided_slice %989 {offsets = [224, 0], sizes = [8, 16], strides = [1, 1]} : vector<256x16xf32> to vector<8x16xf32>
      %c0_199 = arith.constant 0 : index
      %c448 = arith.constant 448 : index
      %1047 = vector.load %arg13[%c0_199, %c448] : memref<8x512xf32, #tpu.memory_space<vmem>>, vector<8x16xf32>
      tpu.vector_store %arg13[%c0_199, %c448], %1046 {strides = array<i32>} : memref<8x512xf32, #tpu.memory_space<vmem>>, vector<8x16xf32>,
      %1048 = vector.extract_strided_slice %989 {offsets = [232, 0], sizes = [8, 16], strides = [1, 1]} : vector<256x16xf32> to vector<8x16xf32>
      %c0_200 = arith.constant 0 : index
      %c464 = arith.constant 464 : index
      %1049 = vector.load %arg13[%c0_200, %c464] : memref<8x512xf32, #tpu.memory_space<vmem>>, vector<8x16xf32>
      tpu.vector_store %arg13[%c0_200, %c464], %1048 {strides = array<i32>} : memref<8x512xf32, #tpu.memory_space<vmem>>, vector<8x16xf32>,
      %1050 = vector.extract_strided_slice %989 {offsets = [240, 0], sizes = [8, 16], strides = [1, 1]} : vector<256x16xf32> to vector<8x16xf32>
      %c0_201 = arith.constant 0 : index
      %c480 = arith.constant 480 : index
      %1051 = vector.load %arg13[%c0_201, %c480] : memref<8x512xf32, #tpu.memory_space<vmem>>, vector<8x16xf32>
      tpu.vector_store %arg13[%c0_201, %c480], %1050 {strides = array<i32>} : memref<8x512xf32, #tpu.memory_space<vmem>>, vector<8x16xf32>,
      %1052 = vector.extract_strided_slice %989 {offsets = [248, 0], sizes = [8, 16], strides = [1, 1]} : vector<256x16xf32> to vector<8x16xf32>
      %c0_202 = arith.constant 0 : index
      %c496 = arith.constant 496 : index
      %1053 = vector.load %arg13[%c0_202, %c496] : memref<8x512xf32, #tpu.memory_space<vmem>>, vector<8x16xf32>
      tpu.vector_store %arg13[%c0_202, %c496], %1052 {strides = array<i32>} : memref<8x512xf32, #tpu.memory_space<vmem>>, vector<8x16xf32>,
    } else {
    }
    %c0 = arith.constant 0 : index
    %c0_1 = arith.constant 0 : index
    %3 = vector.load %arg3[%c0, %c0_1] : memref<8x8xf32, #tpu.memory_space<vmem>>, vector<8x8xf32>
    %4 = arith.truncf %3 : vector<8x8xf32> to vector<8x8xbf16>
    %c0_2 = arith.constant 0 : index
    %c0_3 = arith.constant 0 : index
    %5 = vector.load %arg13[%c0_2, %c0_3] : memref<8x512xf32, #tpu.memory_space<vmem>>, vector<8x512xf32>
    %6 = arith.truncf %5 : vector<8x512xf32> to vector<8x512xbf16>
    %cst = arith.constant dense<0.000000e+00> : vector<8x512xf32>
    %7 = tpu.matmul %4, %6, %cst {dimension_numbers = #tpu.dot_dimension_numbers<[1], [0], [0], [1], [0, 0, 1, 1], [], []>} : vector<8x8xbf16>, vector<8x512xbf16>, vector<8x512xf32> -> vector<8x512xf32>
    %c0_4 = arith.constant 0 : index
    %c0_5 = arith.constant 0 : index
    %c0_6 = arith.constant 0 : index
    %8 = vector.load %arg5[%c0_4, %c0_5, %c0_6] : memref<1x16x16xi32, #tpu.memory_space<vmem>>, vector<1x16x16xi32>
    %9 = vector.shape_cast %8 : vector<1x16x16xi32> to vector<16x16xi32>
    %c1_i32 = arith.constant 1 : i32
    %10 = vector.broadcast %c1_i32 : i32 to vector<16x16xi32>
    %11 = arith.cmpi eq, %9, %10 : vector<16x16xi32>
    %12 = arith.extui %11 : vector<16x16xi1> to vector<16x16xi32>
    %13 = arith.sitofp %12 : vector<16x16xi32> to vector<16x16xf32>
    %14 = arith.truncf %13 : vector<16x16xf32> to vector<16x16xbf16>
    %c0_7 = arith.constant 0 : index
    %c0_8 = arith.constant 0 : index
    %15 = vector.load %arg7[%c0_7, %c0_8] : memref<8x16xf32, #tpu.memory_space<vmem>>, vector<8x16xf32>
    %16 = arith.truncf %15 : vector<8x16xf32> to vector<8x16xbf16>
    %cst_9 = arith.constant dense<0.000000e+00> : vector<8x16xf32>
    %17 = tpu.matmul %16, %14, %cst_9 {dimension_numbers = #tpu.dot_dimension_numbers<[1], [0], [0], [1], [0, 0, 1, 1], [], []>} : vector<8x16xbf16>, vector<16x16xbf16>, vector<8x16xf32> -> vector<8x16xf32>
    %18 = arith.truncf %17 : vector<8x16xf32> to vector<8x16xbf16>
    %c0_10 = arith.constant 0 : index
    %c0_11 = arith.constant 0 : index
    %19 = vector.load %arg8[%c0_10, %c0_11] : memref<16x16xbf16, #tpu.memory_space<vmem>>, vector<16x16xbf16>
    %cst_12 = arith.constant dense<0.000000e+00> : vector<8x16xf32>
    %20 = tpu.matmul %18, %19, %cst_12 {dimension_numbers = #tpu.dot_dimension_numbers<[1], [0], [0], [1], [0, 0, 1, 1], [], []>} : vector<8x16xbf16>, vector<16x16xbf16>, vector<8x16xf32> -> vector<8x16xf32>
    %c0_13 = arith.constant 0 : index
    %c0_14 = arith.constant 0 : index
    %c0_15 = arith.constant 0 : index
    %21 = vector.load %arg6[%c0_13, %c0_14, %c0_15] : memref<1x8x16xi32, #tpu.memory_space<vmem>>, vector<1x8x16xi32>
    %22 = vector.shape_cast %21 : vector<1x8x16xi32> to vector<8x16xi32>
    %cst_16 = arith.constant 0.000000e+00 : f32
    %23 = vector.broadcast %cst_16 : f32 to vector<8x16xf32>
    %24 = arith.cmpf ogt, %20, %23 : vector<8x16xf32>
    %c-1_i32 = arith.constant -1 : i32
    %25 = vector.broadcast %c-1_i32 : i32 to vector<8x16xi32>
    %26 = arith.cmpi ne, %22, %25 : vector<8x16xi32>
    %27 = arith.andi %24, %26 : vector<8x16xi1>
    %28 = arith.extui %27 : vector<8x16xi1> to vector<8x16xi32>
    %29 = arith.sitofp %28 : vector<8x16xi32> to vector<8x16xf32>
    %30 = vector.extract_strided_slice %7 {offsets = [0, 0], sizes = [8, 16], strides = [1, 1]} : vector<8x512xf32> to vector<8x16xf32>
    %31 = vector.extract_strided_slice %7 {offsets = [0, 16], sizes = [8, 16], strides = [1, 1]} : vector<8x512xf32> to vector<8x16xf32>
    %32 = vector.extract_strided_slice %7 {offsets = [0, 32], sizes = [8, 16], strides = [1, 1]} : vector<8x512xf32> to vector<8x16xf32>
    %33 = vector.extract_strided_slice %7 {offsets = [0, 48], sizes = [8, 16], strides = [1, 1]} : vector<8x512xf32> to vector<8x16xf32>
    %34 = vector.extract_strided_slice %7 {offsets = [0, 64], sizes = [8, 16], strides = [1, 1]} : vector<8x512xf32> to vector<8x16xf32>
    %35 = vector.extract_strided_slice %7 {offsets = [0, 80], sizes = [8, 16], strides = [1, 1]} : vector<8x512xf32> to vector<8x16xf32>
    %36 = vector.extract_strided_slice %7 {offsets = [0, 96], sizes = [8, 16], strides = [1, 1]} : vector<8x512xf32> to vector<8x16xf32>
    %37 = vector.extract_strided_slice %7 {offsets = [0, 112], sizes = [8, 16], strides = [1, 1]} : vector<8x512xf32> to vector<8x16xf32>
    %38 = vector.extract_strided_slice %7 {offsets = [0, 128], sizes = [8, 16], strides = [1, 1]} : vector<8x512xf32> to vector<8x16xf32>
    %39 = vector.extract_strided_slice %7 {offsets = [0, 144], sizes = [8, 16], strides = [1, 1]} : vector<8x512xf32> to vector<8x16xf32>
    %40 = vector.extract_strided_slice %7 {offsets = [0, 160], sizes = [8, 16], strides = [1, 1]} : vector<8x512xf32> to vector<8x16xf32>
    %41 = vector.extract_strided_slice %7 {offsets = [0, 176], sizes = [8, 16], strides = [1, 1]} : vector<8x512xf32> to vector<8x16xf32>
    %42 = vector.extract_strided_slice %7 {offsets = [0, 192], sizes = [8, 16], strides = [1, 1]} : vector<8x512xf32> to vector<8x16xf32>
    %43 = vector.extract_strided_slice %7 {offsets = [0, 208], sizes = [8, 16], strides = [1, 1]} : vector<8x512xf32> to vector<8x16xf32>
    %44 = vector.extract_strided_slice %7 {offsets = [0, 224], sizes = [8, 16], strides = [1, 1]} : vector<8x512xf32> to vector<8x16xf32>
    %45 = vector.extract_strided_slice %7 {offsets = [0, 240], sizes = [8, 16], strides = [1, 1]} : vector<8x512xf32> to vector<8x16xf32>
    %46 = vector.extract_strided_slice %7 {offsets = [0, 256], sizes = [8, 16], strides = [1, 1]} : vector<8x512xf32> to vector<8x16xf32>
    %47 = vector.extract_strided_slice %7 {offsets = [0, 272], sizes = [8, 16], strides = [1, 1]} : vector<8x512xf32> to vector<8x16xf32>
    %48 = vector.extract_strided_slice %7 {offsets = [0, 288], sizes = [8, 16], strides = [1, 1]} : vector<8x512xf32> to vector<8x16xf32>
    %49 = vector.extract_strided_slice %7 {offsets = [0, 304], sizes = [8, 16], strides = [1, 1]} : vector<8x512xf32> to vector<8x16xf32>
    %50 = vector.extract_strided_slice %7 {offsets = [0, 320], sizes = [8, 16], strides = [1, 1]} : vector<8x512xf32> to vector<8x16xf32>
    %51 = vector.extract_strided_slice %7 {offsets = [0, 336], sizes = [8, 16], strides = [1, 1]} : vector<8x512xf32> to vector<8x16xf32>
    %52 = vector.extract_strided_slice %7 {offsets = [0, 352], sizes = [8, 16], strides = [1, 1]} : vector<8x512xf32> to vector<8x16xf32>
    %53 = vector.extract_strided_slice %7 {offsets = [0, 368], sizes = [8, 16], strides = [1, 1]} : vector<8x512xf32> to vector<8x16xf32>
    %54 = vector.extract_strided_slice %7 {offsets = [0, 384], sizes = [8, 16], strides = [1, 1]} : vector<8x512xf32> to vector<8x16xf32>
    %55 = vector.extract_strided_slice %7 {offsets = [0, 400], sizes = [8, 16], strides = [1, 1]} : vector<8x512xf32> to vector<8x16xf32>
    %56 = vector.extract_strided_slice %7 {offsets = [0, 416], sizes = [8, 16], strides = [1, 1]} : vector<8x512xf32> to vector<8x16xf32>
    %57 = vector.extract_strided_slice %7 {offsets = [0, 432], sizes = [8, 16], strides = [1, 1]} : vector<8x512xf32> to vector<8x16xf32>
    %58 = vector.extract_strided_slice %7 {offsets = [0, 448], sizes = [8, 16], strides = [1, 1]} : vector<8x512xf32> to vector<8x16xf32>
    %59 = vector.extract_strided_slice %7 {offsets = [0, 464], sizes = [8, 16], strides = [1, 1]} : vector<8x512xf32> to vector<8x16xf32>
    %60 = vector.extract_strided_slice %7 {offsets = [0, 480], sizes = [8, 16], strides = [1, 1]} : vector<8x512xf32> to vector<8x16xf32>
    %61 = vector.extract_strided_slice %7 {offsets = [0, 496], sizes = [8, 16], strides = [1, 1]} : vector<8x512xf32> to vector<8x16xf32>
    %62 = arith.mulf %30, %30 : vector<8x16xf32>
    %63 = arith.addf %30, %31 : vector<8x16xf32>
    %64 = arith.mulf %31, %31 : vector<8x16xf32>
    %65 = arith.addf %62, %64 : vector<8x16xf32>
    %66 = arith.addf %63, %32 : vector<8x16xf32>
    %67 = arith.mulf %32, %32 : vector<8x16xf32>
    %68 = arith.addf %65, %67 : vector<8x16xf32>
    %69 = arith.addf %66, %33 : vector<8x16xf32>
    %70 = arith.mulf %33, %33 : vector<8x16xf32>
    %71 = arith.addf %68, %70 : vector<8x16xf32>
    %72 = arith.addf %69, %34 : vector<8x16xf32>
    %73 = arith.mulf %34, %34 : vector<8x16xf32>
    %74 = arith.addf %71, %73 : vector<8x16xf32>
    %75 = arith.addf %72, %35 : vector<8x16xf32>
    %76 = arith.mulf %35, %35 : vector<8x16xf32>
    %77 = arith.addf %74, %76 : vector<8x16xf32>
    %78 = arith.addf %75, %36 : vector<8x16xf32>
    %79 = arith.mulf %36, %36 : vector<8x16xf32>
    %80 = arith.addf %77, %79 : vector<8x16xf32>
    %81 = arith.addf %78, %37 : vector<8x16xf32>
    %82 = arith.mulf %37, %37 : vector<8x16xf32>
    %83 = arith.addf %80, %82 : vector<8x16xf32>
    %84 = arith.addf %81, %38 : vector<8x16xf32>
    %85 = arith.mulf %38, %38 : vector<8x16xf32>
    %86 = arith.addf %83, %85 : vector<8x16xf32>
    %87 = arith.addf %84, %39 : vector<8x16xf32>
    %88 = arith.mulf %39, %39 : vector<8x16xf32>
    %89 = arith.addf %86, %88 : vector<8x16xf32>
    %90 = arith.addf %87, %40 : vector<8x16xf32>
    %91 = arith.mulf %40, %40 : vector<8x16xf32>
    %92 = arith.addf %89, %91 : vector<8x16xf32>
    %93 = arith.addf %90, %41 : vector<8x16xf32>
    %94 = arith.mulf %41, %41 : vector<8x16xf32>
    %95 = arith.addf %92, %94 : vector<8x16xf32>
    %96 = arith.addf %93, %42 : vector<8x16xf32>
    %97 = arith.mulf %42, %42 : vector<8x16xf32>
    %98 = arith.addf %95, %97 : vector<8x16xf32>
    %99 = arith.addf %96, %43 : vector<8x16xf32>
    %100 = arith.mulf %43, %43 : vector<8x16xf32>
    %101 = arith.addf %98, %100 : vector<8x16xf32>
    %102 = arith.addf %99, %44 : vector<8x16xf32>
    %103 = arith.mulf %44, %44 : vector<8x16xf32>
    %104 = arith.addf %101, %103 : vector<8x16xf32>
    %105 = arith.addf %102, %45 : vector<8x16xf32>
    %106 = arith.mulf %45, %45 : vector<8x16xf32>
    %107 = arith.addf %104, %106 : vector<8x16xf32>
    %108 = arith.addf %105, %46 : vector<8x16xf32>
    %109 = arith.mulf %46, %46 : vector<8x16xf32>
    %110 = arith.addf %107, %109 : vector<8x16xf32>
    %111 = arith.addf %108, %47 : vector<8x16xf32>
    %112 = arith.mulf %47, %47 : vector<8x16xf32>
    %113 = arith.addf %110, %112 : vector<8x16xf32>
    %114 = arith.addf %111, %48 : vector<8x16xf32>
    %115 = arith.mulf %48, %48 : vector<8x16xf32>
    %116 = arith.addf %113, %115 : vector<8x16xf32>
    %117 = arith.addf %114, %49 : vector<8x16xf32>
    %118 = arith.mulf %49, %49 : vector<8x16xf32>
    %119 = arith.addf %116, %118 : vector<8x16xf32>
    %120 = arith.addf %117, %50 : vector<8x16xf32>
    %121 = arith.mulf %50, %50 : vector<8x16xf32>
    %122 = arith.addf %119, %121 : vector<8x16xf32>
    %123 = arith.addf %120, %51 : vector<8x16xf32>
    %124 = arith.mulf %51, %51 : vector<8x16xf32>
    %125 = arith.addf %122, %124 : vector<8x16xf32>
    %126 = arith.addf %123, %52 : vector<8x16xf32>
    %127 = arith.mulf %52, %52 : vector<8x16xf32>
    %128 = arith.addf %125, %127 : vector<8x16xf32>
    %129 = arith.addf %126, %53 : vector<8x16xf32>
    %130 = arith.mulf %53, %53 : vector<8x16xf32>
    %131 = arith.addf %128, %130 : vector<8x16xf32>
    %132 = arith.addf %129, %54 : vector<8x16xf32>
    %133 = arith.mulf %54, %54 : vector<8x16xf32>
    %134 = arith.addf %131, %133 : vector<8x16xf32>
    %135 = arith.addf %132, %55 : vector<8x16xf32>
    %136 = arith.mulf %55, %55 : vector<8x16xf32>
    %137 = arith.addf %134, %136 : vector<8x16xf32>
    %138 = arith.addf %135, %56 : vector<8x16xf32>
    %139 = arith.mulf %56, %56 : vector<8x16xf32>
    %140 = arith.addf %137, %139 : vector<8x16xf32>
    %141 = arith.addf %138, %57 : vector<8x16xf32>
    %142 = arith.mulf %57, %57 : vector<8x16xf32>
    %143 = arith.addf %140, %142 : vector<8x16xf32>
    %144 = arith.addf %141, %58 : vector<8x16xf32>
    %145 = arith.mulf %58, %58 : vector<8x16xf32>
    %146 = arith.addf %143, %145 : vector<8x16xf32>
    %147 = arith.addf %144, %59 : vector<8x16xf32>
    %148 = arith.mulf %59, %59 : vector<8x16xf32>
    %149 = arith.addf %146, %148 : vector<8x16xf32>
    %150 = arith.addf %147, %60 : vector<8x16xf32>
    %151 = arith.mulf %60, %60 : vector<8x16xf32>
    %152 = arith.addf %149, %151 : vector<8x16xf32>
    %153 = arith.addf %150, %61 : vector<8x16xf32>
    %154 = arith.mulf %61, %61 : vector<8x16xf32>
    %155 = arith.addf %152, %154 : vector<8x16xf32>
    %cst_17 = arith.constant 3.125000e-02 : f32
    %156 = vector.broadcast %cst_17 : f32 to vector<8x16xf32>
    %157 = arith.mulf %153, %156 : vector<8x16xf32>
    %cst_18 = arith.constant 3.125000e-02 : f32
    %158 = vector.broadcast %cst_18 : f32 to vector<8x16xf32>
    %159 = arith.mulf %155, %158 : vector<8x16xf32>
    %160 = arith.mulf %157, %157 : vector<8x16xf32>
    %161 = arith.subf %159, %160 : vector<8x16xf32>
    %cst_19 = arith.constant 9.99999974E-6 : f32
    %162 = vector.broadcast %cst_19 : f32 to vector<8x16xf32>
    %163 = arith.addf %161, %162 : vector<8x16xf32>
    %164 = math.rsqrt %163 : vector<8x16xf32>
    %165 = arith.subf %30, %157 : vector<8x16xf32>
    %c0_20 = arith.constant 0 : index
    %166 = memref.load %arg9[%c0_20] : memref<32xf32, #tpu.memory_space<smem>>
    %167 = vector.broadcast %166 : f32 to vector<8x16xf32>
    %168 = arith.mulf %164, %167 : vector<8x16xf32>
    %169 = arith.mulf %165, %168 : vector<8x16xf32>
    %c0_21 = arith.constant 0 : index
    %170 = memref.load %arg10[%c0_21] : memref<32xf32, #tpu.memory_space<smem>>
    %171 = vector.broadcast %170 : f32 to vector<8x16xf32>
    %172 = arith.addf %169, %171 : vector<8x16xf32>
    %173 = arith.subf %31, %157 : vector<8x16xf32>
    %c1 = arith.constant 1 : index
    %174 = memref.load %arg9[%c1] : memref<32xf32, #tpu.memory_space<smem>>
    %175 = vector.broadcast %174 : f32 to vector<8x16xf32>
    %176 = arith.mulf %164, %175 : vector<8x16xf32>
    %177 = arith.mulf %173, %176 : vector<8x16xf32>
    %c1_22 = arith.constant 1 : index
    %178 = memref.load %arg10[%c1_22] : memref<32xf32, #tpu.memory_space<smem>>
    %179 = vector.broadcast %178 : f32 to vector<8x16xf32>
    %180 = arith.addf %177, %179 : vector<8x16xf32>
    %181 = arith.maximumf %172, %180 : vector<8x16xf32>
    %182 = arith.subf %32, %157 : vector<8x16xf32>
    %c2 = arith.constant 2 : index
    %183 = memref.load %arg9[%c2] : memref<32xf32, #tpu.memory_space<smem>>
    %184 = vector.broadcast %183 : f32 to vector<8x16xf32>
    %185 = arith.mulf %164, %184 : vector<8x16xf32>
    %186 = arith.mulf %182, %185 : vector<8x16xf32>
    %c2_23 = arith.constant 2 : index
    %187 = memref.load %arg10[%c2_23] : memref<32xf32, #tpu.memory_space<smem>>
    %188 = vector.broadcast %187 : f32 to vector<8x16xf32>
    %189 = arith.addf %186, %188 : vector<8x16xf32>
    %190 = arith.maximumf %181, %189 : vector<8x16xf32>
    %191 = arith.subf %33, %157 : vector<8x16xf32>
    %c3 = arith.constant 3 : index
    %192 = memref.load %arg9[%c3] : memref<32xf32, #tpu.memory_space<smem>>
    %193 = vector.broadcast %192 : f32 to vector<8x16xf32>
    %194 = arith.mulf %164, %193 : vector<8x16xf32>
    %195 = arith.mulf %191, %194 : vector<8x16xf32>
    %c3_24 = arith.constant 3 : index
    %196 = memref.load %arg10[%c3_24] : memref<32xf32, #tpu.memory_space<smem>>
    %197 = vector.broadcast %196 : f32 to vector<8x16xf32>
    %198 = arith.addf %195, %197 : vector<8x16xf32>
    %199 = arith.maximumf %190, %198 : vector<8x16xf32>
    %200 = arith.subf %34, %157 : vector<8x16xf32>
    %c4 = arith.constant 4 : index
    %201 = memref.load %arg9[%c4] : memref<32xf32, #tpu.memory_space<smem>>
    %202 = vector.broadcast %201 : f32 to vector<8x16xf32>
    %203 = arith.mulf %164, %202 : vector<8x16xf32>
    %204 = arith.mulf %200, %203 : vector<8x16xf32>
    %c4_25 = arith.constant 4 : index
    %205 = memref.load %arg10[%c4_25] : memref<32xf32, #tpu.memory_space<smem>>
    %206 = vector.broadcast %205 : f32 to vector<8x16xf32>
    %207 = arith.addf %204, %206 : vector<8x16xf32>
    %208 = arith.maximumf %199, %207 : vector<8x16xf32>
    %209 = arith.subf %35, %157 : vector<8x16xf32>
    %c5 = arith.constant 5 : index
    %210 = memref.load %arg9[%c5] : memref<32xf32, #tpu.memory_space<smem>>
    %211 = vector.broadcast %210 : f32 to vector<8x16xf32>
    %212 = arith.mulf %164, %211 : vector<8x16xf32>
    %213 = arith.mulf %209, %212 : vector<8x16xf32>
    %c5_26 = arith.constant 5 : index
    %214 = memref.load %arg10[%c5_26] : memref<32xf32, #tpu.memory_space<smem>>
    %215 = vector.broadcast %214 : f32 to vector<8x16xf32>
    %216 = arith.addf %213, %215 : vector<8x16xf32>
    %217 = arith.maximumf %208, %216 : vector<8x16xf32>
    %218 = arith.subf %36, %157 : vector<8x16xf32>
    %c6 = arith.constant 6 : index
    %219 = memref.load %arg9[%c6] : memref<32xf32, #tpu.memory_space<smem>>
    %220 = vector.broadcast %219 : f32 to vector<8x16xf32>
    %221 = arith.mulf %164, %220 : vector<8x16xf32>
    %222 = arith.mulf %218, %221 : vector<8x16xf32>
    %c6_27 = arith.constant 6 : index
    %223 = memref.load %arg10[%c6_27] : memref<32xf32, #tpu.memory_space<smem>>
    %224 = vector.broadcast %223 : f32 to vector<8x16xf32>
    %225 = arith.addf %222, %224 : vector<8x16xf32>
    %226 = arith.maximumf %217, %225 : vector<8x16xf32>
    %227 = arith.subf %37, %157 : vector<8x16xf32>
    %c7 = arith.constant 7 : index
    %228 = memref.load %arg9[%c7] : memref<32xf32, #tpu.memory_space<smem>>
    %229 = vector.broadcast %228 : f32 to vector<8x16xf32>
    %230 = arith.mulf %164, %229 : vector<8x16xf32>
    %231 = arith.mulf %227, %230 : vector<8x16xf32>
    %c7_28 = arith.constant 7 : index
    %232 = memref.load %arg10[%c7_28] : memref<32xf32, #tpu.memory_space<smem>>
    %233 = vector.broadcast %232 : f32 to vector<8x16xf32>
    %234 = arith.addf %231, %233 : vector<8x16xf32>
    %235 = arith.maximumf %226, %234 : vector<8x16xf32>
    %236 = arith.subf %38, %157 : vector<8x16xf32>
    %c8 = arith.constant 8 : index
    %237 = memref.load %arg9[%c8] : memref<32xf32, #tpu.memory_space<smem>>
    %238 = vector.broadcast %237 : f32 to vector<8x16xf32>
    %239 = arith.mulf %164, %238 : vector<8x16xf32>
    %240 = arith.mulf %236, %239 : vector<8x16xf32>
    %c8_29 = arith.constant 8 : index
    %241 = memref.load %arg10[%c8_29] : memref<32xf32, #tpu.memory_space<smem>>
    %242 = vector.broadcast %241 : f32 to vector<8x16xf32>
    %243 = arith.addf %240, %242 : vector<8x16xf32>
    %244 = arith.maximumf %235, %243 : vector<8x16xf32>
    %245 = arith.subf %39, %157 : vector<8x16xf32>
    %c9 = arith.constant 9 : index
    %246 = memref.load %arg9[%c9] : memref<32xf32, #tpu.memory_space<smem>>
    %247 = vector.broadcast %246 : f32 to vector<8x16xf32>
    %248 = arith.mulf %164, %247 : vector<8x16xf32>
    %249 = arith.mulf %245, %248 : vector<8x16xf32>
    %c9_30 = arith.constant 9 : index
    %250 = memref.load %arg10[%c9_30] : memref<32xf32, #tpu.memory_space<smem>>
    %251 = vector.broadcast %250 : f32 to vector<8x16xf32>
    %252 = arith.addf %249, %251 : vector<8x16xf32>
    %253 = arith.maximumf %244, %252 : vector<8x16xf32>
    %254 = arith.subf %40, %157 : vector<8x16xf32>
    %c10 = arith.constant 10 : index
    %255 = memref.load %arg9[%c10] : memref<32xf32, #tpu.memory_space<smem>>
    %256 = vector.broadcast %255 : f32 to vector<8x16xf32>
    %257 = arith.mulf %164, %256 : vector<8x16xf32>
    %258 = arith.mulf %254, %257 : vector<8x16xf32>
    %c10_31 = arith.constant 10 : index
    %259 = memref.load %arg10[%c10_31] : memref<32xf32, #tpu.memory_space<smem>>
    %260 = vector.broadcast %259 : f32 to vector<8x16xf32>
    %261 = arith.addf %258, %260 : vector<8x16xf32>
    %262 = arith.maximumf %253, %261 : vector<8x16xf32>
    %263 = arith.subf %41, %157 : vector<8x16xf32>
    %c11 = arith.constant 11 : index
    %264 = memref.load %arg9[%c11] : memref<32xf32, #tpu.memory_space<smem>>
    %265 = vector.broadcast %264 : f32 to vector<8x16xf32>
    %266 = arith.mulf %164, %265 : vector<8x16xf32>
    %267 = arith.mulf %263, %266 : vector<8x16xf32>
    %c11_32 = arith.constant 11 : index
    %268 = memref.load %arg10[%c11_32] : memref<32xf32, #tpu.memory_space<smem>>
    %269 = vector.broadcast %268 : f32 to vector<8x16xf32>
    %270 = arith.addf %267, %269 : vector<8x16xf32>
    %271 = arith.maximumf %262, %270 : vector<8x16xf32>
    %272 = arith.subf %42, %157 : vector<8x16xf32>
    %c12 = arith.constant 12 : index
    %273 = memref.load %arg9[%c12] : memref<32xf32, #tpu.memory_space<smem>>
    %274 = vector.broadcast %273 : f32 to vector<8x16xf32>
    %275 = arith.mulf %164, %274 : vector<8x16xf32>
    %276 = arith.mulf %272, %275 : vector<8x16xf32>
    %c12_33 = arith.constant 12 : index
    %277 = memref.load %arg10[%c12_33] : memref<32xf32, #tpu.memory_space<smem>>
    %278 = vector.broadcast %277 : f32 to vector<8x16xf32>
    %279 = arith.addf %276, %278 : vector<8x16xf32>
    %280 = arith.maximumf %271, %279 : vector<8x16xf32>
    %281 = arith.subf %43, %157 : vector<8x16xf32>
    %c13 = arith.constant 13 : index
    %282 = memref.load %arg9[%c13] : memref<32xf32, #tpu.memory_space<smem>>
    %283 = vector.broadcast %282 : f32 to vector<8x16xf32>
    %284 = arith.mulf %164, %283 : vector<8x16xf32>
    %285 = arith.mulf %281, %284 : vector<8x16xf32>
    %c13_34 = arith.constant 13 : index
    %286 = memref.load %arg10[%c13_34] : memref<32xf32, #tpu.memory_space<smem>>
    %287 = vector.broadcast %286 : f32 to vector<8x16xf32>
    %288 = arith.addf %285, %287 : vector<8x16xf32>
    %289 = arith.maximumf %280, %288 : vector<8x16xf32>
    %290 = arith.subf %44, %157 : vector<8x16xf32>
    %c14 = arith.constant 14 : index
    %291 = memref.load %arg9[%c14] : memref<32xf32, #tpu.memory_space<smem>>
    %292 = vector.broadcast %291 : f32 to vector<8x16xf32>
    %293 = arith.mulf %164, %292 : vector<8x16xf32>
    %294 = arith.mulf %290, %293 : vector<8x16xf32>
    %c14_35 = arith.constant 14 : index
    %295 = memref.load %arg10[%c14_35] : memref<32xf32, #tpu.memory_space<smem>>
    %296 = vector.broadcast %295 : f32 to vector<8x16xf32>
    %297 = arith.addf %294, %296 : vector<8x16xf32>
    %298 = arith.maximumf %289, %297 : vector<8x16xf32>
    %299 = arith.subf %45, %157 : vector<8x16xf32>
    %c15 = arith.constant 15 : index
    %300 = memref.load %arg9[%c15] : memref<32xf32, #tpu.memory_space<smem>>
    %301 = vector.broadcast %300 : f32 to vector<8x16xf32>
    %302 = arith.mulf %164, %301 : vector<8x16xf32>
    %303 = arith.mulf %299, %302 : vector<8x16xf32>
    %c15_36 = arith.constant 15 : index
    %304 = memref.load %arg10[%c15_36] : memref<32xf32, #tpu.memory_space<smem>>
    %305 = vector.broadcast %304 : f32 to vector<8x16xf32>
    %306 = arith.addf %303, %305 : vector<8x16xf32>
    %307 = arith.maximumf %298, %306 : vector<8x16xf32>
    %308 = arith.subf %46, %157 : vector<8x16xf32>
    %c16 = arith.constant 16 : index
    %309 = memref.load %arg9[%c16] : memref<32xf32, #tpu.memory_space<smem>>
    %310 = vector.broadcast %309 : f32 to vector<8x16xf32>
    %311 = arith.mulf %164, %310 : vector<8x16xf32>
    %312 = arith.mulf %308, %311 : vector<8x16xf32>
    %c16_37 = arith.constant 16 : index
    %313 = memref.load %arg10[%c16_37] : memref<32xf32, #tpu.memory_space<smem>>
    %314 = vector.broadcast %313 : f32 to vector<8x16xf32>
    %315 = arith.addf %312, %314 : vector<8x16xf32>
    %316 = arith.maximumf %307, %315 : vector<8x16xf32>
    %317 = arith.subf %47, %157 : vector<8x16xf32>
    %c17 = arith.constant 17 : index
    %318 = memref.load %arg9[%c17] : memref<32xf32, #tpu.memory_space<smem>>
    %319 = vector.broadcast %318 : f32 to vector<8x16xf32>
    %320 = arith.mulf %164, %319 : vector<8x16xf32>
    %321 = arith.mulf %317, %320 : vector<8x16xf32>
    %c17_38 = arith.constant 17 : index
    %322 = memref.load %arg10[%c17_38] : memref<32xf32, #tpu.memory_space<smem>>
    %323 = vector.broadcast %322 : f32 to vector<8x16xf32>
    %324 = arith.addf %321, %323 : vector<8x16xf32>
    %325 = arith.maximumf %316, %324 : vector<8x16xf32>
    %326 = arith.subf %48, %157 : vector<8x16xf32>
    %c18 = arith.constant 18 : index
    %327 = memref.load %arg9[%c18] : memref<32xf32, #tpu.memory_space<smem>>
    %328 = vector.broadcast %327 : f32 to vector<8x16xf32>
    %329 = arith.mulf %164, %328 : vector<8x16xf32>
    %330 = arith.mulf %326, %329 : vector<8x16xf32>
    %c18_39 = arith.constant 18 : index
    %331 = memref.load %arg10[%c18_39] : memref<32xf32, #tpu.memory_space<smem>>
    %332 = vector.broadcast %331 : f32 to vector<8x16xf32>
    %333 = arith.addf %330, %332 : vector<8x16xf32>
    %334 = arith.maximumf %325, %333 : vector<8x16xf32>
    %335 = arith.subf %49, %157 : vector<8x16xf32>
    %c19 = arith.constant 19 : index
    %336 = memref.load %arg9[%c19] : memref<32xf32, #tpu.memory_space<smem>>
    %337 = vector.broadcast %336 : f32 to vector<8x16xf32>
    %338 = arith.mulf %164, %337 : vector<8x16xf32>
    %339 = arith.mulf %335, %338 : vector<8x16xf32>
    %c19_40 = arith.constant 19 : index
    %340 = memref.load %arg10[%c19_40] : memref<32xf32, #tpu.memory_space<smem>>
    %341 = vector.broadcast %340 : f32 to vector<8x16xf32>
    %342 = arith.addf %339, %341 : vector<8x16xf32>
    %343 = arith.maximumf %334, %342 : vector<8x16xf32>
    %344 = arith.subf %50, %157 : vector<8x16xf32>
    %c20 = arith.constant 20 : index
    %345 = memref.load %arg9[%c20] : memref<32xf32, #tpu.memory_space<smem>>
    %346 = vector.broadcast %345 : f32 to vector<8x16xf32>
    %347 = arith.mulf %164, %346 : vector<8x16xf32>
    %348 = arith.mulf %344, %347 : vector<8x16xf32>
    %c20_41 = arith.constant 20 : index
    %349 = memref.load %arg10[%c20_41] : memref<32xf32, #tpu.memory_space<smem>>
    %350 = vector.broadcast %349 : f32 to vector<8x16xf32>
    %351 = arith.addf %348, %350 : vector<8x16xf32>
    %352 = arith.maximumf %343, %351 : vector<8x16xf32>
    %353 = arith.subf %51, %157 : vector<8x16xf32>
    %c21 = arith.constant 21 : index
    %354 = memref.load %arg9[%c21] : memref<32xf32, #tpu.memory_space<smem>>
    %355 = vector.broadcast %354 : f32 to vector<8x16xf32>
    %356 = arith.mulf %164, %355 : vector<8x16xf32>
    %357 = arith.mulf %353, %356 : vector<8x16xf32>
    %c21_42 = arith.constant 21 : index
    %358 = memref.load %arg10[%c21_42] : memref<32xf32, #tpu.memory_space<smem>>
    %359 = vector.broadcast %358 : f32 to vector<8x16xf32>
    %360 = arith.addf %357, %359 : vector<8x16xf32>
    %361 = arith.maximumf %352, %360 : vector<8x16xf32>
    %362 = arith.subf %52, %157 : vector<8x16xf32>
    %c22 = arith.constant 22 : index
    %363 = memref.load %arg9[%c22] : memref<32xf32, #tpu.memory_space<smem>>
    %364 = vector.broadcast %363 : f32 to vector<8x16xf32>
    %365 = arith.mulf %164, %364 : vector<8x16xf32>
    %366 = arith.mulf %362, %365 : vector<8x16xf32>
    %c22_43 = arith.constant 22 : index
    %367 = memref.load %arg10[%c22_43] : memref<32xf32, #tpu.memory_space<smem>>
    %368 = vector.broadcast %367 : f32 to vector<8x16xf32>
    %369 = arith.addf %366, %368 : vector<8x16xf32>
    %370 = arith.maximumf %361, %369 : vector<8x16xf32>
    %371 = arith.subf %53, %157 : vector<8x16xf32>
    %c23 = arith.constant 23 : index
    %372 = memref.load %arg9[%c23] : memref<32xf32, #tpu.memory_space<smem>>
    %373 = vector.broadcast %372 : f32 to vector<8x16xf32>
    %374 = arith.mulf %164, %373 : vector<8x16xf32>
    %375 = arith.mulf %371, %374 : vector<8x16xf32>
    %c23_44 = arith.constant 23 : index
    %376 = memref.load %arg10[%c23_44] : memref<32xf32, #tpu.memory_space<smem>>
    %377 = vector.broadcast %376 : f32 to vector<8x16xf32>
    %378 = arith.addf %375, %377 : vector<8x16xf32>
    %379 = arith.maximumf %370, %378 : vector<8x16xf32>
    %380 = arith.subf %54, %157 : vector<8x16xf32>
    %c24 = arith.constant 24 : index
    %381 = memref.load %arg9[%c24] : memref<32xf32, #tpu.memory_space<smem>>
    %382 = vector.broadcast %381 : f32 to vector<8x16xf32>
    %383 = arith.mulf %164, %382 : vector<8x16xf32>
    %384 = arith.mulf %380, %383 : vector<8x16xf32>
    %c24_45 = arith.constant 24 : index
    %385 = memref.load %arg10[%c24_45] : memref<32xf32, #tpu.memory_space<smem>>
    %386 = vector.broadcast %385 : f32 to vector<8x16xf32>
    %387 = arith.addf %384, %386 : vector<8x16xf32>
    %388 = arith.maximumf %379, %387 : vector<8x16xf32>
    %389 = arith.subf %55, %157 : vector<8x16xf32>
    %c25 = arith.constant 25 : index
    %390 = memref.load %arg9[%c25] : memref<32xf32, #tpu.memory_space<smem>>
    %391 = vector.broadcast %390 : f32 to vector<8x16xf32>
    %392 = arith.mulf %164, %391 : vector<8x16xf32>
    %393 = arith.mulf %389, %392 : vector<8x16xf32>
    %c25_46 = arith.constant 25 : index
    %394 = memref.load %arg10[%c25_46] : memref<32xf32, #tpu.memory_space<smem>>
    %395 = vector.broadcast %394 : f32 to vector<8x16xf32>
    %396 = arith.addf %393, %395 : vector<8x16xf32>
    %397 = arith.maximumf %388, %396 : vector<8x16xf32>
    %398 = arith.subf %56, %157 : vector<8x16xf32>
    %c26 = arith.constant 26 : index
    %399 = memref.load %arg9[%c26] : memref<32xf32, #tpu.memory_space<smem>>
    %400 = vector.broadcast %399 : f32 to vector<8x16xf32>
    %401 = arith.mulf %164, %400 : vector<8x16xf32>
    %402 = arith.mulf %398, %401 : vector<8x16xf32>
    %c26_47 = arith.constant 26 : index
    %403 = memref.load %arg10[%c26_47] : memref<32xf32, #tpu.memory_space<smem>>
    %404 = vector.broadcast %403 : f32 to vector<8x16xf32>
    %405 = arith.addf %402, %404 : vector<8x16xf32>
    %406 = arith.maximumf %397, %405 : vector<8x16xf32>
    %407 = arith.subf %57, %157 : vector<8x16xf32>
    %c27 = arith.constant 27 : index
    %408 = memref.load %arg9[%c27] : memref<32xf32, #tpu.memory_space<smem>>
    %409 = vector.broadcast %408 : f32 to vector<8x16xf32>
    %410 = arith.mulf %164, %409 : vector<8x16xf32>
    %411 = arith.mulf %407, %410 : vector<8x16xf32>
    %c27_48 = arith.constant 27 : index
    %412 = memref.load %arg10[%c27_48] : memref<32xf32, #tpu.memory_space<smem>>
    %413 = vector.broadcast %412 : f32 to vector<8x16xf32>
    %414 = arith.addf %411, %413 : vector<8x16xf32>
    %415 = arith.maximumf %406, %414 : vector<8x16xf32>
    %416 = arith.subf %58, %157 : vector<8x16xf32>
    %c28 = arith.constant 28 : index
    %417 = memref.load %arg9[%c28] : memref<32xf32, #tpu.memory_space<smem>>
    %418 = vector.broadcast %417 : f32 to vector<8x16xf32>
    %419 = arith.mulf %164, %418 : vector<8x16xf32>
    %420 = arith.mulf %416, %419 : vector<8x16xf32>
    %c28_49 = arith.constant 28 : index
    %421 = memref.load %arg10[%c28_49] : memref<32xf32, #tpu.memory_space<smem>>
    %422 = vector.broadcast %421 : f32 to vector<8x16xf32>
    %423 = arith.addf %420, %422 : vector<8x16xf32>
    %424 = arith.maximumf %415, %423 : vector<8x16xf32>
    %425 = arith.subf %59, %157 : vector<8x16xf32>
    %c29 = arith.constant 29 : index
    %426 = memref.load %arg9[%c29] : memref<32xf32, #tpu.memory_space<smem>>
    %427 = vector.broadcast %426 : f32 to vector<8x16xf32>
    %428 = arith.mulf %164, %427 : vector<8x16xf32>
    %429 = arith.mulf %425, %428 : vector<8x16xf32>
    %c29_50 = arith.constant 29 : index
    %430 = memref.load %arg10[%c29_50] : memref<32xf32, #tpu.memory_space<smem>>
    %431 = vector.broadcast %430 : f32 to vector<8x16xf32>
    %432 = arith.addf %429, %431 : vector<8x16xf32>
    %433 = arith.maximumf %424, %432 : vector<8x16xf32>
    %434 = arith.subf %60, %157 : vector<8x16xf32>
    %c30 = arith.constant 30 : index
    %435 = memref.load %arg9[%c30] : memref<32xf32, #tpu.memory_space<smem>>
    %436 = vector.broadcast %435 : f32 to vector<8x16xf32>
    %437 = arith.mulf %164, %436 : vector<8x16xf32>
    %438 = arith.mulf %434, %437 : vector<8x16xf32>
    %c30_51 = arith.constant 30 : index
    %439 = memref.load %arg10[%c30_51] : memref<32xf32, #tpu.memory_space<smem>>
    %440 = vector.broadcast %439 : f32 to vector<8x16xf32>
    %441 = arith.addf %438, %440 : vector<8x16xf32>
    %442 = arith.maximumf %433, %441 : vector<8x16xf32>
    %443 = arith.subf %61, %157 : vector<8x16xf32>
    %c31 = arith.constant 31 : index
    %444 = memref.load %arg9[%c31] : memref<32xf32, #tpu.memory_space<smem>>
    %445 = vector.broadcast %444 : f32 to vector<8x16xf32>
    %446 = arith.mulf %164, %445 : vector<8x16xf32>
    %447 = arith.mulf %443, %446 : vector<8x16xf32>
    %c31_52 = arith.constant 31 : index
    %448 = memref.load %arg10[%c31_52] : memref<32xf32, #tpu.memory_space<smem>>
    %449 = vector.broadcast %448 : f32 to vector<8x16xf32>
    %450 = arith.addf %447, %449 : vector<8x16xf32>
    %451 = arith.maximumf %442, %450 : vector<8x16xf32>
    %cst_53 = arith.constant 0.000000e+00 : f32
    %452 = vector.broadcast %cst_53 : f32 to vector<8x16xf32>
    %cst_54 = arith.constant 0.000000e+00 : f32
    %453 = vector.broadcast %cst_54 : f32 to vector<8x16xf32>
    %454 = arith.subf %30, %157 : vector<8x16xf32>
    %c0_55 = arith.constant 0 : index
    %455 = memref.load %arg9[%c0_55] : memref<32xf32, #tpu.memory_space<smem>>
    %456 = vector.broadcast %455 : f32 to vector<8x16xf32>
    %457 = arith.mulf %164, %456 : vector<8x16xf32>
    %458 = arith.mulf %454, %457 : vector<8x16xf32>
    %c0_56 = arith.constant 0 : index
    %459 = memref.load %arg10[%c0_56] : memref<32xf32, #tpu.memory_space<smem>>
    %460 = vector.broadcast %459 : f32 to vector<8x16xf32>
    %461 = arith.addf %458, %460 : vector<8x16xf32>
    %462 = arith.subf %461, %451 : vector<8x16xf32>
    %463 = math.exp %462 : vector<8x16xf32>
    %464 = arith.addf %452, %463 : vector<8x16xf32>
    %c0_i32_57 = arith.constant 0 : i32
    %465 = vector.broadcast %c0_i32_57 : i32 to vector<8x16xi32>
    %466 = arith.cmpi eq, %22, %465 : vector<8x16xi32>
    %cst_58 = arith.constant 0.000000e+00 : f32
    %467 = vector.broadcast %cst_58 : f32 to vector<8x16xf32>
    %468 = arith.select %466, %461, %467 : vector<8x16xi1>, vector<8x16xf32>
    %469 = arith.addf %453, %468 : vector<8x16xf32>
    %470 = arith.subf %31, %157 : vector<8x16xf32>
    %c1_59 = arith.constant 1 : index
    %471 = memref.load %arg9[%c1_59] : memref<32xf32, #tpu.memory_space<smem>>
    %472 = vector.broadcast %471 : f32 to vector<8x16xf32>
    %473 = arith.mulf %164, %472 : vector<8x16xf32>
    %474 = arith.mulf %470, %473 : vector<8x16xf32>
    %c1_60 = arith.constant 1 : index
    %475 = memref.load %arg10[%c1_60] : memref<32xf32, #tpu.memory_space<smem>>
    %476 = vector.broadcast %475 : f32 to vector<8x16xf32>
    %477 = arith.addf %474, %476 : vector<8x16xf32>
    %478 = arith.subf %477, %451 : vector<8x16xf32>
    %479 = math.exp %478 : vector<8x16xf32>
    %480 = arith.addf %464, %479 : vector<8x16xf32>
    %c1_i32_61 = arith.constant 1 : i32
    %481 = vector.broadcast %c1_i32_61 : i32 to vector<8x16xi32>
    %482 = arith.cmpi eq, %22, %481 : vector<8x16xi32>
    %cst_62 = arith.constant 0.000000e+00 : f32
    %483 = vector.broadcast %cst_62 : f32 to vector<8x16xf32>
    %484 = arith.select %482, %477, %483 : vector<8x16xi1>, vector<8x16xf32>
    %485 = arith.addf %469, %484 : vector<8x16xf32>
    %486 = arith.subf %32, %157 : vector<8x16xf32>
    %c2_63 = arith.constant 2 : index
    %487 = memref.load %arg9[%c2_63] : memref<32xf32, #tpu.memory_space<smem>>
    %488 = vector.broadcast %487 : f32 to vector<8x16xf32>
    %489 = arith.mulf %164, %488 : vector<8x16xf32>
    %490 = arith.mulf %486, %489 : vector<8x16xf32>
    %c2_64 = arith.constant 2 : index
    %491 = memref.load %arg10[%c2_64] : memref<32xf32, #tpu.memory_space<smem>>
    %492 = vector.broadcast %491 : f32 to vector<8x16xf32>
    %493 = arith.addf %490, %492 : vector<8x16xf32>
    %494 = arith.subf %493, %451 : vector<8x16xf32>
    %495 = math.exp %494 : vector<8x16xf32>
    %496 = arith.addf %480, %495 : vector<8x16xf32>
    %c2_i32 = arith.constant 2 : i32
    %497 = vector.broadcast %c2_i32 : i32 to vector<8x16xi32>
    %498 = arith.cmpi eq, %22, %497 : vector<8x16xi32>
    %cst_65 = arith.constant 0.000000e+00 : f32
    %499 = vector.broadcast %cst_65 : f32 to vector<8x16xf32>
    %500 = arith.select %498, %493, %499 : vector<8x16xi1>, vector<8x16xf32>
    %501 = arith.addf %485, %500 : vector<8x16xf32>
    %502 = arith.subf %33, %157 : vector<8x16xf32>
    %c3_66 = arith.constant 3 : index
    %503 = memref.load %arg9[%c3_66] : memref<32xf32, #tpu.memory_space<smem>>
    %504 = vector.broadcast %503 : f32 to vector<8x16xf32>
    %505 = arith.mulf %164, %504 : vector<8x16xf32>
    %506 = arith.mulf %502, %505 : vector<8x16xf32>
    %c3_67 = arith.constant 3 : index
    %507 = memref.load %arg10[%c3_67] : memref<32xf32, #tpu.memory_space<smem>>
    %508 = vector.broadcast %507 : f32 to vector<8x16xf32>
    %509 = arith.addf %506, %508 : vector<8x16xf32>
    %510 = arith.subf %509, %451 : vector<8x16xf32>
    %511 = math.exp %510 : vector<8x16xf32>
    %512 = arith.addf %496, %511 : vector<8x16xf32>
    %c3_i32 = arith.constant 3 : i32
    %513 = vector.broadcast %c3_i32 : i32 to vector<8x16xi32>
    %514 = arith.cmpi eq, %22, %513 : vector<8x16xi32>
    %cst_68 = arith.constant 0.000000e+00 : f32
    %515 = vector.broadcast %cst_68 : f32 to vector<8x16xf32>
    %516 = arith.select %514, %509, %515 : vector<8x16xi1>, vector<8x16xf32>
    %517 = arith.addf %501, %516 : vector<8x16xf32>
    %518 = arith.subf %34, %157 : vector<8x16xf32>
    %c4_69 = arith.constant 4 : index
    %519 = memref.load %arg9[%c4_69] : memref<32xf32, #tpu.memory_space<smem>>
    %520 = vector.broadcast %519 : f32 to vector<8x16xf32>
    %521 = arith.mulf %164, %520 : vector<8x16xf32>
    %522 = arith.mulf %518, %521 : vector<8x16xf32>
    %c4_70 = arith.constant 4 : index
    %523 = memref.load %arg10[%c4_70] : memref<32xf32, #tpu.memory_space<smem>>
    %524 = vector.broadcast %523 : f32 to vector<8x16xf32>
    %525 = arith.addf %522, %524 : vector<8x16xf32>
    %526 = arith.subf %525, %451 : vector<8x16xf32>
    %527 = math.exp %526 : vector<8x16xf32>
    %528 = arith.addf %512, %527 : vector<8x16xf32>
    %c4_i32 = arith.constant 4 : i32
    %529 = vector.broadcast %c4_i32 : i32 to vector<8x16xi32>
    %530 = arith.cmpi eq, %22, %529 : vector<8x16xi32>
    %cst_71 = arith.constant 0.000000e+00 : f32
    %531 = vector.broadcast %cst_71 : f32 to vector<8x16xf32>
    %532 = arith.select %530, %525, %531 : vector<8x16xi1>, vector<8x16xf32>
    %533 = arith.addf %517, %532 : vector<8x16xf32>
    %534 = arith.subf %35, %157 : vector<8x16xf32>
    %c5_72 = arith.constant 5 : index
    %535 = memref.load %arg9[%c5_72] : memref<32xf32, #tpu.memory_space<smem>>
    %536 = vector.broadcast %535 : f32 to vector<8x16xf32>
    %537 = arith.mulf %164, %536 : vector<8x16xf32>
    %538 = arith.mulf %534, %537 : vector<8x16xf32>
    %c5_73 = arith.constant 5 : index
    %539 = memref.load %arg10[%c5_73] : memref<32xf32, #tpu.memory_space<smem>>
    %540 = vector.broadcast %539 : f32 to vector<8x16xf32>
    %541 = arith.addf %538, %540 : vector<8x16xf32>
    %542 = arith.subf %541, %451 : vector<8x16xf32>
    %543 = math.exp %542 : vector<8x16xf32>
    %544 = arith.addf %528, %543 : vector<8x16xf32>
    %c5_i32 = arith.constant 5 : i32
    %545 = vector.broadcast %c5_i32 : i32 to vector<8x16xi32>
    %546 = arith.cmpi eq, %22, %545 : vector<8x16xi32>
    %cst_74 = arith.constant 0.000000e+00 : f32
    %547 = vector.broadcast %cst_74 : f32 to vector<8x16xf32>
    %548 = arith.select %546, %541, %547 : vector<8x16xi1>, vector<8x16xf32>
    %549 = arith.addf %533, %548 : vector<8x16xf32>
    %550 = arith.subf %36, %157 : vector<8x16xf32>
    %c6_75 = arith.constant 6 : index
    %551 = memref.load %arg9[%c6_75] : memref<32xf32, #tpu.memory_space<smem>>
    %552 = vector.broadcast %551 : f32 to vector<8x16xf32>
    %553 = arith.mulf %164, %552 : vector<8x16xf32>
    %554 = arith.mulf %550, %553 : vector<8x16xf32>
    %c6_76 = arith.constant 6 : index
    %555 = memref.load %arg10[%c6_76] : memref<32xf32, #tpu.memory_space<smem>>
    %556 = vector.broadcast %555 : f32 to vector<8x16xf32>
    %557 = arith.addf %554, %556 : vector<8x16xf32>
    %558 = arith.subf %557, %451 : vector<8x16xf32>
    %559 = math.exp %558 : vector<8x16xf32>
    %560 = arith.addf %544, %559 : vector<8x16xf32>
    %c6_i32 = arith.constant 6 : i32
    %561 = vector.broadcast %c6_i32 : i32 to vector<8x16xi32>
    %562 = arith.cmpi eq, %22, %561 : vector<8x16xi32>
    %cst_77 = arith.constant 0.000000e+00 : f32
    %563 = vector.broadcast %cst_77 : f32 to vector<8x16xf32>
    %564 = arith.select %562, %557, %563 : vector<8x16xi1>, vector<8x16xf32>
    %565 = arith.addf %549, %564 : vector<8x16xf32>
    %566 = arith.subf %37, %157 : vector<8x16xf32>
    %c7_78 = arith.constant 7 : index
    %567 = memref.load %arg9[%c7_78] : memref<32xf32, #tpu.memory_space<smem>>
    %568 = vector.broadcast %567 : f32 to vector<8x16xf32>
    %569 = arith.mulf %164, %568 : vector<8x16xf32>
    %570 = arith.mulf %566, %569 : vector<8x16xf32>
    %c7_79 = arith.constant 7 : index
    %571 = memref.load %arg10[%c7_79] : memref<32xf32, #tpu.memory_space<smem>>
    %572 = vector.broadcast %571 : f32 to vector<8x16xf32>
    %573 = arith.addf %570, %572 : vector<8x16xf32>
    %574 = arith.subf %573, %451 : vector<8x16xf32>
    %575 = math.exp %574 : vector<8x16xf32>
    %576 = arith.addf %560, %575 : vector<8x16xf32>
    %c7_i32 = arith.constant 7 : i32
    %577 = vector.broadcast %c7_i32 : i32 to vector<8x16xi32>
    %578 = arith.cmpi eq, %22, %577 : vector<8x16xi32>
    %cst_80 = arith.constant 0.000000e+00 : f32
    %579 = vector.broadcast %cst_80 : f32 to vector<8x16xf32>
    %580 = arith.select %578, %573, %579 : vector<8x16xi1>, vector<8x16xf32>
    %581 = arith.addf %565, %580 : vector<8x16xf32>
    %582 = arith.subf %38, %157 : vector<8x16xf32>
    %c8_81 = arith.constant 8 : index
    %583 = memref.load %arg9[%c8_81] : memref<32xf32, #tpu.memory_space<smem>>
    %584 = vector.broadcast %583 : f32 to vector<8x16xf32>
    %585 = arith.mulf %164, %584 : vector<8x16xf32>
    %586 = arith.mulf %582, %585 : vector<8x16xf32>
    %c8_82 = arith.constant 8 : index
    %587 = memref.load %arg10[%c8_82] : memref<32xf32, #tpu.memory_space<smem>>
    %588 = vector.broadcast %587 : f32 to vector<8x16xf32>
    %589 = arith.addf %586, %588 : vector<8x16xf32>
    %590 = arith.subf %589, %451 : vector<8x16xf32>
    %591 = math.exp %590 : vector<8x16xf32>
    %592 = arith.addf %576, %591 : vector<8x16xf32>
    %c8_i32 = arith.constant 8 : i32
    %593 = vector.broadcast %c8_i32 : i32 to vector<8x16xi32>
    %594 = arith.cmpi eq, %22, %593 : vector<8x16xi32>
    %cst_83 = arith.constant 0.000000e+00 : f32
    %595 = vector.broadcast %cst_83 : f32 to vector<8x16xf32>
    %596 = arith.select %594, %589, %595 : vector<8x16xi1>, vector<8x16xf32>
    %597 = arith.addf %581, %596 : vector<8x16xf32>
    %598 = arith.subf %39, %157 : vector<8x16xf32>
    %c9_84 = arith.constant 9 : index
    %599 = memref.load %arg9[%c9_84] : memref<32xf32, #tpu.memory_space<smem>>
    %600 = vector.broadcast %599 : f32 to vector<8x16xf32>
    %601 = arith.mulf %164, %600 : vector<8x16xf32>
    %602 = arith.mulf %598, %601 : vector<8x16xf32>
    %c9_85 = arith.constant 9 : index
    %603 = memref.load %arg10[%c9_85] : memref<32xf32, #tpu.memory_space<smem>>
    %604 = vector.broadcast %603 : f32 to vector<8x16xf32>
    %605 = arith.addf %602, %604 : vector<8x16xf32>
    %606 = arith.subf %605, %451 : vector<8x16xf32>
    %607 = math.exp %606 : vector<8x16xf32>
    %608 = arith.addf %592, %607 : vector<8x16xf32>
    %c9_i32 = arith.constant 9 : i32
    %609 = vector.broadcast %c9_i32 : i32 to vector<8x16xi32>
    %610 = arith.cmpi eq, %22, %609 : vector<8x16xi32>
    %cst_86 = arith.constant 0.000000e+00 : f32
    %611 = vector.broadcast %cst_86 : f32 to vector<8x16xf32>
    %612 = arith.select %610, %605, %611 : vector<8x16xi1>, vector<8x16xf32>
    %613 = arith.addf %597, %612 : vector<8x16xf32>
    %614 = arith.subf %40, %157 : vector<8x16xf32>
    %c10_87 = arith.constant 10 : index
    %615 = memref.load %arg9[%c10_87] : memref<32xf32, #tpu.memory_space<smem>>
    %616 = vector.broadcast %615 : f32 to vector<8x16xf32>
    %617 = arith.mulf %164, %616 : vector<8x16xf32>
    %618 = arith.mulf %614, %617 : vector<8x16xf32>
    %c10_88 = arith.constant 10 : index
    %619 = memref.load %arg10[%c10_88] : memref<32xf32, #tpu.memory_space<smem>>
    %620 = vector.broadcast %619 : f32 to vector<8x16xf32>
    %621 = arith.addf %618, %620 : vector<8x16xf32>
    %622 = arith.subf %621, %451 : vector<8x16xf32>
    %623 = math.exp %622 : vector<8x16xf32>
    %624 = arith.addf %608, %623 : vector<8x16xf32>
    %c10_i32 = arith.constant 10 : i32
    %625 = vector.broadcast %c10_i32 : i32 to vector<8x16xi32>
    %626 = arith.cmpi eq, %22, %625 : vector<8x16xi32>
    %cst_89 = arith.constant 0.000000e+00 : f32
    %627 = vector.broadcast %cst_89 : f32 to vector<8x16xf32>
    %628 = arith.select %626, %621, %627 : vector<8x16xi1>, vector<8x16xf32>
    %629 = arith.addf %613, %628 : vector<8x16xf32>
    %630 = arith.subf %41, %157 : vector<8x16xf32>
    %c11_90 = arith.constant 11 : index
    %631 = memref.load %arg9[%c11_90] : memref<32xf32, #tpu.memory_space<smem>>
    %632 = vector.broadcast %631 : f32 to vector<8x16xf32>
    %633 = arith.mulf %164, %632 : vector<8x16xf32>
    %634 = arith.mulf %630, %633 : vector<8x16xf32>
    %c11_91 = arith.constant 11 : index
    %635 = memref.load %arg10[%c11_91] : memref<32xf32, #tpu.memory_space<smem>>
    %636 = vector.broadcast %635 : f32 to vector<8x16xf32>
    %637 = arith.addf %634, %636 : vector<8x16xf32>
    %638 = arith.subf %637, %451 : vector<8x16xf32>
    %639 = math.exp %638 : vector<8x16xf32>
    %640 = arith.addf %624, %639 : vector<8x16xf32>
    %c11_i32 = arith.constant 11 : i32
    %641 = vector.broadcast %c11_i32 : i32 to vector<8x16xi32>
    %642 = arith.cmpi eq, %22, %641 : vector<8x16xi32>
    %cst_92 = arith.constant 0.000000e+00 : f32
    %643 = vector.broadcast %cst_92 : f32 to vector<8x16xf32>
    %644 = arith.select %642, %637, %643 : vector<8x16xi1>, vector<8x16xf32>
    %645 = arith.addf %629, %644 : vector<8x16xf32>
    %646 = arith.subf %42, %157 : vector<8x16xf32>
    %c12_93 = arith.constant 12 : index
    %647 = memref.load %arg9[%c12_93] : memref<32xf32, #tpu.memory_space<smem>>
    %648 = vector.broadcast %647 : f32 to vector<8x16xf32>
    %649 = arith.mulf %164, %648 : vector<8x16xf32>
    %650 = arith.mulf %646, %649 : vector<8x16xf32>
    %c12_94 = arith.constant 12 : index
    %651 = memref.load %arg10[%c12_94] : memref<32xf32, #tpu.memory_space<smem>>
    %652 = vector.broadcast %651 : f32 to vector<8x16xf32>
    %653 = arith.addf %650, %652 : vector<8x16xf32>
    %654 = arith.subf %653, %451 : vector<8x16xf32>
    %655 = math.exp %654 : vector<8x16xf32>
    %656 = arith.addf %640, %655 : vector<8x16xf32>
    %c12_i32 = arith.constant 12 : i32
    %657 = vector.broadcast %c12_i32 : i32 to vector<8x16xi32>
    %658 = arith.cmpi eq, %22, %657 : vector<8x16xi32>
    %cst_95 = arith.constant 0.000000e+00 : f32
    %659 = vector.broadcast %cst_95 : f32 to vector<8x16xf32>
    %660 = arith.select %658, %653, %659 : vector<8x16xi1>, vector<8x16xf32>
    %661 = arith.addf %645, %660 : vector<8x16xf32>
    %662 = arith.subf %43, %157 : vector<8x16xf32>
    %c13_96 = arith.constant 13 : index
    %663 = memref.load %arg9[%c13_96] : memref<32xf32, #tpu.memory_space<smem>>
    %664 = vector.broadcast %663 : f32 to vector<8x16xf32>
    %665 = arith.mulf %164, %664 : vector<8x16xf32>
    %666 = arith.mulf %662, %665 : vector<8x16xf32>
    %c13_97 = arith.constant 13 : index
    %667 = memref.load %arg10[%c13_97] : memref<32xf32, #tpu.memory_space<smem>>
    %668 = vector.broadcast %667 : f32 to vector<8x16xf32>
    %669 = arith.addf %666, %668 : vector<8x16xf32>
    %670 = arith.subf %669, %451 : vector<8x16xf32>
    %671 = math.exp %670 : vector<8x16xf32>
    %672 = arith.addf %656, %671 : vector<8x16xf32>
    %c13_i32 = arith.constant 13 : i32
    %673 = vector.broadcast %c13_i32 : i32 to vector<8x16xi32>
    %674 = arith.cmpi eq, %22, %673 : vector<8x16xi32>
    %cst_98 = arith.constant 0.000000e+00 : f32
    %675 = vector.broadcast %cst_98 : f32 to vector<8x16xf32>
    %676 = arith.select %674, %669, %675 : vector<8x16xi1>, vector<8x16xf32>
    %677 = arith.addf %661, %676 : vector<8x16xf32>
    %678 = arith.subf %44, %157 : vector<8x16xf32>
    %c14_99 = arith.constant 14 : index
    %679 = memref.load %arg9[%c14_99] : memref<32xf32, #tpu.memory_space<smem>>
    %680 = vector.broadcast %679 : f32 to vector<8x16xf32>
    %681 = arith.mulf %164, %680 : vector<8x16xf32>
    %682 = arith.mulf %678, %681 : vector<8x16xf32>
    %c14_100 = arith.constant 14 : index
    %683 = memref.load %arg10[%c14_100] : memref<32xf32, #tpu.memory_space<smem>>
    %684 = vector.broadcast %683 : f32 to vector<8x16xf32>
    %685 = arith.addf %682, %684 : vector<8x16xf32>
    %686 = arith.subf %685, %451 : vector<8x16xf32>
    %687 = math.exp %686 : vector<8x16xf32>
    %688 = arith.addf %672, %687 : vector<8x16xf32>
    %c14_i32 = arith.constant 14 : i32
    %689 = vector.broadcast %c14_i32 : i32 to vector<8x16xi32>
    %690 = arith.cmpi eq, %22, %689 : vector<8x16xi32>
    %cst_101 = arith.constant 0.000000e+00 : f32
    %691 = vector.broadcast %cst_101 : f32 to vector<8x16xf32>
    %692 = arith.select %690, %685, %691 : vector<8x16xi1>, vector<8x16xf32>
    %693 = arith.addf %677, %692 : vector<8x16xf32>
    %694 = arith.subf %45, %157 : vector<8x16xf32>
    %c15_102 = arith.constant 15 : index
    %695 = memref.load %arg9[%c15_102] : memref<32xf32, #tpu.memory_space<smem>>
    %696 = vector.broadcast %695 : f32 to vector<8x16xf32>
    %697 = arith.mulf %164, %696 : vector<8x16xf32>
    %698 = arith.mulf %694, %697 : vector<8x16xf32>
    %c15_103 = arith.constant 15 : index
    %699 = memref.load %arg10[%c15_103] : memref<32xf32, #tpu.memory_space<smem>>
    %700 = vector.broadcast %699 : f32 to vector<8x16xf32>
    %701 = arith.addf %698, %700 : vector<8x16xf32>
    %702 = arith.subf %701, %451 : vector<8x16xf32>
    %703 = math.exp %702 : vector<8x16xf32>
    %704 = arith.addf %688, %703 : vector<8x16xf32>
    %c15_i32 = arith.constant 15 : i32
    %705 = vector.broadcast %c15_i32 : i32 to vector<8x16xi32>
    %706 = arith.cmpi eq, %22, %705 : vector<8x16xi32>
    %cst_104 = arith.constant 0.000000e+00 : f32
    %707 = vector.broadcast %cst_104 : f32 to vector<8x16xf32>
    %708 = arith.select %706, %701, %707 : vector<8x16xi1>, vector<8x16xf32>
    %709 = arith.addf %693, %708 : vector<8x16xf32>
    %710 = arith.subf %46, %157 : vector<8x16xf32>
    %c16_105 = arith.constant 16 : index
    %711 = memref.load %arg9[%c16_105] : memref<32xf32, #tpu.memory_space<smem>>
    %712 = vector.broadcast %711 : f32 to vector<8x16xf32>
    %713 = arith.mulf %164, %712 : vector<8x16xf32>
    %714 = arith.mulf %710, %713 : vector<8x16xf32>
    %c16_106 = arith.constant 16 : index
    %715 = memref.load %arg10[%c16_106] : memref<32xf32, #tpu.memory_space<smem>>
    %716 = vector.broadcast %715 : f32 to vector<8x16xf32>
    %717 = arith.addf %714, %716 : vector<8x16xf32>
    %718 = arith.subf %717, %451 : vector<8x16xf32>
    %719 = math.exp %718 : vector<8x16xf32>
    %720 = arith.addf %704, %719 : vector<8x16xf32>
    %c16_i32 = arith.constant 16 : i32
    %721 = vector.broadcast %c16_i32 : i32 to vector<8x16xi32>
    %722 = arith.cmpi eq, %22, %721 : vector<8x16xi32>
    %cst_107 = arith.constant 0.000000e+00 : f32
    %723 = vector.broadcast %cst_107 : f32 to vector<8x16xf32>
    %724 = arith.select %722, %717, %723 : vector<8x16xi1>, vector<8x16xf32>
    %725 = arith.addf %709, %724 : vector<8x16xf32>
    %726 = arith.subf %47, %157 : vector<8x16xf32>
    %c17_108 = arith.constant 17 : index
    %727 = memref.load %arg9[%c17_108] : memref<32xf32, #tpu.memory_space<smem>>
    %728 = vector.broadcast %727 : f32 to vector<8x16xf32>
    %729 = arith.mulf %164, %728 : vector<8x16xf32>
    %730 = arith.mulf %726, %729 : vector<8x16xf32>
    %c17_109 = arith.constant 17 : index
    %731 = memref.load %arg10[%c17_109] : memref<32xf32, #tpu.memory_space<smem>>
    %732 = vector.broadcast %731 : f32 to vector<8x16xf32>
    %733 = arith.addf %730, %732 : vector<8x16xf32>
    %734 = arith.subf %733, %451 : vector<8x16xf32>
    %735 = math.exp %734 : vector<8x16xf32>
    %736 = arith.addf %720, %735 : vector<8x16xf32>
    %c17_i32 = arith.constant 17 : i32
    %737 = vector.broadcast %c17_i32 : i32 to vector<8x16xi32>
    %738 = arith.cmpi eq, %22, %737 : vector<8x16xi32>
    %cst_110 = arith.constant 0.000000e+00 : f32
    %739 = vector.broadcast %cst_110 : f32 to vector<8x16xf32>
    %740 = arith.select %738, %733, %739 : vector<8x16xi1>, vector<8x16xf32>
    %741 = arith.addf %725, %740 : vector<8x16xf32>
    %742 = arith.subf %48, %157 : vector<8x16xf32>
    %c18_111 = arith.constant 18 : index
    %743 = memref.load %arg9[%c18_111] : memref<32xf32, #tpu.memory_space<smem>>
    %744 = vector.broadcast %743 : f32 to vector<8x16xf32>
    %745 = arith.mulf %164, %744 : vector<8x16xf32>
    %746 = arith.mulf %742, %745 : vector<8x16xf32>
    %c18_112 = arith.constant 18 : index
    %747 = memref.load %arg10[%c18_112] : memref<32xf32, #tpu.memory_space<smem>>
    %748 = vector.broadcast %747 : f32 to vector<8x16xf32>
    %749 = arith.addf %746, %748 : vector<8x16xf32>
    %750 = arith.subf %749, %451 : vector<8x16xf32>
    %751 = math.exp %750 : vector<8x16xf32>
    %752 = arith.addf %736, %751 : vector<8x16xf32>
    %c18_i32 = arith.constant 18 : i32
    %753 = vector.broadcast %c18_i32 : i32 to vector<8x16xi32>
    %754 = arith.cmpi eq, %22, %753 : vector<8x16xi32>
    %cst_113 = arith.constant 0.000000e+00 : f32
    %755 = vector.broadcast %cst_113 : f32 to vector<8x16xf32>
    %756 = arith.select %754, %749, %755 : vector<8x16xi1>, vector<8x16xf32>
    %757 = arith.addf %741, %756 : vector<8x16xf32>
    %758 = arith.subf %49, %157 : vector<8x16xf32>
    %c19_114 = arith.constant 19 : index
    %759 = memref.load %arg9[%c19_114] : memref<32xf32, #tpu.memory_space<smem>>
    %760 = vector.broadcast %759 : f32 to vector<8x16xf32>
    %761 = arith.mulf %164, %760 : vector<8x16xf32>
    %762 = arith.mulf %758, %761 : vector<8x16xf32>
    %c19_115 = arith.constant 19 : index
    %763 = memref.load %arg10[%c19_115] : memref<32xf32, #tpu.memory_space<smem>>
    %764 = vector.broadcast %763 : f32 to vector<8x16xf32>
    %765 = arith.addf %762, %764 : vector<8x16xf32>
    %766 = arith.subf %765, %451 : vector<8x16xf32>
    %767 = math.exp %766 : vector<8x16xf32>
    %768 = arith.addf %752, %767 : vector<8x16xf32>
    %c19_i32 = arith.constant 19 : i32
    %769 = vector.broadcast %c19_i32 : i32 to vector<8x16xi32>
    %770 = arith.cmpi eq, %22, %769 : vector<8x16xi32>
    %cst_116 = arith.constant 0.000000e+00 : f32
    %771 = vector.broadcast %cst_116 : f32 to vector<8x16xf32>
    %772 = arith.select %770, %765, %771 : vector<8x16xi1>, vector<8x16xf32>
    %773 = arith.addf %757, %772 : vector<8x16xf32>
    %774 = arith.subf %50, %157 : vector<8x16xf32>
    %c20_117 = arith.constant 20 : index
    %775 = memref.load %arg9[%c20_117] : memref<32xf32, #tpu.memory_space<smem>>
    %776 = vector.broadcast %775 : f32 to vector<8x16xf32>
    %777 = arith.mulf %164, %776 : vector<8x16xf32>
    %778 = arith.mulf %774, %777 : vector<8x16xf32>
    %c20_118 = arith.constant 20 : index
    %779 = memref.load %arg10[%c20_118] : memref<32xf32, #tpu.memory_space<smem>>
    %780 = vector.broadcast %779 : f32 to vector<8x16xf32>
    %781 = arith.addf %778, %780 : vector<8x16xf32>
    %782 = arith.subf %781, %451 : vector<8x16xf32>
    %783 = math.exp %782 : vector<8x16xf32>
    %784 = arith.addf %768, %783 : vector<8x16xf32>
    %c20_i32 = arith.constant 20 : i32
    %785 = vector.broadcast %c20_i32 : i32 to vector<8x16xi32>
    %786 = arith.cmpi eq, %22, %785 : vector<8x16xi32>
    %cst_119 = arith.constant 0.000000e+00 : f32
    %787 = vector.broadcast %cst_119 : f32 to vector<8x16xf32>
    %788 = arith.select %786, %781, %787 : vector<8x16xi1>, vector<8x16xf32>
    %789 = arith.addf %773, %788 : vector<8x16xf32>
    %790 = arith.subf %51, %157 : vector<8x16xf32>
    %c21_120 = arith.constant 21 : index
    %791 = memref.load %arg9[%c21_120] : memref<32xf32, #tpu.memory_space<smem>>
    %792 = vector.broadcast %791 : f32 to vector<8x16xf32>
    %793 = arith.mulf %164, %792 : vector<8x16xf32>
    %794 = arith.mulf %790, %793 : vector<8x16xf32>
    %c21_121 = arith.constant 21 : index
    %795 = memref.load %arg10[%c21_121] : memref<32xf32, #tpu.memory_space<smem>>
    %796 = vector.broadcast %795 : f32 to vector<8x16xf32>
    %797 = arith.addf %794, %796 : vector<8x16xf32>
    %798 = arith.subf %797, %451 : vector<8x16xf32>
    %799 = math.exp %798 : vector<8x16xf32>
    %800 = arith.addf %784, %799 : vector<8x16xf32>
    %c21_i32 = arith.constant 21 : i32
    %801 = vector.broadcast %c21_i32 : i32 to vector<8x16xi32>
    %802 = arith.cmpi eq, %22, %801 : vector<8x16xi32>
    %cst_122 = arith.constant 0.000000e+00 : f32
    %803 = vector.broadcast %cst_122 : f32 to vector<8x16xf32>
    %804 = arith.select %802, %797, %803 : vector<8x16xi1>, vector<8x16xf32>
    %805 = arith.addf %789, %804 : vector<8x16xf32>
    %806 = arith.subf %52, %157 : vector<8x16xf32>
    %c22_123 = arith.constant 22 : index
    %807 = memref.load %arg9[%c22_123] : memref<32xf32, #tpu.memory_space<smem>>
    %808 = vector.broadcast %807 : f32 to vector<8x16xf32>
    %809 = arith.mulf %164, %808 : vector<8x16xf32>
    %810 = arith.mulf %806, %809 : vector<8x16xf32>
    %c22_124 = arith.constant 22 : index
    %811 = memref.load %arg10[%c22_124] : memref<32xf32, #tpu.memory_space<smem>>
    %812 = vector.broadcast %811 : f32 to vector<8x16xf32>
    %813 = arith.addf %810, %812 : vector<8x16xf32>
    %814 = arith.subf %813, %451 : vector<8x16xf32>
    %815 = math.exp %814 : vector<8x16xf32>
    %816 = arith.addf %800, %815 : vector<8x16xf32>
    %c22_i32 = arith.constant 22 : i32
    %817 = vector.broadcast %c22_i32 : i32 to vector<8x16xi32>
    %818 = arith.cmpi eq, %22, %817 : vector<8x16xi32>
    %cst_125 = arith.constant 0.000000e+00 : f32
    %819 = vector.broadcast %cst_125 : f32 to vector<8x16xf32>
    %820 = arith.select %818, %813, %819 : vector<8x16xi1>, vector<8x16xf32>
    %821 = arith.addf %805, %820 : vector<8x16xf32>
    %822 = arith.subf %53, %157 : vector<8x16xf32>
    %c23_126 = arith.constant 23 : index
    %823 = memref.load %arg9[%c23_126] : memref<32xf32, #tpu.memory_space<smem>>
    %824 = vector.broadcast %823 : f32 to vector<8x16xf32>
    %825 = arith.mulf %164, %824 : vector<8x16xf32>
    %826 = arith.mulf %822, %825 : vector<8x16xf32>
    %c23_127 = arith.constant 23 : index
    %827 = memref.load %arg10[%c23_127] : memref<32xf32, #tpu.memory_space<smem>>
    %828 = vector.broadcast %827 : f32 to vector<8x16xf32>
    %829 = arith.addf %826, %828 : vector<8x16xf32>
    %830 = arith.subf %829, %451 : vector<8x16xf32>
    %831 = math.exp %830 : vector<8x16xf32>
    %832 = arith.addf %816, %831 : vector<8x16xf32>
    %c23_i32 = arith.constant 23 : i32
    %833 = vector.broadcast %c23_i32 : i32 to vector<8x16xi32>
    %834 = arith.cmpi eq, %22, %833 : vector<8x16xi32>
    %cst_128 = arith.constant 0.000000e+00 : f32
    %835 = vector.broadcast %cst_128 : f32 to vector<8x16xf32>
    %836 = arith.select %834, %829, %835 : vector<8x16xi1>, vector<8x16xf32>
    %837 = arith.addf %821, %836 : vector<8x16xf32>
    %838 = arith.subf %54, %157 : vector<8x16xf32>
    %c24_129 = arith.constant 24 : index
    %839 = memref.load %arg9[%c24_129] : memref<32xf32, #tpu.memory_space<smem>>
    %840 = vector.broadcast %839 : f32 to vector<8x16xf32>
    %841 = arith.mulf %164, %840 : vector<8x16xf32>
    %842 = arith.mulf %838, %841 : vector<8x16xf32>
    %c24_130 = arith.constant 24 : index
    %843 = memref.load %arg10[%c24_130] : memref<32xf32, #tpu.memory_space<smem>>
    %844 = vector.broadcast %843 : f32 to vector<8x16xf32>
    %845 = arith.addf %842, %844 : vector<8x16xf32>
    %846 = arith.subf %845, %451 : vector<8x16xf32>
    %847 = math.exp %846 : vector<8x16xf32>
    %848 = arith.addf %832, %847 : vector<8x16xf32>
    %c24_i32 = arith.constant 24 : i32
    %849 = vector.broadcast %c24_i32 : i32 to vector<8x16xi32>
    %850 = arith.cmpi eq, %22, %849 : vector<8x16xi32>
    %cst_131 = arith.constant 0.000000e+00 : f32
    %851 = vector.broadcast %cst_131 : f32 to vector<8x16xf32>
    %852 = arith.select %850, %845, %851 : vector<8x16xi1>, vector<8x16xf32>
    %853 = arith.addf %837, %852 : vector<8x16xf32>
    %854 = arith.subf %55, %157 : vector<8x16xf32>
    %c25_132 = arith.constant 25 : index
    %855 = memref.load %arg9[%c25_132] : memref<32xf32, #tpu.memory_space<smem>>
    %856 = vector.broadcast %855 : f32 to vector<8x16xf32>
    %857 = arith.mulf %164, %856 : vector<8x16xf32>
    %858 = arith.mulf %854, %857 : vector<8x16xf32>
    %c25_133 = arith.constant 25 : index
    %859 = memref.load %arg10[%c25_133] : memref<32xf32, #tpu.memory_space<smem>>
    %860 = vector.broadcast %859 : f32 to vector<8x16xf32>
    %861 = arith.addf %858, %860 : vector<8x16xf32>
    %862 = arith.subf %861, %451 : vector<8x16xf32>
    %863 = math.exp %862 : vector<8x16xf32>
    %864 = arith.addf %848, %863 : vector<8x16xf32>
    %c25_i32 = arith.constant 25 : i32
    %865 = vector.broadcast %c25_i32 : i32 to vector<8x16xi32>
    %866 = arith.cmpi eq, %22, %865 : vector<8x16xi32>
    %cst_134 = arith.constant 0.000000e+00 : f32
    %867 = vector.broadcast %cst_134 : f32 to vector<8x16xf32>
    %868 = arith.select %866, %861, %867 : vector<8x16xi1>, vector<8x16xf32>
    %869 = arith.addf %853, %868 : vector<8x16xf32>
    %870 = arith.subf %56, %157 : vector<8x16xf32>
    %c26_135 = arith.constant 26 : index
    %871 = memref.load %arg9[%c26_135] : memref<32xf32, #tpu.memory_space<smem>>
    %872 = vector.broadcast %871 : f32 to vector<8x16xf32>
    %873 = arith.mulf %164, %872 : vector<8x16xf32>
    %874 = arith.mulf %870, %873 : vector<8x16xf32>
    %c26_136 = arith.constant 26 : index
    %875 = memref.load %arg10[%c26_136] : memref<32xf32, #tpu.memory_space<smem>>
    %876 = vector.broadcast %875 : f32 to vector<8x16xf32>
    %877 = arith.addf %874, %876 : vector<8x16xf32>
    %878 = arith.subf %877, %451 : vector<8x16xf32>
    %879 = math.exp %878 : vector<8x16xf32>
    %880 = arith.addf %864, %879 : vector<8x16xf32>
    %c26_i32 = arith.constant 26 : i32
    %881 = vector.broadcast %c26_i32 : i32 to vector<8x16xi32>
    %882 = arith.cmpi eq, %22, %881 : vector<8x16xi32>
    %cst_137 = arith.constant 0.000000e+00 : f32
    %883 = vector.broadcast %cst_137 : f32 to vector<8x16xf32>
    %884 = arith.select %882, %877, %883 : vector<8x16xi1>, vector<8x16xf32>
    %885 = arith.addf %869, %884 : vector<8x16xf32>
    %886 = arith.subf %57, %157 : vector<8x16xf32>
    %c27_138 = arith.constant 27 : index
    %887 = memref.load %arg9[%c27_138] : memref<32xf32, #tpu.memory_space<smem>>
    %888 = vector.broadcast %887 : f32 to vector<8x16xf32>
    %889 = arith.mulf %164, %888 : vector<8x16xf32>
    %890 = arith.mulf %886, %889 : vector<8x16xf32>
    %c27_139 = arith.constant 27 : index
    %891 = memref.load %arg10[%c27_139] : memref<32xf32, #tpu.memory_space<smem>>
    %892 = vector.broadcast %891 : f32 to vector<8x16xf32>
    %893 = arith.addf %890, %892 : vector<8x16xf32>
    %894 = arith.subf %893, %451 : vector<8x16xf32>
    %895 = math.exp %894 : vector<8x16xf32>
    %896 = arith.addf %880, %895 : vector<8x16xf32>
    %c27_i32 = arith.constant 27 : i32
    %897 = vector.broadcast %c27_i32 : i32 to vector<8x16xi32>
    %898 = arith.cmpi eq, %22, %897 : vector<8x16xi32>
    %cst_140 = arith.constant 0.000000e+00 : f32
    %899 = vector.broadcast %cst_140 : f32 to vector<8x16xf32>
    %900 = arith.select %898, %893, %899 : vector<8x16xi1>, vector<8x16xf32>
    %901 = arith.addf %885, %900 : vector<8x16xf32>
    %902 = arith.subf %58, %157 : vector<8x16xf32>
    %c28_141 = arith.constant 28 : index
    %903 = memref.load %arg9[%c28_141] : memref<32xf32, #tpu.memory_space<smem>>
    %904 = vector.broadcast %903 : f32 to vector<8x16xf32>
    %905 = arith.mulf %164, %904 : vector<8x16xf32>
    %906 = arith.mulf %902, %905 : vector<8x16xf32>
    %c28_142 = arith.constant 28 : index
    %907 = memref.load %arg10[%c28_142] : memref<32xf32, #tpu.memory_space<smem>>
    %908 = vector.broadcast %907 : f32 to vector<8x16xf32>
    %909 = arith.addf %906, %908 : vector<8x16xf32>
    %910 = arith.subf %909, %451 : vector<8x16xf32>
    %911 = math.exp %910 : vector<8x16xf32>
    %912 = arith.addf %896, %911 : vector<8x16xf32>
    %c28_i32 = arith.constant 28 : i32
    %913 = vector.broadcast %c28_i32 : i32 to vector<8x16xi32>
    %914 = arith.cmpi eq, %22, %913 : vector<8x16xi32>
    %cst_143 = arith.constant 0.000000e+00 : f32
    %915 = vector.broadcast %cst_143 : f32 to vector<8x16xf32>
    %916 = arith.select %914, %909, %915 : vector<8x16xi1>, vector<8x16xf32>
    %917 = arith.addf %901, %916 : vector<8x16xf32>
    %918 = arith.subf %59, %157 : vector<8x16xf32>
    %c29_144 = arith.constant 29 : index
    %919 = memref.load %arg9[%c29_144] : memref<32xf32, #tpu.memory_space<smem>>
    %920 = vector.broadcast %919 : f32 to vector<8x16xf32>
    %921 = arith.mulf %164, %920 : vector<8x16xf32>
    %922 = arith.mulf %918, %921 : vector<8x16xf32>
    %c29_145 = arith.constant 29 : index
    %923 = memref.load %arg10[%c29_145] : memref<32xf32, #tpu.memory_space<smem>>
    %924 = vector.broadcast %923 : f32 to vector<8x16xf32>
    %925 = arith.addf %922, %924 : vector<8x16xf32>
    %926 = arith.subf %925, %451 : vector<8x16xf32>
    %927 = math.exp %926 : vector<8x16xf32>
    %928 = arith.addf %912, %927 : vector<8x16xf32>
    %c29_i32 = arith.constant 29 : i32
    %929 = vector.broadcast %c29_i32 : i32 to vector<8x16xi32>
    %930 = arith.cmpi eq, %22, %929 : vector<8x16xi32>
    %cst_146 = arith.constant 0.000000e+00 : f32
    %931 = vector.broadcast %cst_146 : f32 to vector<8x16xf32>
    %932 = arith.select %930, %925, %931 : vector<8x16xi1>, vector<8x16xf32>
    %933 = arith.addf %917, %932 : vector<8x16xf32>
    %934 = arith.subf %60, %157 : vector<8x16xf32>
    %c30_147 = arith.constant 30 : index
    %935 = memref.load %arg9[%c30_147] : memref<32xf32, #tpu.memory_space<smem>>
    %936 = vector.broadcast %935 : f32 to vector<8x16xf32>
    %937 = arith.mulf %164, %936 : vector<8x16xf32>
    %938 = arith.mulf %934, %937 : vector<8x16xf32>
    %c30_148 = arith.constant 30 : index
    %939 = memref.load %arg10[%c30_148] : memref<32xf32, #tpu.memory_space<smem>>
    %940 = vector.broadcast %939 : f32 to vector<8x16xf32>
    %941 = arith.addf %938, %940 : vector<8x16xf32>
    %942 = arith.subf %941, %451 : vector<8x16xf32>
    %943 = math.exp %942 : vector<8x16xf32>
    %944 = arith.addf %928, %943 : vector<8x16xf32>
    %c30_i32 = arith.constant 30 : i32
    %945 = vector.broadcast %c30_i32 : i32 to vector<8x16xi32>
    %946 = arith.cmpi eq, %22, %945 : vector<8x16xi32>
    %cst_149 = arith.constant 0.000000e+00 : f32
    %947 = vector.broadcast %cst_149 : f32 to vector<8x16xf32>
    %948 = arith.select %946, %941, %947 : vector<8x16xi1>, vector<8x16xf32>
    %949 = arith.addf %933, %948 : vector<8x16xf32>
    %950 = arith.subf %61, %157 : vector<8x16xf32>
    %c31_150 = arith.constant 31 : index
    %951 = memref.load %arg9[%c31_150] : memref<32xf32, #tpu.memory_space<smem>>
    %952 = vector.broadcast %951 : f32 to vector<8x16xf32>
    %953 = arith.mulf %164, %952 : vector<8x16xf32>
    %954 = arith.mulf %950, %953 : vector<8x16xf32>
    %c31_151 = arith.constant 31 : index
    %955 = memref.load %arg10[%c31_151] : memref<32xf32, #tpu.memory_space<smem>>
    %956 = vector.broadcast %955 : f32 to vector<8x16xf32>
    %957 = arith.addf %954, %956 : vector<8x16xf32>
    %958 = arith.subf %957, %451 : vector<8x16xf32>
    %959 = math.exp %958 : vector<8x16xf32>
    %960 = arith.addf %944, %959 : vector<8x16xf32>
    %c31_i32 = arith.constant 31 : i32
    %961 = vector.broadcast %c31_i32 : i32 to vector<8x16xi32>
    %962 = arith.cmpi eq, %22, %961 : vector<8x16xi32>
    %cst_152 = arith.constant 0.000000e+00 : f32
    %963 = vector.broadcast %cst_152 : f32 to vector<8x16xf32>
    %964 = arith.select %962, %957, %963 : vector<8x16xi1>, vector<8x16xf32>
    %965 = arith.addf %949, %964 : vector<8x16xf32>
    %966 = math.log %960 : vector<8x16xf32>
    %967 = arith.addf %451, %966 : vector<8x16xf32>
    %968 = arith.subf %967, %965 : vector<8x16xf32>
    %969 = arith.mulf %968, %29 : vector<8x16xf32>
    %970 = vector.shape_cast %969 : vector<8x16xf32> to vector<1x8x16xf32>
    %cst_153 = arith.constant dense<0.000000e+00> : vector<1xf32>
    %971 = vector.multi_reduction <add>, %970, %cst_153 [1, 2] : vector<1x8x16xf32> to vector<1xf32>
    %972 = vector.shape_cast %971 : vector<1xf32> to vector<1x1x1xf32>
    %973 = vector.extract %972[0, 0, 0] : f32 from vector<1x1x1xf32>
    %974 = vector.broadcast %973 : f32 to vector<1x1xf32>
    %c0_154 = arith.constant 0 : index
    %c0_155 = arith.constant 0 : index
    %c0_156 = arith.constant 0 : index
    %c0_157 = arith.constant 0 : index
    %975 = vector.load %arg11[%c0_154, %c0_155, %c0_156, %c0_157] : memref<1x1x1x1xf32, #tpu.memory_space<vmem>>, vector<1x1x1x1xf32>
    %976 = vector.shape_cast %975 : vector<1x1x1x1xf32> to vector<1x1xf32>
    %977 = vector.shape_cast %974 : vector<1x1xf32> to vector<1x1x1x1xf32>
    tpu.vector_store %arg11[%c0_154, %c0_155, %c0_156, %c0_157], %977 {strides = array<i32>} : memref<1x1x1x1xf32, #tpu.memory_space<vmem>>, vector<1x1x1x1xf32>,
    %978 = vector.shape_cast %29 : vector<8x16xf32> to vector<1x8x16xf32>
    %cst_158 = arith.constant dense<0.000000e+00> : vector<1xf32>
    %979 = vector.multi_reduction <add>, %978, %cst_158 [1, 2] : vector<1x8x16xf32> to vector<1xf32>
    %980 = vector.shape_cast %979 : vector<1xf32> to vector<1x1x1xf32>
    %981 = vector.extract %980[0, 0, 0] : f32 from vector<1x1x1xf32>
    %982 = vector.broadcast %981 : f32 to vector<1x1xf32>
    %c0_159 = arith.constant 0 : index
    %c0_160 = arith.constant 0 : index
    %c0_161 = arith.constant 0 : index
    %c0_162 = arith.constant 0 : index
    %983 = vector.load %arg12[%c0_159, %c0_160, %c0_161, %c0_162] : memref<1x1x1x1xf32, #tpu.memory_space<vmem>>, vector<1x1x1x1xf32>
    %984 = vector.shape_cast %983 : vector<1x1x1x1xf32> to vector<1x1xf32>
    %985 = vector.shape_cast %982 : vector<1x1xf32> to vector<1x1x1x1xf32>
    tpu.vector_store %arg12[%c0_159, %c0_160, %c0_161, %c0_162], %985 {strides = array<i32>} : memref<1x1x1x1xf32, #tpu.memory_space<vmem>>, vector<1x1x1x1xf32>,
    return
  }
  func.func @transform_0(%arg0: i32, %arg1: i32) -> (i32, i32) {
    %c0_i32 = arith.constant 0 : i32
    %c0_i32_0 = arith.constant 0 : i32
    %c0_i32_1 = arith.constant 0 : i32
    return %c0_i32, %c0_i32_0 : i32, i32
  }
  func.func @transform_1(%arg0: i32, %arg1: i32) -> (i32, i32) {
    %c0_i32 = arith.constant 0 : i32
    %c0_i32_0 = arith.constant 0 : i32
    return %arg1, %c0_i32 : i32, i32
  }
  func.func @transform_2(%arg0: i32, %arg1: i32) -> (i32, i32, i32) {
    %c0_i32 = arith.constant 0 : i32
    %c0_i32_0 = arith.constant 0 : i32
    %c0_i32_1 = arith.constant 0 : i32
    return %arg0, %c0_i32, %c0_i32_0 : i32, i32, i32
  }
  func.func @transform_3(%arg0: i32, %arg1: i32) -> (i32, i32, i32) {
    %c0_i32 = arith.constant 0 : i32
    %c0_i32_0 = arith.constant 0 : i32
    %c0_i32_1 = arith.constant 0 : i32
    return %arg0, %c0_i32, %c0_i32_0 : i32, i32, i32
  }
  func.func @transform_4(%arg0: i32, %arg1: i32) -> (i32, i32, i32) {
    %c0_i32 = arith.constant 0 : i32
    %c0_i32_0 = arith.constant 0 : i32
    return %arg0, %arg1, %c0_i32 : i32, i32, i32
  }
  func.func @transform_5(%arg0: i32, %arg1: i32) -> (i32, i32) {
    %c0_i32 = arith.constant 0 : i32
    %c0_i32_0 = arith.constant 0 : i32
    return %arg1, %c0_i32 : i32, i32
  }
  func.func @transform_6(%arg0: i32, %arg1: i32) -> (i32, i32) {
    %c0_i32 = arith.constant 0 : i32
    %c0_i32_0 = arith.constant 0 : i32
    %c0_i32_1 = arith.constant 0 : i32
    return %c0_i32, %c0_i32_0 : i32, i32
  }
  func.func @transform_7(%arg0: i32, %arg1: i32) -> i32 {
    %c0_i32 = arith.constant 0 : i32
    %c0_i32_0 = arith.constant 0 : i32
    return %c0_i32 : i32
  }
  func.func @transform_8(%arg0: i32, %arg1: i32) -> i32 {
    %c0_i32 = arith.constant 0 : i32
    %c0_i32_0 = arith.constant 0 : i32
    return %c0_i32 : i32
  }
  func.func @transform_9(%arg0: i32, %arg1: i32) -> (i32, i32, i32, i32) {
    %c0_i32 = arith.constant 0 : i32
    %c0_i32_0 = arith.constant 0 : i32
    %c0_i32_1 = arith.constant 0 : i32
    return %arg0, %arg1, %c0_i32, %c0_i32_0 : i32, i32, i32, i32
  }
  func.func @transform_10(%arg0: i32, %arg1: i32) -> (i32, i32, i32, i32) {
    %c0_i32 = arith.constant 0 : i32
    %c0_i32_0 = arith.constant 0 : i32
    %c0_i32_1 = arith.constant 0 : i32
    return %arg0, %arg1, %c0_i32, %c0_i32_0 : i32, i32, i32, i32
  }
}

</mosaic_0001>

<bundles_post_ra>
// kernel: tpu_custom_call.1
= control target key start
LH: loop header
LB: loop body
LE: loop exit
PB: predicated region body
PF: predicated region fallthrough
CT: control target
= control target key end

     0   :  { %s4038_s0 = inlined_call_operand.vmem [shape: bf16[8,16], index: 0, kind: input, shape index: {}]   ;;  %s4039_s1 = inlined_call_operand.vmem [shape: f32[16,8], index: 1, kind: input, shape index: {}]   ;;  %s4040_s2 = inlined_call_operand.vmem [shape: bf16[2,256,8], index: 2, kind: input, shape index: {}]   ;;  %s4041_s3 = inlined_call_operand.vmem [shape: s32[2,16,16], index: 3, kind: input, shape index: {}]   ;;  %s4042_s4 = inlined_call_operand.vmem [shape: s32[2,16,16], index: 4, kind: input, shape index: {}]   ;;  %s4043_s5 = inlined_call_operand.vmem [shape: f32[16,16], index: 5, kind: input, shape index: {}]   ;;  %s4044_s6 = inlined_call_operand.vmem [shape: bf16[16,16], index: 6, kind: input, shape index: {}]   ;;  %s4045_s7 = inlined_call_operand.vmem [shape: f32[32], index: 7, kind: input, shape index: {}]   ;;  %s4046_s8 = inlined_call_operand.vmem [shape: f32[32], index: 8, kind: input, shape index: {}]   ;;  %s4047_s9 = inlined_call_operand.vmem [shape: f32[2,2,1,1], index: 9, kind: output, shape index: {0}]   ;;  %s4048_s10 = inlined_call_operand.vmem [shape: f32[2,2,1,1], index: 10, kind: output, shape index: {1}]  }
   0x1   :  { %4054 = sst [smem:[#allocation11_spill]] %s4039_s1 }
   0x2   :  { %4055 = sst [smem:[#allocation12_spill]] %s4045_s7 }
   0x3   :  { %4056 = sst [smem:[#allocation13_spill]] %s4046_s8 }
   0x4   :  { %16 = vsyncpa [#allocation4], 0 }
   0x5   :  { %17 = vsyncpa [#allocation6], 0  ;;  %s3098_s13 = smov 0   ;;  %s3100_s14 = smov 0  }
   0x6   :  { %s3102_s15 = smov 0   ;;  %s3104_s16 = smov 0  }
   0x7   :  { %s3106_s17 = smov 0  }
   0x8 LB: > { %s2576_s18 = sadd.s32 4294967295, %s3021_s17   ;;  %s32_s19 = sadd.s32 1, %s3013_s15  ;;  %s3021_s17 = sphi %s3106_s17, %s23_s17   ;;  %s3017_s16 = sphi %s3104_s16, %s4075_s16   ;;  %s3013_s15 = sphi %s3102_s15, %s4074_s15   ;;  %s3009_s14 = sphi %s3100_s14, %s4073_s14   ;;  %s3005_s13 = sphi %s3098_s13, %s4072_s13  }
   0x9   : > { %p33_p0 = scmp.ge.s32.totalorder %s32_s19, 2  ;;  %s35_s20 = sadd.s32 1, %s3017_s16 }
   0xa   : > { %p2578_p1 = scmp.ge.s32.totalorder %s3021_s17, 1  ;;  %p312_p2 = scmp.lt.s32.totalorder %s3021_s17, 5 }
   0xb   : > { %s4077_s19 = smov (%p33_p0, %s32_s19), 0  ;;  %s4079_s20 = smov (!%p33_p0, %s35_s20), %s3017_s16 }
   0xc   : > { %4057 = sst [smem:[#allocation9_spill]] %s4077_s19  ;;  %p3131_p3 = pnand %p2578_p1, %p312_p2 }
   0xd   : > { %p37_p4 = scmp.ge.s32.totalorder %s4079_s20, 2  ;;  %p3135_p5 = scmp.eq.s32.totalorder %s2576_s18, 0 }
   0xe   : > { %s4058_s21 = scalar_select %p3131_p3, 1, 0 }
   0xf   : > { %s4059_s22 = scalar_select %p3135_p5, 1, 0 }
  0x10   : > { %p2789_p6 = pneg %p3131_p3  ;;  %s4060_s7 = sld [smem:[#allocation12_spill]] }
  0x11   : > { %s4081_s20 = smov (%p37_p4, %s4079_s20), 0  ;;  %s4063_s8 = sld [smem:[#allocation13_spill]] }
  0x12   : > { %4061 = sst [smem:[#allocation10_spill]] %s4081_s20  ;;  %p3148_p7 = pnand %p3135_p5, %p2789_p6 }
  0x14   : > { %p2947_p9 = pneg %p3148_p7 }
  0x16   : > { %s331_s25 = sshll.u32 %s4060_s7, 4  ;;  %s332_s25 = int_to_ptr.vmem [resolvable:$true] %s331_s25 }
  0x17   : > { %s342_s29 = sshll.u32 %s4063_s8, 4  ;;  %s2945_s30 = scalar_lea.vmem %s332_s25, 16  ;;  %s343_s29 = int_to_ptr.vmem [resolvable:$true] %s342_s29 }
  0x18   : > { %p2946_p8 = scmp.ne.s32.totalorder %s332_s25, %s2945_s30  ;;  %p2953_p12 = scmp.lt.s32.totalorder %s332_s25, %s332_s25 }
  0x19   : > { %p2954_p13 = scmp.lt.s32.totalorder %s2945_s30, %s2945_s30 }
  0x1a   : > { %p2948_p10 = pnand %p2947_p9, %p2946_p8 }
  0x1b   : > { %p2955_p0 = por %p2954_p13, %p2953_p12 }
  0x1c   : > { %p2949_p11 = pneg %p2948_p10 }
  0x1e   : > { %p2956_p1 = pnand %p2955_p0, %p2949_p11 }
  0x20   : > { %2959 = shalt.err (!%p2956_p1)
}
  0x21   : > { %s3023_s11 = smov [#allocation3]   ;;  %s2960_s12 = scalar_lea.vmem %s343_s29, 16 }
  0x22   : > { %2792 = dma.vmem_to_smem (!%p3148_p7), %s332_s25, 16, %s3023_s11, [#allocation4]  }
  0x23   : > { %p2961_p2 = scmp.ne.s32.totalorder %s343_s29, %s2960_s12  ;;  %p2968_p5 = scmp.lt.s32.totalorder %s343_s29, %s343_s29 }
  0x24   : > { %p2969_p3 = scmp.lt.s32.totalorder %s2960_s12, %s2960_s12 }
  0x25   : > { %p2963_p4 = pnand %p2961_p2, %p2947_p9 }
  0x26   : > { %p2970_p8 = por %p2969_p3, %p2968_p5 }
  0x27   : > { %p2964_p6 = pneg %p2963_p4 }
  0x29   : > { %p2971_p10 = pnand %p2970_p8, %p2964_p6 }
  0x2b   : > { %2974 = shalt.err (!%p2971_p10)
}
  0x2c   : > { %s3024_s18 = smov [#allocation5]   ;;  %p4064_p11 = scmp.ne.s32.totalorder %s4058_s21, 0 }
  0x2d   : > { %2795 = dma.vmem_to_smem (!%p3148_p7), %s343_s29, 16, %s3024_s18, [#allocation6]  }
  0x2e   : > { %396 = sbr.rel (%p4064_p11) target bundleno = 1743 (0x6cf), region = 56  ;;  %p4065_p12 = scmp.ne.s32.totalorder (!%p4064_p11), %s4059_s22, 0 }
  0x33   : > { %2996 = dma.done.wait (%p4065_p12), [#allocation4], 16  }
  0x34   : > { %2998 = vsyncadd (%p4065_p12), [#allocation4], 4294967280 }
  0x35   : > { %3000 = dma.done.wait (%p4065_p12), [#allocation6], 16  }
  0x36   : > { %3002 = vsyncadd (%p4065_p12), [#allocation6], 4294967280 }
  0x37   : > { %406 = sfence }
  0x38   : > { %p469_p3 = scmp.lt.s32.totalorder %s3005_s13, 1  ;;  %p473_p5 = scmp.lt.s32.totalorder %s3009_s14, 1 }
  0x39   : > { %s4066_s1 = sld [smem:[#allocation11_spill]]  ;;  %p2595_p7 = scmp.ne.s32.totalorder %s3005_s13, 0 }
  0x3a   : > { %s470_s21 = scalar_select %p469_p3, %s3005_s13, 1 }
  0x3b   : > { %s4083_s14 = smov (!%p473_p5, %s3009_s14), 1  ;;  %s3026_s13 = smov (!%p2595_p7), 16  }
  0x3c   : > { %s2585_s23 = sshll.u32 %s470_s21, 3  ;;  %s2704_s27 = sshll.u32 %s4083_s14, 7 }
  0x3d   : > { %s3183_s22 = scalar_lea.vmem %s4040_s2, %s2704_s27  ;;  %s2705_s30 = sshll.u32 %s4083_s14, 4 }
  0x3e   : > { %s3188_s18 = scalar_lea.vmem %s4041_s3, %s2705_s30  ;;  %s2590_s7 = sshll.u32 %s4083_s14, 1 }
  0x3f   : > { %s3178_s26 = scalar_lea.vmem %s4066_s1, %s2585_s23  ;;  %s3190_s8 = sadd.s32 %s2590_s7, %s470_s21 }
  0x40   : > { %s3195_s24 = scalar_lea.vmem %s4043_s5, %s2585_s23  ;;  %s2591_s25 = sshll.u32 %s3190_s8, 3 }
  0x41   : > { %s3205_s30 = scalar_lea.vmem %s4042_s4, %s2591_s25  ;;  %513 = sbr.rel (%p2595_p7) target bundleno = 448 (0x1c0), region = 68 }
  0x42   : > { %s3025_s1 = smov (!%p2595_p7), 32   ;;  %s3027_s23 = smov (!%p2595_p7), 48  }
  0x43   : > { %s3029_s12 = smov (!%p2595_p7), 64   ;;  %s3030_s25 = smov (!%p2595_p7), 80  }
  0x44   : > { %s3031_s27 = smov (!%p2595_p7), 112  }
  0x46   : > { %v546_v0 = vld [vmem:[%s4038_s0] sm:$0xf]  ;;  %vm676_vm0 = vcmask 1043456   ;;  %vm627_vm1 = vcmask 64512   ;;  %v2862_v4 = vld [vmem:[%s3183_s22 + $0x8] sm:$0xff]   ;;  %v2864_v6 = vld [vmem:[%s3183_s22 + $0x10] sm:$0xff]  }
  0x47   : > { %v2860_v1 = vld [vmem:[%s3183_s22] sm:$0xff]   ;;  %2775 = vmatprep.subr.msk.bf16.mxu0 %vm676_vm0, %v546_v0  ;;  %2776 = vmatprep.subr.msk.bf16.mxu1 %vm676_vm0, %v546_v0  ;;  %v678_v2 = vsel %vm676_vm0, %v546_v0, 0  ;;  %v2863_v5 = vld [vmem:[%s3183_s22 + $0x48] sm:$0xff]   ;;  %v2865_v7 = vld [vmem:[%s3183_s22 + $0x50] sm:$0xff]   ;;  %vm841_vm2 = vcmask 130048   ;;  %vm847_vm3 = vcmask 261248  }
  0x48   : > { %2728 = vmatpush3.bf16.msra.mxu0 %v678_v2  ;;  %2774 = vmatpush3.bf16.msra.mxu1 %v678_v2  ;;  %v2861_v3 = vld [vmem:[%s3183_s22 + $0x40] sm:$0xff]   ;;  %v2866_v8 = vld [vmem:[%s3183_s22 + $0x18] sm:$0xff]   ;;  %v2870_v12 = vld [vmem:[%s3183_s22 + $0x28] sm:$0xff]   ;;  %vm853_vm4 = vcmask 392448   ;;  %vm859_vm5 = vcmask 523648   ;;  %vm865_vm6 = vcmask 654848  }
  0x49   : > { %2729 = vmatprep.mubr.msk.bf16.mxu0 %vm627_vm1, %v2860_v1  ;;  %2745 = vmatprep.mubr.msk.bf16.mxu1 %vm627_vm1, %v2861_v3  ;;  %v2867_v9 = vld [vmem:[%s3183_s22 + $0x58] sm:$0xff]   ;;  %v2868_v10 = vld [vmem:[%s3183_s22 + $0x20] sm:$0xff]   ;;  %v2871_v13 = vld [vmem:[%s3183_s22 + $0x68] sm:$0xff]   ;;  %vm871_vm7 = vcmask 786048   ;;  %vm877_vm8 = vcmask 917248   ;;  %vm883_vm9 = vcmask 1048448  }
  0x4a   : > { %v2869_v11 = vld [vmem:[%s3183_s22 + $0x60] sm:$0xff]   ;;  %v2872_v14 = vld [vmem:[%s3183_s22 + $0x30] sm:$0xff]   ;;  %v2873_v16 = vld [vmem:[%s3183_s22 + $0x38] sm:$0xff]  }
  0x4b   : > { %2730 = vmatmul.mubr.msk.bf16.vlgmr.msra.gmra.mxu0 %vm627_vm1, %v2862_v4  ;;  %2746 = vmatmul.mubr.msk.bf16.vlgmr.msra.gmra.mxu1 %vm627_vm1, %v2863_v5  ;;  %v2874_v15 = vld [vmem:[%s3183_s22 + $0x70] sm:$0xff]   ;;  %v2875_v17 = vld [vmem:[%s3183_s22 + $0x78] sm:$0xff]   ;;  %s3028_s22 = smov 96  }
  0x4c   : > { %2733 = vmatprep.mubr.msk.bf16.mxu0 %vm627_vm1, %v2864_v6  ;;  %2749 = vmatprep.mubr.msk.bf16.mxu1 %vm627_vm1, %v2865_v7 }
  0x53   : > { %2734 = vmatmul.mubr.msk.bf16.gmra.mxu0 %vm627_vm1, %v2866_v8  ;;  %2750 = vmatmul.mubr.msk.bf16.gmra.mxu1 %vm627_vm1, %v2867_v9 }
  0x54   : > { %2737 = vmatprep.mubr.msk.bf16.mxu0 %vm627_vm1, %v2868_v10  ;;  %2753 = vmatprep.mubr.msk.bf16.mxu1 %vm627_vm1, %v2869_v11 }
  0x5b   : > { %2738 = vmatmul.mubr.msk.bf16.gmra.mxu0 %vm627_vm1, %v2870_v12  ;;  %2754 = vmatmul.mubr.msk.bf16.gmra.mxu1 %vm627_vm1, %v2871_v13 }
  0x5c   : > { %2741 = vmatprep.mubr.msk.bf16.mxu0 %vm627_vm1, %v2872_v14  ;;  %2757 = vmatprep.mubr.msk.bf16.mxu1 %vm627_vm1, %v2874_v15 }
  0x63   : > { %2742 = vmatmul.mubr.msk.bf16.gmra.mxu0 %vm627_vm1, %v2873_v16  ;;  %2758 = vmatmul.mubr.msk.bf16.gmra.mxu1 %vm627_vm1, %v2875_v17 }
 0x10b   : > { %v2731_v18 = vpop.f32.mrf.mxu0  ;;  %v2747_v19 = vpop.f32.mrf.mxu1 }
 0x10c   : > { %850 = vrot.lane.b32.xlu0 %v2731_v18, %s3025_s1 }
 0x10d   : > { %v714_v20 = vpop.f32.mrf.mxu0  ;;  %v778_v21 = vpop.f32.mrf.mxu1 }
 0x10e   : > { %842 = vst.msk [vmem:[#allocation2] sm:$0xff] %vm841_vm2, %v714_v20  ;;  %921 = vst.msk [vmem:[#allocation2 + $0x10] sm:$0xff] %vm841_vm2, %v778_v21 }
 0x10f   : > { %v2732_v22 = vpop.f32.mrf.mxu0  ;;  %v2748_v23 = vpop.f32.mrf.mxu1 }
 0x110   : > { %928 = vrot.lane.b32.xlu0 %v2747_v19, %s3025_s1 }
 0x111   : > { %v717_v24 = vpop.f32.mrf.mxu0  ;;  %v781_v25 = vpop.f32.mrf.mxu1 }
 0x112   : > { %923 = vrot.lane.b32.xlu1 %v781_v25, %s3026_s13 }
 0x113   : > { %v2735_v26 = vpop.f32.mrf.mxu0  ;;  %v2751_v27 = vpop.f32.mrf.mxu1 }
 0x114   : > { %856 = vrot.lane.b32.xlu0 %v2732_v22, %s3027_s23 }
 0x115   : > { %v730_v28 = vpop.f32.mrf.mxu0  ;;  %v794_v29 = vpop.f32.mrf.mxu1 }
 0x117   : > { %v2736_v30 = vpop.f32.mrf.mxu0  ;;  %v2752_v31 = vpop.f32.mrf.mxu1 }
 0x118   : > { %933 = vrot.lane.b32.xlu0 %v2748_v23, %s3027_s23 }
 0x119   : > { %v733_v32 = vpop.f32.mrf.mxu0  ;;  %v797_v33 = vpop.f32.mrf.mxu1 }
 0x11b   : > { %v2739_v34 = vpop.f32.mrf.mxu0  ;;  %v2755_v35 = vpop.f32.mrf.mxu1 }
 0x11c   : > { %844 = vrot.lane.b32.xlu0 %v717_v24, %s3026_s13  ;;  %892 = vrot.lane.b32.xlu1 %v2739_v34, %s3025_s1 }
 0x11d   : > { %v746_v36 = vpop.f32.mrf.mxu0  ;;  %v810_v37 = vpop.f32.mrf.mxu1 }
 0x11e   : > { %885 = vst.msk [vmem:[#allocation2 + $0x8] sm:$0xff] %vm841_vm2, %v746_v36  ;;  %957 = vst.msk [vmem:[#allocation2 + $0x18] sm:$0xff] %vm841_vm2, %v810_v37 }
 0x11f   : > { %v2740_v38 = vpop.f32.mrf.mxu0  ;;  %v2756_v39 = vpop.f32.mrf.mxu1 }
 0x120   : > { %874 = vrot.lane.b32.xlu0 %v2735_v26, %s3028_s22  ;;  %964 = vrot.lane.b32.xlu1 %v2755_v35, %s3025_s1 }
 0x121   : > { %v813_v40 = vpop.f32.mrf.mxu1  ;;  %v749_v41 = vpop.f32.mrf.mxu0 }
 0x123   : > { %v2743_v42 = vpop.f32.mrf.mxu0  ;;  %v2759_v43 = vpop.f32.mrf.mxu1 }
 0x124   : > { %948 = vrot.lane.b32.xlu0 %v2751_v27, %s3028_s22  ;;  %897 = vrot.lane.b32.xlu1 %v2740_v38, %s3027_s23 }
 0x125   : > { %v762_v44 = vpop.f32.mrf.mxu0  ;;  %v826_v45 = vpop.f32.mrf.mxu1 }
 0x127   : > { %v2744_v46 = vpop.f32.mrf.mxu0  ;;  %v2760_v48 = vpop.f32.mrf.mxu1 }
 0x128   : > { %862 = vrot.lane.b32.xlu0 %v730_v28, %s3029_s12  ;;  %969 = vrot.lane.b32.xlu1 %v2756_v39, %s3027_s23 }
 0x129   : > { %v765_v47 = vpop.f32.mrf.mxu0  ;;  %v829_v49 = vpop.f32.mrf.mxu1 }
 0x12c   : > { %938 = vrot.lane.b32.xlu0 %v794_v29, %s3029_s12  ;;  %959 = vrot.lane.b32.xlu1 %v813_v40, %s3026_s13 }
 0x130   : > { %868 = vrot.lane.b32.xlu0 %v733_v32, %s3030_s25  ;;  %912 = vrot.lane.b32.xlu1 %v2743_v42, %s3028_s22 }
 0x134   : > { %943 = vrot.lane.b32.xlu0 %v797_v33, %s3030_s25  ;;  %984 = vrot.lane.b32.xlu1 %v2759_v43, %s3028_s22 }
 0x138   : > { %887 = vrot.lane.b32.xlu0 %v749_v41, %s3026_s13  ;;  %902 = vrot.lane.b32.xlu1 %v762_v44, %s3029_s12 }
 0x13c   : > { %880 = vrot.lane.b32.xlu0 %v2736_v30, %s3031_s27  ;;  %974 = vrot.lane.b32.xlu1 %v826_v45, %s3029_s12 }
 0x140   : > { %953 = vrot.lane.b32.xlu0 %v2752_v31, %s3031_s27  ;;  %917 = vrot.lane.b32.xlu1 %v2744_v46, %s3031_s27 }
 0x144   : > { %907 = vrot.lane.b32.xlu1 %v765_v47, %s3030_s25 }
 0x148   : > { %979 = vrot.lane.b32.xlu1 %v829_v49, %s3030_s25 }
 0x14c   : > { %989 = vrot.lane.b32.xlu1 %v2760_v48, %s3031_s27 }
 0x17e   : > { %v851_v50 = vpop.permute.xlu0 %850 }
 0x182   : > { %v929_v51 = vpop.permute.xlu0 %928 }
 0x184   : > { %v924_v52 = vpop.permute.xlu1 %923 }
 0x185   : > { %926 = vst.msk [vmem:[#allocation2 + $0x10] sm:$0xff] %vm847_vm3, %v924_v52 }
 0x186   : > { %v857_v53 = vpop.permute.xlu0 %856  ;;  %931 = vst.msk [vmem:[#allocation2 + $0x10] sm:$0xff] %vm853_vm4, %v929_v51 }
 0x18a   : > { %v934_v54 = vpop.permute.xlu0 %933 }
 0x18b   : > { %936 = vst.msk [vmem:[#allocation2 + $0x10] sm:$0xff] %vm859_vm5, %v934_v54 }
 0x18e   : > { %v845_v55 = vpop.permute.xlu0 %844  ;;  %v893_v56 = vpop.permute.xlu1 %892 }
 0x18f   : > { %848 = vst.msk [vmem:[#allocation2] sm:$0xff] %vm847_vm3, %v845_v55 }
 0x190   : > { %854 = vst.msk [vmem:[#allocation2] sm:$0xff] %vm853_vm4, %v851_v50 }
 0x191   : > { %860 = vst.msk [vmem:[#allocation2] sm:$0xff] %vm859_vm5, %v857_v53 }
 0x192   : > { %v875_v57 = vpop.permute.xlu0 %874  ;;  %v965_v58 = vpop.permute.xlu1 %964 }
 0x196   : > { %v949_v59 = vpop.permute.xlu0 %948  ;;  %v898_v60 = vpop.permute.xlu1 %897 }
 0x19a   : > { %v863_v61 = vpop.permute.xlu0 %862  ;;  %v970_v62 = vpop.permute.xlu1 %969 }
 0x19b   : > { %866 = vst.msk [vmem:[#allocation2] sm:$0xff] %vm865_vm6, %v863_v61 }
 0x19e   : > { %v939_v63 = vpop.permute.xlu0 %938  ;;  %v960_v0 = vpop.permute.xlu1 %959 }
 0x19f   : > { %941 = vst.msk [vmem:[#allocation2 + $0x10] sm:$0xff] %vm865_vm6, %v939_v63 }
 0x1a0   : > { %962 = vst.msk [vmem:[#allocation2 + $0x18] sm:$0xff] %vm847_vm3, %v960_v0 }
 0x1a1   : > { %967 = vst.msk [vmem:[#allocation2 + $0x18] sm:$0xff] %vm853_vm4, %v965_v58 }
 0x1a2   : > { %972 = vst.msk [vmem:[#allocation2 + $0x18] sm:$0xff] %vm859_vm5, %v970_v62  ;;  %v869_v1 = vpop.permute.xlu0 %868  ;;  %v913_v2 = vpop.permute.xlu1 %912 }
 0x1a3   : > { %872 = vst.msk [vmem:[#allocation2] sm:$0xff] %vm871_vm7, %v869_v1 }
 0x1a4   : > { %878 = vst.msk [vmem:[#allocation2] sm:$0xff] %vm877_vm8, %v875_v57 }
 0x1a6   : > { %v944_v3 = vpop.permute.xlu0 %943  ;;  %v985_v4 = vpop.permute.xlu1 %984 }
 0x1a7   : > { %946 = vst.msk [vmem:[#allocation2 + $0x10] sm:$0xff] %vm871_vm7, %v944_v3 }
 0x1a8   : > { %951 = vst.msk [vmem:[#allocation2 + $0x10] sm:$0xff] %vm877_vm8, %v949_v59 }
 0x1aa   : > { %v888_v5 = vpop.permute.xlu0 %887  ;;  %v903_v6 = vpop.permute.xlu1 %902 }
 0x1ab   : > { %890 = vst.msk [vmem:[#allocation2 + $0x8] sm:$0xff] %vm847_vm3, %v888_v5 }
 0x1ac   : > { %895 = vst.msk [vmem:[#allocation2 + $0x8] sm:$0xff] %vm853_vm4, %v893_v56 }
 0x1ad   : > { %900 = vst.msk [vmem:[#allocation2 + $0x8] sm:$0xff] %vm859_vm5, %v898_v60 }
 0x1ae   : > { %905 = vst.msk [vmem:[#allocation2 + $0x8] sm:$0xff] %vm865_vm6, %v903_v6  ;;  %v881_v7 = vpop.permute.xlu0 %880  ;;  %v975_v8 = vpop.permute.xlu1 %974 }
 0x1af   : > { %884 = vst.msk [vmem:[#allocation2] sm:$0xff] %vm883_vm9, %v881_v7 }
 0x1b0   : > { %977 = vst.msk [vmem:[#allocation2 + $0x18] sm:$0xff] %vm865_vm6, %v975_v8 }
 0x1b2   : > { %v954_v9 = vpop.permute.xlu0 %953  ;;  %v918_v10 = vpop.permute.xlu1 %917 }
 0x1b3   : > { %956 = vst.msk [vmem:[#allocation2 + $0x10] sm:$0xff] %vm883_vm9, %v954_v9 }
 0x1b6   : > { %v908_v11 = vpop.permute.xlu1 %907 }
 0x1b7   : > { %910 = vst.msk [vmem:[#allocation2 + $0x8] sm:$0xff] %vm871_vm7, %v908_v11 }
 0x1b8   : > { %915 = vst.msk [vmem:[#allocation2 + $0x8] sm:$0xff] %vm877_vm8, %v913_v2 }
 0x1b9   : > { %920 = vst.msk [vmem:[#allocation2 + $0x8] sm:$0xff] %vm883_vm9, %v918_v10 }
 0x1ba   : > { %v980_v12 = vpop.permute.xlu1 %979 }
 0x1bb   : > { %982 = vst.msk [vmem:[#allocation2 + $0x18] sm:$0xff] %vm871_vm7, %v980_v12 }
 0x1bc   : > { %987 = vst.msk [vmem:[#allocation2 + $0x18] sm:$0xff] %vm877_vm8, %v985_v4 }
 0x1be   : > { %v990_v13 = vpop.permute.xlu1 %989 }
 0x1bf   : > { %992 = vst.msk [vmem:[#allocation2 + $0x18] sm:$0xff] %vm883_vm9, %v990_v13 }
 0x1c0 PF: > { %v996_v14 = vld [vmem:[#allocation2 + $0x8] sm:$0xff]  ;;  %vm1007_vm10 = vcmask 1043456   ;;  %v995_v15 = vld [vmem:[#allocation2] sm:$0xff]  ;;  %v3032_v19 = vmov 0   ;;  %v997_v21 = vld [vmem:[#allocation2 + $0x10] sm:$0xff]  ;;  %vm1003_vm11 = vcmask 64512  }
 0x1c1   : > { %v993_v16 = vld [vmem:[%s3178_s26] sm:$0xff]  ;;  %v1000_v17 = vpack.c.bf16 %v996_v14, %v996_v14  ;;  %v999_v18 = vpack.c.bf16 %v995_v15, %v995_v15  ;;  %1052 = vmatprep.mubr.bf16.mxu0 %v3032_v19  ;;  %1093 = vmatprep.mubr.bf16.mxu1 %v3032_v19  ;;  %v1001_v23 = vpack.c.bf16 %v997_v21, %v997_v21  ;;  %s4052_s26 = smov 96   ;;  %s3034_s28 = smov 112   ;;  %vm3041_vm14 = vmmov 0  }
 0x1c2   : > { %v994_v25 = vpack.c.bf16 %v993_v16, %v993_v16  ;;  %s3035_s11 = smov 80   ;;  %s3036_s7 = smov 64   ;;  %vm1113_vm0 = vcmask 130048  }
 0x1c3   : > { %2628 = vmatprep.subr.msk.bf16.mxu0 %vm1007_vm10, %v1000_v17  ;;  %v1009_v24 = vsel %vm1007_vm10, %v999_v18, 0  ;;  %v1015_v26 = vsel %vm1007_vm10, %v1001_v23, 0  ;;  %s3037_s14 = smov 48   ;;  %s3038_s19 = smov 32  }
 0x1c4   : > { %1035 = vmatpush1.bf16.msra.mxu0 %v1009_v24  ;;  %s3039_s20 = smov 16   ;;  %s1464_s1 = sld [smem:[#allocation3]] }
 0x1c5   : > { %s2640_s13 = sld [smem:[#allocation3 + $0x1]] }
 0x1c6   : > { %v998_v20 = vld [vmem:[#allocation2 + $0x18] sm:$0xff]  ;;  %s2642_s23 = sld [smem:[#allocation3 + $0x2]] }
 0x1c7   : > { %v1002_v22 = vpack.c.bf16 %v998_v20, %v998_v20  ;;  %2629 = vmatmul.mubr.msk.bf16.vlgmr.msra.gmra.mxu0 %vm1003_vm11, %v994_v25  ;;  %s2656_s22 = sld [smem:[#allocation3 + $0x9]] }
 0x1c8   : > { %s3458_s12 = sld [smem:[#allocation3 + $0x3]] }
 0x1c9   : > { %2630 = vmatprep.subr.msk.bf16.mxu1 %vm1007_vm10, %v1002_v22  ;;  %s3461_s25 = sld [smem:[#allocation3 + $0x8]] }
 0x1ca   : > { %1076 = vmatpush1.bf16.msra.mxu1 %v1015_v26  ;;  %s3463_s27 = sld [smem:[#allocation3 + $0x10]] }
 0x1cb   : > { %s3465_s21 = sld [smem:[#allocation3 + $0x18]] }
 0x1cc   : > { %s3469_s29 = sld [smem:[#allocation3 + $0xb]] }
 0x1cd   : > { %2631 = vmatmul.mubr.msk.bf16.vlgmr.msra.gmra.mxu1 %vm1003_vm11, %v994_v25 }
 0x287   : > { %v3292_v27 = vpop.f32.mrf.mxu0 }
 0x288   : > { %1226 = vrot.lane.b32.xlu1 %v3292_v27, %s4052_s26  ;;  %1217 = vrot.lane.b32.xlu0 %v3292_v27, %s3034_s28  ;;  %v3304_v30 = vmul.f32 %v3292_v27, %v3292_v27 }
 0x289   : > { %v3300_v29 = vpop.f32.mrf.mxu0 }
 0x28a   : > { %v3362_v37 = vmul.f32 %v3300_v29, %v3300_v29 }
 0x28b   : > { %v1058_v32 = vpop.f32.mrf.mxu0 }
 0x28c   : > { %1234 = vrot.lane.b32.xlu0 %v3292_v27, %s3035_s11  ;;  %1230 = vrot.lane.b32.xlu1 %v3304_v30, %s4052_s26 }
 0x28d   : > { %v3298_v28 = vpop.f32.mrf.mxu1  ;;  %v1059_v34 = vpop.f32.mrf.mxu0 }
 0x28e   : > { %v3334_v36 = vmul.f32 %v3298_v28, %v3298_v28 }
 0x28f   : > { %v3306_v31 = vpop.f32.mrf.mxu1 }
 0x290   : > { %1242 = vrot.lane.b32.xlu0 %v3292_v27, %s3036_s7  ;;  %1238 = vrot.lane.b32.xlu1 %v3304_v30, %s3035_s11  ;;  %v3398_v38 = vmul.f32 %v3306_v31, %v3306_v31 }
 0x291   : > { %v1099_v33 = vpop.f32.mrf.mxu1 }
 0x293   : > { %v1100_v35 = vpop.f32.mrf.mxu1 }
 0x294   : > { %1250 = vrot.lane.b32.xlu0 %v3292_v27, %s3037_s14  ;;  %1246 = vrot.lane.b32.xlu1 %v3304_v30, %s3036_s7 }
 0x298   : > { %1258 = vrot.lane.b32.xlu0 %v3292_v27, %s3038_s19  ;;  %1254 = vrot.lane.b32.xlu1 %v3304_v30, %s3037_s14 }
 0x29c   : > { %1266 = vrot.lane.b32.xlu0 %v3292_v27, %s3039_s20  ;;  %1262 = vrot.lane.b32.xlu1 %v3304_v30, %s3038_s19 }
 0x2a0   : > { %1339 = vrot.lane.b32.xlu0 %v3298_v28, %s3034_s28  ;;  %1270 = vrot.lane.b32.xlu1 %v3304_v30, %s3039_s20 }
 0x2a4   : > { %1348 = vrot.lane.b32.xlu0 %v3298_v28, %s4052_s26  ;;  %1344 = vrot.lane.b32.xlu1 %v3334_v36, %s3034_s28 }
 0x2a8   : > { %1356 = vrot.lane.b32.xlu0 %v3298_v28, %s3035_s11  ;;  %1352 = vrot.lane.b32.xlu1 %v3334_v36, %s4052_s26 }
 0x2ac   : > { %1364 = vrot.lane.b32.xlu0 %v3298_v28, %s3036_s7  ;;  %1360 = vrot.lane.b32.xlu1 %v3334_v36, %s3035_s11 }
 0x2b0   : > { %1372 = vrot.lane.b32.xlu0 %v3298_v28, %s3037_s14  ;;  %1368 = vrot.lane.b32.xlu1 %v3334_v36, %s3036_s7 }
 0x2b4   : > { %1380 = vrot.lane.b32.xlu0 %v3298_v28, %s3038_s19  ;;  %1376 = vrot.lane.b32.xlu1 %v3334_v36, %s3037_s14 }
 0x2b8   : > { %1384 = vrot.lane.b32.xlu1 %v3334_v36, %s3038_s19  ;;  %1222 = vrot.lane.b32.xlu0 %v3304_v30, %s3034_s28 }
 0x2bc   : > { %1278 = vrot.lane.b32.xlu0 %v3300_v29, %s3034_s28  ;;  %1283 = vrot.lane.b32.xlu1 %v3362_v37, %s3034_s28 }
 0x2c0   : > { %1287 = vrot.lane.b32.xlu0 %v3300_v29, %s4052_s26  ;;  %1291 = vrot.lane.b32.xlu1 %v3362_v37, %s4052_s26 }
 0x2c4   : > { %1295 = vrot.lane.b32.xlu0 %v3300_v29, %s3035_s11  ;;  %1299 = vrot.lane.b32.xlu1 %v3362_v37, %s3035_s11 }
 0x2c8   : > { %1303 = vrot.lane.b32.xlu0 %v3300_v29, %s3036_s7  ;;  %1307 = vrot.lane.b32.xlu1 %v3362_v37, %s3036_s7 }
 0x2cc   : > { %1311 = vrot.lane.b32.xlu0 %v3300_v29, %s3037_s14  ;;  %1315 = vrot.lane.b32.xlu1 %v3362_v37, %s3037_s14 }
 0x2d0   : > { %1319 = vrot.lane.b32.xlu0 %v3300_v29, %s3038_s19  ;;  %1323 = vrot.lane.b32.xlu1 %v3362_v37, %s3038_s19 }
 0x2d4   : > { %1327 = vrot.lane.b32.xlu0 %v3300_v29, %s3039_s20  ;;  %1331 = vrot.lane.b32.xlu1 %v3362_v37, %s3039_s20 }
 0x2d8   : > { %1388 = vrot.lane.b32.xlu0 %v3298_v28, %s3039_s20  ;;  %1392 = vrot.lane.b32.xlu1 %v3334_v36, %s3039_s20 }
 0x2dc   : > { %1400 = vrot.lane.b32.xlu0 %v3306_v31, %s3034_s28  ;;  %1405 = vrot.lane.b32.xlu1 %v3398_v38, %s3034_s28 }
 0x2e0   : > { %1409 = vrot.lane.b32.xlu0 %v3306_v31, %s4052_s26  ;;  %1413 = vrot.lane.b32.xlu1 %v3398_v38, %s4052_s26 }
 0x2e4   : > { %1417 = vrot.lane.b32.xlu0 %v3306_v31, %s3035_s11  ;;  %1421 = vrot.lane.b32.xlu1 %v3398_v38, %s3035_s11 }
 0x2e8   : > { %1425 = vrot.lane.b32.xlu0 %v3306_v31, %s3036_s7  ;;  %1429 = vrot.lane.b32.xlu1 %v3398_v38, %s3036_s7 }
 0x2ec   : > { %1433 = vrot.lane.b32.xlu0 %v3306_v31, %s3037_s14  ;;  %1437 = vrot.lane.b32.xlu1 %v3398_v38, %s3037_s14 }
 0x2f0   : > { %1441 = vrot.lane.b32.xlu0 %v3306_v31, %s3038_s19  ;;  %1445 = vrot.lane.b32.xlu1 %v3398_v38, %s3038_s19 }
 0x2f4   : > { %1449 = vrot.lane.b32.xlu0 %v3306_v31, %s3039_s20  ;;  %1453 = vrot.lane.b32.xlu1 %v3398_v38, %s3039_s20 }
 0x2fa   : > { %v1227_v39 = vpop.permute.xlu1 %1226  ;;  %v1218_v40 = vpop.permute.xlu0 %1217 }
 0x2fb   : > { %v1220_v61 = vadd.f32 %v1218_v40, %v3292_v27 }
 0x2fd   : > { %v1229_v0 = vadd.f32 %v1227_v39, %v1220_v61 }
 0x2fe   : > { %v1235_v41 = vpop.permute.xlu0 %1234  ;;  %v1231_v42 = vpop.permute.xlu1 %1230 }
 0x2ff   : > { %v1237_v4 = vadd.f32 %v1235_v41, %v1229_v0 }
 0x302   : > { %v1243_v43 = vpop.permute.xlu0 %1242  ;;  %v1239_v44 = vpop.permute.xlu1 %1238 }
 0x303   : > { %v1245_v8 = vadd.f32 %v1243_v43, %v1237_v4 }
 0x306   : > { %v1251_v45 = vpop.permute.xlu0 %1250  ;;  %v1247_v46 = vpop.permute.xlu1 %1246 }
 0x307   : > { %v1253_v10 = vadd.f32 %v1251_v45, %v1245_v8 }
 0x30a   : > { %v1259_v47 = vpop.permute.xlu0 %1258  ;;  %v1255_v48 = vpop.permute.xlu1 %1254 }
 0x30b   : > { %v1261_v14 = vadd.f32 %v1259_v47, %v1253_v10 }
 0x30e   : > { %v1267_v49 = vpop.permute.xlu0 %1266  ;;  %v1263_v50 = vpop.permute.xlu1 %1262 }
 0x30f   : > { %v1269_v16 = vadd.f32 %v1267_v49, %v1261_v14 }
 0x311   : > { %v1274_v21 = vadd.f32 %v1269_v16, %v3300_v29 }
 0x312   : > { %v1340_v51 = vpop.permute.xlu0 %1339  ;;  %v1271_v52 = vpop.permute.xlu1 %1270 }
 0x316   : > { %v1349_v53 = vpop.permute.xlu0 %1348  ;;  %v1345_v54 = vpop.permute.xlu1 %1344 }
 0x31a   : > { %v3428_v55 = vpop.permute.xlu0 %1356  ;;  %v1353_v56 = vpop.permute.xlu1 %1352 }
 0x31e   : > { %v3430_v57 = vpop.permute.xlu0 %1364  ;;  %v1361_v58 = vpop.permute.xlu1 %1360 }
 0x322   : > { %v3432_v59 = vpop.permute.xlu0 %1372  ;;  %v1369_v60 = vpop.permute.xlu1 %1368 }
 0x326   : > { %v3435_v62 = vpop.permute.xlu0 %1380  ;;  %v3437_v63 = vpop.permute.xlu1 %1376 }
 0x32a   : > { %v3439_v1 = vpop.permute.xlu1 %1384  ;;  %v1223_v2 = vpop.permute.xlu0 %1222 }
 0x32b   : > { %v1225_v3 = vadd.f32 %v1223_v2, %v3304_v30 }
 0x32d   : > { %v1233_v5 = vadd.f32 %v1231_v42, %v1225_v3 }
 0x32e   : > { %v1279_v6 = vpop.permute.xlu0 %1278  ;;  %v1284_v7 = vpop.permute.xlu1 %1283 }
 0x32f   : > { %v1241_v9 = vadd.f32 %v1239_v44, %v1233_v5  ;;  %v1281_v25 = vadd.f32 %v1279_v6, %v1274_v21 }
 0x331   : > { %v1249_v11 = vadd.f32 %v1247_v46, %v1241_v9 }
 0x332   : > { %v1288_v12 = vpop.permute.xlu0 %1287  ;;  %v1292_v13 = vpop.permute.xlu1 %1291 }
 0x333   : > { %v1257_v15 = vadd.f32 %v1255_v48, %v1249_v11  ;;  %v1290_v30 = vadd.f32 %v1288_v12, %v1281_v25 }
 0x335   : > { %v1265_v17 = vadd.f32 %v1263_v50, %v1257_v15 }
 0x336   : > { %v1296_v18 = vpop.permute.xlu0 %1295  ;;  %v1300_v19 = vpop.permute.xlu1 %1299 }
 0x337   : > { %v1273_v20 = vadd.f32 %v1271_v52, %v1265_v17  ;;  %v1298_v35 = vadd.f32 %v1296_v18, %v1290_v30 }
 0x339   : > { %v1276_v22 = vadd.f32 %v3362_v37, %v1273_v20 }
 0x33a   : > { %v1304_v23 = vpop.permute.xlu0 %1303  ;;  %v1308_v24 = vpop.permute.xlu1 %1307 }
 0x33b   : > { %v1286_v26 = vadd.f32 %v1284_v7, %v1276_v22  ;;  %v1306_v40 = vadd.f32 %v1304_v23, %v1298_v35 }
 0x33d   : > { %v1294_v32 = vadd.f32 %v1292_v13, %v1286_v26 }
 0x33e   : > { %v1312_v33 = vpop.permute.xlu0 %1311  ;;  %v1316_v34 = vpop.permute.xlu1 %1315 }
 0x33f   : > { %v1302_v39 = vadd.f32 %v1300_v19, %v1294_v32  ;;  %v1314_v44 = vadd.f32 %v1312_v33, %v1306_v40 }
 0x341   : > { %v1310_v41 = vadd.f32 %v1308_v24, %v1302_v39 }
 0x342   : > { %v1320_v42 = vpop.permute.xlu0 %1319  ;;  %v1324_v43 = vpop.permute.xlu1 %1323 }
 0x343   : > { %v1318_v45 = vadd.f32 %v1316_v34, %v1310_v41  ;;  %v1322_v46 = vadd.f32 %v1320_v42, %v1314_v44 }
 0x345   : > { %v1326_v47 = vadd.f32 %v1324_v43, %v1318_v45  ;;  %v1465_v45 = vstv %s1464_s1  ;;  %s3475_s1 = sld [smem:[#allocation3 + $0x4]] }
 0x346   : > { %v1328_v48 = vpop.permute.xlu0 %1327  ;;  %v1332_v37 = vpop.permute.xlu1 %1331 }
 0x347   : > { %v1330_v49 = vadd.f32 %v1328_v48, %v1322_v46  ;;  %v1334_v50 = vadd.f32 %v1332_v37, %v1326_v47  ;;  %v1477_v46 = vstv %s2640_s13  ;;  %s3480_s13 = sld [smem:[#allocation3 + $0xd]] }
 0x349   : > { %v1335_v52 = vadd.f32 %v1330_v49, %v3298_v28  ;;  %v1337_v61 = vadd.f32 %v3334_v36, %v1334_v50  ;;  %v1497_v50 = vstv %s2642_s23  ;;  %s3493_s23 = sld [smem:[#allocation3 + $0xf]] }
 0x34a   : > { %v1389_v0 = vpop.permute.xlu0 %1388  ;;  %v1393_v2 = vpop.permute.xlu1 %1392 }
 0x34b   : > { %v1342_v3 = vadd.f32 %v1340_v51, %v1335_v52  ;;  %v1347_v4 = vadd.f32 %v1345_v54, %v1337_v61  ;;  %v1623_v61 = vstv %s2656_s22  ;;  %s2650_s22 = sld [smem:[#allocation3 + $0x6]] }
 0x34d   : > { %v1351_v5 = vadd.f32 %v1349_v53, %v1342_v3  ;;  %v1355_v6 = vadd.f32 %v1353_v56, %v1347_v4  ;;  %v1614_v3 = vstv %s3461_s25  ;;  %s2658_s25 = sld [smem:[#allocation3 + $0xa]] }
 0x34e   : > { %v1401_v7 = vpop.permute.xlu0 %1400  ;;  %v1406_v8 = vpop.permute.xlu1 %1405 }
 0x34f   : > { %v1359_v9 = vadd.f32 %v3428_v55, %v1351_v5  ;;  %v1363_v10 = vadd.f32 %v1361_v58, %v1355_v6  ;;  %v1742_v5 = vstv %s3463_s27  ;;  %v1870_v6 = vstv %s3465_s21  ;;  %s2652_s21 = sld [smem:[#allocation3 + $0x7]] }
 0x350   : > { %s2682_s27 = sld [smem:[#allocation3 + $0x16]] }
 0x351   : > { %v1367_v11 = vadd.f32 %v3430_v57, %v1359_v9  ;;  %v1371_v12 = vadd.f32 %v1369_v60, %v1363_v10  ;;  %v1537_v9 = vstv %s3475_s1  ;;  %s4067_s1 = smov 96  }
 0x352   : > { %v1410_v13 = vpop.permute.xlu0 %1409  ;;  %v1414_v14 = vpop.permute.xlu1 %1413 }
 0x353   : > { %v1375_v15 = vadd.f32 %v3432_v59, %v1367_v11  ;;  %v1379_v36 = vadd.f32 %v3437_v63, %v1371_v12 }
 0x355   : > { %v1383_v16 = vadd.f32 %v3435_v62, %v1375_v15  ;;  %v1387_v51 = vadd.f32 %v3439_v1, %v1379_v36 }
 0x356   : > { %v1418_v53 = vpop.permute.xlu0 %1417  ;;  %v1422_v54 = vpop.permute.xlu1 %1421 }
 0x357   : > { %v1391_v56 = vadd.f32 %v1389_v0, %v1383_v16  ;;  %v1395_v17 = vadd.f32 %v1393_v2, %v1387_v51  ;;  %v1517_v2 = vstv %s3458_s12  ;;  %v1691_v51 = vstv %s3480_s13  ;;  %s2678_s12 = sld [smem:[#allocation3 + $0x14]] }
 0x358   : > { %s2688_s13 = sld [smem:[#allocation3 + $0x19]] }
 0x359   : > { %v1396_v55 = vadd.f32 %v1391_v56, %v3306_v31  ;;  %v1398_v58 = vadd.f32 %v3398_v38, %v1395_v17 }
 0x35a   : > { %v1426_v57 = vpop.permute.xlu0 %1425  ;;  %v1430_v60 = vpop.permute.xlu1 %1429 }
 0x35b   : > { %v1403_v18 = vadd.f32 %v1401_v7, %v1396_v55  ;;  %v1408_v19 = vadd.f32 %v1406_v8, %v1398_v58  ;;  %v1657_v7 = vstv %s3469_s29  ;;  %s2674_s29 = sld [smem:[#allocation3 + $0x12]]  ;;  %v1725_v58 = vstv %s3493_s23 }
 0x35c   : > { %s2666_s23 = sld [smem:[#allocation3 + $0xe]] }
 0x35d   : > { %v1412_v20 = vadd.f32 %v1410_v13, %v1403_v18  ;;  %v1416_v59 = vadd.f32 %v1414_v14, %v1408_v19 }
 0x35e   : > { %v1434_v21 = vpop.permute.xlu0 %1433  ;;  %v1438_v63 = vpop.permute.xlu1 %1437 }
 0x35f   : > { %v1420_v22 = vadd.f32 %v1418_v53, %v1412_v20  ;;  %v1424_v62 = vadd.f32 %v1422_v54, %v1416_v59  ;;  %v1597_v59 = vstv %s2652_s21  ;;  %s2696_s21 = sld [smem:[#allocation3 + $0x1d]] }
 0x361   : > { %v1428_v23 = vadd.f32 %v1426_v57, %v1420_v22  ;;  %v1432_v1 = vadd.f32 %v1430_v60, %v1424_v62  ;;  %v1577_v60 = vstv %s2650_s22  ;;  %v1768_v19 = vstv %s2674_s29  ;;  %s2692_s22 = sld [smem:[#allocation3 + $0x1b]] }
 0x362   : > { %v1442_v24 = vpop.permute.xlu0 %1441  ;;  %v1446_v25 = vpop.permute.xlu1 %1445  ;;  %v1640_v62 = vstv %s2658_s25  ;;  %s2672_s29 = sld [smem:[#allocation3 + $0x11]] }
 0x363   : > { %v1436_v26 = vadd.f32 %v1434_v21, %v1428_v23  ;;  %v1440_v30 = vadd.f32 %v1438_v63, %v1432_v1  ;;  %v1802_v63 = vstv %s2678_s12  ;;  %v1836_v1 = vstv %s2682_s27  ;;  %s2676_s12 = sld [smem:[#allocation3 + $0x13]] }
 0x364   : > { %s2700_s25 = sld [smem:[#allocation3 + $0x1f]] }
 0x365   : > { %v1444_v32 = vadd.f32 %v1442_v24, %v1436_v26  ;;  %v1448_v33 = vadd.f32 %v1446_v25, %v1440_v30  ;;  %v1879_v30 = vstv %s2688_s13  ;;  %s2680_s27 = sld [smem:[#allocation3 + $0x15]] }
 0x366   : > { %v1450_v34 = vpop.permute.xlu0 %1449  ;;  %v1454_v38 = vpop.permute.xlu1 %1453  ;;  %s2690_s13 = sld [smem:[#allocation3 + $0x1a]] }
 0x367   : > { %v1452_v35 = vadd.f32 %v1450_v34, %v1444_v32  ;;  %v1456_v39 = vadd.f32 %v1454_v38, %v1448_v33  ;;  %v1708_v33 = vstv %s2666_s23  ;;  %v1913_v38 = vstv %s2692_s22  ;;  %s2694_s23 = sld [smem:[#allocation3 + $0x1c]] }
 0x368   : > { %s2698_s22 = sld [smem:[#allocation3 + $0x1e]] }
 0x369   : > { %v1457_v40 = vmul.f32 0.03125, %v1452_v35  ;;  %v1458_v41 = vmul.f32 0.03125, %v1456_v39  ;;  %v1751_v39 = vstv %s2672_s29  ;;  %s2641_s29 = sld [smem:[#allocation5 + $0x1]] }
 0x36b   : > { %v1459_v42 = vmul.f32 %v1457_v40, %v1457_v40  ;;  %1472 = vrot.lane.b32.xlu0 %v1457_v40, %s3039_s20  ;;  %v1463_v48 = vsub.f32 %v3292_v27, %v1457_v40  ;;  %v1612_v10 = vsub.f32 %v3300_v29, %v1457_v40  ;;  %v1740_v12 = vsub.f32 %v3298_v28, %v1457_v40 }
 0x36c   : > { %v1868_v14 = vsub.f32 %v3306_v31, %v1457_v40 }
 0x36d   : > { %v1460_v43 = vsub.f32 %v1458_v41, %v1459_v42  ;;  %v1947_v41 = vstv %s2696_s21  ;;  %s2643_s21 = sld [smem:[#allocation5 + $0x2]] }
 0x36f   : > { %v1461_v44 = vadd.f32 1e-05, %v1460_v43  ;;  %1492 = vrot.lane.b32.xlu0 %v1457_v40, %s3038_s19  ;;  %v1785_v43 = vstv %s2676_s12  ;;  %s2645_s12 = sld [smem:[#allocation5 + $0x3]] }
 0x371   : > { %2877 = vrsqrt.f32 %v1461_v44 }
 0x373   : > { %1512 = vrot.lane.b32.xlu0 %v1457_v40, %s3037_s14 }
 0x377   : > { %1532 = vrot.lane.b32.xlu0 %v1457_v40, %s3036_s7 }
 0x37b   : > { %1552 = vrot.lane.b32.xlu0 %v1457_v40, %s3035_s11 }
 0x37e   : > { %v3467_v47 = vpop.eup %2877 }
 0x37f   : > { %v1466_v37 = vmul.f32 %v3467_v47, %v1465_v45  ;;  %1572 = vrot.lane.b32.xlu0 %v1457_v40, %s4052_s26  ;;  %v1478_v49 = vmul.f32 %v3467_v47, %v1477_v46  ;;  %v1498_v0 = vmul.f32 %v3467_v47, %v1497_v50  ;;  %s3485_s26 = sld [smem:[#allocation3 + $0x5]]  ;;  %v1624_v4 = vmul.f32 %v3467_v47, %v1623_v61 }
 0x380   : > { %v1518_v8 = vmul.f32 %v3467_v47, %v1517_v2  ;;  %v1615_v11 = vmul.f32 %v3467_v47, %v1614_v3  ;;  %v1743_v13 = vmul.f32 %v3467_v47, %v1742_v5  ;;  %v1871_v15 = vmul.f32 %v3467_v47, %v1870_v6 }
 0x381   : > { %v3477_v52 = vmul.f32 %v1466_v37, %v1463_v48  ;;  %1480 = vrot.lane.b32.xlu1 %v1478_v49, %s3039_s20  ;;  %v1658_v36 = vmul.f32 %v3467_v47, %v1657_v7  ;;  %v1538_v56 = vmul.f32 %v3467_v47, %v1537_v9  ;;  %v1692_v55 = vmul.f32 %v3467_v47, %v1691_v51 }
 0x382   : > { %v3506_v16 = vmul.f32 %v1615_v11, %v1612_v10  ;;  %v3509_v53 = vmul.f32 %v1743_v13, %v1740_v12  ;;  %v3511_v54 = vmul.f32 %v1871_v15, %v1868_v14  ;;  %v1726_v18 = vmul.f32 %v3467_v47, %v1725_v58  ;;  %v1103_v13 = vld [vmem:[%s3188_s18 + $0x8] sm:$0xff]  ;;  %v1111_v14 = vld [vmem:[%s3195_s24] sm:$0xff]  ;;  %s2649_s24 = sld [smem:[#allocation5 + $0x5]] }
 0x383   : > { %1592 = vrot.lane.b32.xlu0 %v1457_v40, %s3034_s28  ;;  %v1578_v20 = vmul.f32 %v3467_v47, %v1577_v60  ;;  %v1769_v21 = vmul.f32 %v3467_v47, %v1768_v19  ;;  %v1598_v22 = vmul.f32 %v3467_v47, %v1597_v59  ;;  %v1803_v23 = vmul.f32 %v3467_v47, %v1802_v63 }
 0x384   : > { %v1641_v24 = vmul.f32 %v3467_v47, %v1640_v62  ;;  %v1837_v26 = vmul.f32 %v3467_v47, %v1836_v1  ;;  %v1880_v34 = vmul.f32 %v3467_v47, %v1879_v30  ;;  %v1709_v35 = vmul.f32 %v3467_v47, %v1708_v33 }
 0x385   : > { %1500 = vrot.lane.b32.xlu1 %v1498_v0, %s3038_s19  ;;  %v1557_v17 = vstv %s3485_s26  ;;  %s2662_s26 = sld [smem:[#allocation3 + $0xc]]  ;;  %v1914_v40 = vmul.f32 %v3467_v47, %v1913_v38  ;;  %v1752_v42 = vmul.f32 %v3467_v47, %v1751_v39  ;;  %v1948_v44 = vmul.f32 %v3467_v47, %v1947_v41 }
 0x386   : > { %v1558_v57 = vmul.f32 %v3467_v47, %v1557_v17  ;;  %v1981_v45 = vstv %s2700_s25  ;;  %v1786_v46 = vmul.f32 %v3467_v47, %v1785_v43  ;;  %v1819_v48 = vstv %s2680_s27  ;;  %s2651_s25 = sld [smem:[#allocation5 + $0x6]] }
 0x387   : > { %1626 = vrot.lane.b32.xlu0 %v1624_v4, %s3039_s20  ;;  %v1982_v37 = vmul.f32 %v3467_v47, %v1981_v45  ;;  %v1820_v49 = vmul.f32 %v3467_v47, %v1819_v48  ;;  %v1896_v0 = vstv %s2690_s13  ;;  %v1930_v3 = vstv %s2694_s23  ;;  %s3604_s27 = sld [smem:[#allocation5 + $0x9]] }
 0x388   : > { %v1897_v2 = vmul.f32 %v3467_v47, %v1896_v0  ;;  %v1931_v4 = vmul.f32 %v3467_v47, %v1930_v3  ;;  %v1964_v5 = vstv %s2698_s22  ;;  %v3040_v12 = vmov 0.0   ;;  %s3612_s13 = sld [smem:[#allocation5 + $0xb]] }
 0x389   : > { %1520 = vrot.lane.b32.xlu1 %v1518_v8, %s3037_s14  ;;  %v1965_v6 = vmul.f32 %v3467_v47, %v1964_v5  ;;  %2761 = vmatprep.subr.bf16.mxu0 %v3040_v12  ;;  %vm1105_vm13 = vcmp.eq.s32.totalorder %v1103_v13, 1  ;;  %v1112_v51 = vpack.c.bf16 %v1111_v14, %v1111_v14  ;;  %v1505_v19 = vstv %s2643_s21  ;;  %s3618_s23 = sld [smem:[#allocation5 + $0xa]] }
 0x38a   : > { %2767 = vmatprep.subr.bf16.mxu1 %v3040_v12  ;;  %2763 = vmatprep.mubr.msk.bf16.mxu0 %vm3041_vm14, %v3040_v12  ;;  %v1525_v62 = vstv %s2645_s12  ;;  %v1565_v39 = vstv %s2649_s24  ;;  %s3624_s22 = sld [smem:[#allocation5 + $0xd]] }
 0x38b   : > { %1660 = vrot.lane.b32.xlu0 %v1658_v36, %s3037_s14  ;;  %v1674_v25 = vstv %s2662_s26  ;;  %s2684_s26 = sld [smem:[#allocation3 + $0x17]]  ;;  %2769 = vmatprep.mubr.msk.bf16.mxu1 %vm3041_vm14, %v3040_v12 }
 0x38c   : > { %v1675_v32 = vmul.f32 %v3467_v47, %v1674_v25  ;;  %v1585_v45 = vstv %s2651_s25  ;;  %s3639_s21 = sld [smem:[#allocation5 + $0xf]] }
 0x38d   : > { %1540 = vrot.lane.b32.xlu1 %v1538_v56, %s3036_s7  ;;  %v1485_v56 = vstv %s2641_s29  ;;  %v1631_v0 = vstv %s3604_s27  ;;  %s3631_s29 = sld [smem:[#allocation5 + $0xc]] }
 0x38e   : > { %s3647_s12 = sld [smem:[#allocation5 + $0xe]] }
 0x38f   : > { %1694 = vrot.lane.b32.xlu0 %v1692_v55, %s3035_s11  ;;  %v3042_v55 = vmov 1.0|1.0   ;;  %s3665_s24 = sld [smem:[#allocation5 + $0x11]] }
 0x390   : > { %s3675_s25 = sld [smem:[#allocation5 + $0x14]] }
 0x391   : > { %1560 = vrot.lane.b32.xlu1 %v1558_v57, %s3035_s11  ;;  %v1853_v50 = vstv %s2684_s26  ;;  %s2653_s26 = sld [smem:[#allocation5 + $0x7]] }
 0x392   : > { %v1854_v61 = vmul.f32 %v3467_v47, %v1853_v50  ;;  %v1102_v47 = vld [vmem:[%s3188_s18] sm:$0xff]  ;;  %s2647_s18 = sld [smem:[#allocation5 + $0x4]] }
 0x393   : > { %1728 = vrot.lane.b32.xlu0 %v1726_v18, %s3034_s28  ;;  %vm1104_vm12 = vcmp.eq.s32.totalorder %v1102_v47, 1  ;;  %s3683_s27 = sld [smem:[#allocation5 + $0x13]] }
 0x394   : > { %vm2634_vm15 = vmpackc.low %vm1105_vm13, %vm1104_vm12 }
 0x395   : > { %1580 = vrot.lane.b32.xlu1 %v1578_v20, %s4067_s1  ;;  %2762 = vmatpush3.bf16.msk.msra.mxu0 %vm2634_vm15, %v3042_v55 }
 0x397   : > { %1771 = vrot.lane.b32.xlu0 %v1769_v21, %s3038_s19  ;;  %v1605_v3 = vstv %s2653_s26  ;;  %s3693_s26 = sld [smem:[#allocation5 + $0x16]] }
 0x398   : > { %2764 = vmatmul.mubr.msk.bf16.vlgmr.msra.gmra.mxu0 %vm1113_vm0, %v1112_v51  ;;  %v1545_v30 = vstv %s2647_s18  ;;  %v1648_v51 = vstv %s3618_s23  ;;  %s3657_s18 = sld [smem:[#allocation5 + $0x12]] }
 0x399   : > { %1600 = vrot.lane.b32.xlu1 %v1598_v22, %s3034_s28  ;;  %s3711_s23 = sld [smem:[#allocation5 + $0x19]] }
 0x39b   : > { %1805 = vrot.lane.b32.xlu0 %v1803_v23, %s3036_s7 }
 0x39d   : > { %1643 = vrot.lane.b32.xlu1 %v1641_v24, %s3038_s19 }
 0x39f   : > { %1839 = vrot.lane.b32.xlu0 %v1837_v26, %s4067_s1 }
 0x3a1   : > { %1677 = vrot.lane.b32.xlu1 %v1675_v32, %s3036_s7 }
 0x3a3   : > { %1882 = vrot.lane.b32.xlu0 %v1880_v34, %s3039_s20 }
 0x3a5   : > { %1711 = vrot.lane.b32.xlu1 %v1709_v35, %s4067_s1 }
 0x3a7   : > { %1916 = vrot.lane.b32.xlu0 %v1914_v40, %s3037_s14 }
 0x3a9   : > { %1754 = vrot.lane.b32.xlu1 %v1752_v42, %s3039_s20 }
 0x3ab   : > { %1950 = vrot.lane.b32.xlu0 %v1948_v44, %s3035_s11 }
 0x3ad   : > { %1788 = vrot.lane.b32.xlu1 %v1786_v46, %s3037_s14 }
 0x3af   : > { %1984 = vrot.lane.b32.xlu0 %v1982_v37, %s3034_s28 }
 0x3b1   : > { %1822 = vrot.lane.b32.xlu1 %v1820_v49, %s3035_s11 }
 0x3b5   : > { %1856 = vrot.lane.b32.xlu1 %v1854_v61, %s3034_s28 }
 0x3b9   : > { %1899 = vrot.lane.b32.xlu1 %v1897_v2, %s3038_s19 }
 0x3bd   : > { %1933 = vrot.lane.b32.xlu1 %v1931_v4, %s3036_s7 }
 0x3c1   : > { %1967 = vrot.lane.b32.xlu1 %v1965_v6, %s4067_s1 }
 0x3dd   : > { %v3562_v7 = vpop.permute.xlu0 %1472 }
 0x3de   : > { %v1475_v36 = vsub.f32 %v3292_v27, %v3562_v7  ;;  %v1621_v48 = vsub.f32 %v3300_v29, %v3562_v7 }
 0x3e1   : > { %v3564_v8 = vpop.permute.xlu0 %1492 }
 0x3e2   : > { %v1495_v18 = vsub.f32 %v3292_v27, %v3564_v8 }
 0x3e5   : > { %v3566_v9 = vpop.permute.xlu0 %1512 }
 0x3e6   : > { %v1515_v22 = vsub.f32 %v3292_v27, %v3566_v9  ;;  %v1655_v5 = vsub.f32 %v3300_v29, %v3566_v9 }
 0x3e9   : > { %v3568_v10 = vpop.permute.xlu0 %1532 }
 0x3ea   : > { %v1535_v26 = vsub.f32 %v3292_v27, %v3568_v10 }
 0x3ed   : > { %v3570_v11 = vpop.permute.xlu0 %1552 }
 0x3ee   : > { %v1555_v35 = vsub.f32 %v3292_v27, %v3570_v11 }
 0x3f1   : > { %v3577_v15 = vpop.permute.xlu0 %1572 }
 0x3f2   : > { %v1575_v44 = vsub.f32 %v3292_v27, %v3577_v15 }
 0x3f3   : > { %v1481_v17 = vpop.permute.xlu1 %1480 }
 0x3f4   : > { %v1483_v58 = vmul.f32 %v1481_v17, %v1475_v36  ;;  %v1665_v36 = vstv %s3612_s13  ;;  %v1689_v17 = vsub.f32 %v3300_v29, %v3570_v11  ;;  %s3701_s13 = sld [smem:[#allocation5 + $0x15]] }
 0x3f5   : > { %v3583_v57 = vpop.permute.xlu0 %1592 }
 0x3f6   : > { %v3585_v60 = vadd.f32 %v1485_v56, %v1483_v58  ;;  %v1595_v61 = vsub.f32 %v3292_v27, %v3583_v57  ;;  %v1638_v27 = vsub.f32 %v3300_v29, %v3564_v8 }
 0x3f7   : > { %v1501_v20 = vpop.permute.xlu1 %1500 }
 0x3f8   : > { %v1503_v59 = vmul.f32 %v1501_v20, %v1495_v18  ;;  %1488 = vrot.lane.b32.xlu1 %v3585_v60, %s3034_s28 }
 0x3f9   : > { %v1627_v21 = vpop.permute.xlu0 %1626 }
 0x3fa   : > { %v3592_v63 = vadd.f32 %v1505_v19, %v1503_v59  ;;  %v1629_v49 = vmul.f32 %v1627_v21, %v1621_v48  ;;  %v1672_v59 = vsub.f32 %v3300_v29, %v3568_v10  ;;  %v1699_v21 = vstv %s3624_s22  ;;  %s3719_s22 = sld [smem:[#allocation5 + $0x17]] }
 0x3fb   : > { %v1521_v23 = vpop.permute.xlu1 %1520  ;;  %v1759_v48 = vstv %s3665_s24  ;;  %s3765_s24 = sld [smem:[#allocation5 + $0x1f]] }
 0x3fc   : > { %v1523_v1 = vmul.f32 %v1521_v23, %v1515_v22  ;;  %1508 = vrot.lane.b32.xlu0 %v3592_v63, %s4067_s1  ;;  %v3637_v47 = vadd.f32 %v1631_v0, %v1629_v49  ;;  %v1682_v22 = vstv %s3631_s29  ;;  %v1723_v23 = vsub.f32 %v3300_v29, %v3583_v57  ;;  %s3729_s29 = sld [smem:[#allocation5 + $0x1b]] }
 0x3fd   : > { %v1661_v24 = vpop.permute.xlu0 %1660  ;;  %v1800_v49 = vsub.f32 %v3298_v28, %v3568_v10 }
 0x3fe   : > { %v3598_v25 = vadd.f32 %v1525_v62, %v1523_v1  ;;  %v1663_v13 = vmul.f32 %v1661_v24, %v1655_v5  ;;  %v1783_v5 = vsub.f32 %v3298_v28, %v3566_v9 }
 0x3ff   : > { %v1541_v32 = vpop.permute.xlu1 %1540 }
 0x400   : > { %v1543_v33 = vmul.f32 %v1541_v32, %v1535_v26  ;;  %1528 = vrot.lane.b32.xlu1 %v3598_v25, %s3035_s11  ;;  %v3655_v18 = vadd.f32 %v1665_v36, %v1663_v13  ;;  %v1706_v32 = vsub.f32 %v3300_v29, %v3577_v15  ;;  %v1793_v13 = vstv %s3683_s27  ;;  %s1468_s27 = sld [smem:[#allocation5]] }
 0x401   : > { %v1695_v34 = vpop.permute.xlu0 %1694  ;;  %v1834_v36 = vsub.f32 %v3298_v28, %v3577_v15 }
 0x402   : > { %v3606_v38 = vadd.f32 %v1545_v30, %v1543_v33  ;;  %v1697_v19 = vmul.f32 %v1695_v34, %v1689_v17  ;;  %v1733_v33 = vstv %s3639_s21  ;;  %s3737_s21 = sld [smem:[#allocation5 + $0x1a]] }
 0x403   : > { %v1561_v40 = vpop.permute.xlu1 %1560 }
 0x404   : > { %v1563_v41 = vmul.f32 %v1561_v40, %v1555_v35  ;;  %1548 = vrot.lane.b32.xlu0 %v3606_v38, %s3036_s7  ;;  %v3673_v24 = vadd.f32 %v1699_v21, %v1697_v19  ;;  %v1716_v35 = vstv %s3647_s12  ;;  %v1766_v40 = vsub.f32 %v3298_v28, %v3564_v8  ;;  %s3747_s12 = sld [smem:[#allocation5 + $0x1d]] }
 0x405   : > { %v1729_v42 = vpop.permute.xlu0 %1728  ;;  %v1844_v19 = vstv %s3693_s26  ;;  %v1827_v21 = vstv %s3701_s13  ;;  %s2671_s26 = sld [smem:[#allocation5 + $0x10]] }
 0x406   : > { %v3614_v43 = vadd.f32 %v1565_v39, %v1563_v41  ;;  %v1731_v26 = vmul.f32 %v1729_v42, %v1723_v23  ;;  %s2687_s13 = sld [smem:[#allocation5 + $0x18]] }
 0x407   : > { %v1581_v46 = vpop.permute.xlu1 %1580 }
 0x408   : > { %v1583_v37 = vmul.f32 %v1581_v46, %v1575_v44  ;;  %1568 = vrot.lane.b32.xlu1 %v3614_v43, %s3037_s14  ;;  %v3691_v42 = vadd.f32 %v1733_v33, %v1731_v26  ;;  %v1776_v46 = vstv %s3657_s18  ;;  %v1851_v33 = vsub.f32 %v3298_v28, %v3583_v57  ;;  %s3755_s18 = sld [smem:[#allocation5 + $0x1c]] }
 0x409   : > { %v1772_v2 = vpop.permute.xlu0 %1771 }
 0x40a   : > { %v3626_v50 = vadd.f32 %v1585_v45, %v1583_v37  ;;  %v1774_v29 = vmul.f32 %v1772_v2, %v1766_v40  ;;  %v1749_v45 = vsub.f32 %v3298_v28, %v3562_v7 }
 0x40b   : > { %v1601_v4 = vpop.permute.xlu1 %1600 }
 0x40c   : > { %v1603_v6 = vmul.f32 %v1601_v4, %v1595_v61  ;;  %1588 = vrot.lane.b32.xlu0 %v3626_v50, %s3038_s19  ;;  %v3709_v2 = vadd.f32 %v1776_v46, %v1774_v29  ;;  %v1921_v46 = vstv %s3729_s29  ;;  %s4069_s29 = scalar_lea.vmem %s4048_s10, %s3190_s8 }
 0x40d   : > { %v1806_v58 = vpop.permute.xlu0 %1805 }
 0x40e   : > { %v3641_v14 = vadd.f32 %v1605_v3, %v1603_v6  ;;  %v1808_v3 = vmul.f32 %v1806_v58, %v1800_v49  ;;  %v1810_v6 = vstv %s3675_s25  ;;  %v1817_v58 = vsub.f32 %v3298_v28, %v3570_v11  ;;  %s2699_s25 = sld [smem:[#allocation5 + $0x1e]] }
 0x40f   : > { %v1644_v56 = vpop.permute.xlu1 %1643  ;;  %v1945_v49 = vsub.f32 %v3306_v31, %v3570_v11 }
 0x410   : > { %v1646_v55 = vmul.f32 %v1644_v56, %v1638_v27  ;;  %1634 = vrot.lane.b32.xlu0 %v3637_v47, %s3034_s28  ;;  %1608 = vrot.lane.b32.xlu1 %v3641_v14, %s3039_s20  ;;  %v3727_v56 = vadd.f32 %v1810_v6, %v1808_v3  ;;  %v1955_v6 = vstv %s3747_s12 }
 0x411   : > { %v1840_v34 = vpop.permute.xlu0 %1839 }
 0x412   : > { %v3659_v20 = vadd.f32 %v1648_v51, %v1646_v55  ;;  %v1842_v17 = vmul.f32 %v1840_v34, %v1834_v36  ;;  %v1861_v34 = vstv %s3719_s22  ;;  %v1979_v36 = vsub.f32 %v3306_v31, %v3583_v57 }
 0x413   : > { %v1678_v62 = vpop.permute.xlu1 %1677 }
 0x414   : > { %v1680_v1 = vmul.f32 %v1678_v62, %v1672_v59  ;;  %1668 = vrot.lane.b32.xlu0 %v3655_v18, %s3035_s11  ;;  %1651 = vrot.lane.b32.xlu1 %v3659_v20, %s4067_s1  ;;  %v1877_v62 = vsub.f32 %v3306_v31, %v3562_v7  ;;  %v1887_v7 = vstv %s3711_s23 }
 0x415   : > { %v1883_v0 = vpop.permute.xlu0 %1882 }
 0x416   : > { %v3677_v30 = vadd.f32 %v1682_v22, %v1680_v1  ;;  %v3745_v1 = vadd.f32 %v1844_v19, %v1842_v17  ;;  %v1885_v26 = vmul.f32 %v1883_v0, %v1877_v62 }
 0x417   : > { %v1712_v39 = vpop.permute.xlu1 %1711 }
 0x418   : > { %v1714_v41 = vmul.f32 %v1712_v39, %v1706_v32  ;;  %1702 = vrot.lane.b32.xlu0 %v3673_v24, %s3037_s14  ;;  %1685 = vrot.lane.b32.xlu1 %v3677_v30, %s3036_s7  ;;  %v1911_v39 = vsub.f32 %v3306_v31, %v3566_v9  ;;  %v3763_v29 = vadd.f32 %v1887_v7, %v1885_v26 }
 0x419   : > { %v1917_v59 = vpop.permute.xlu0 %1916  ;;  %v1894_v9 = vsub.f32 %v3306_v31, %v3564_v8  ;;  %v1928_v8 = vsub.f32 %v3306_v31, %v3568_v10  ;;  %v1962_v10 = vsub.f32 %v3306_v31, %v3577_v15  ;;  %v1469_v31 = vstv %s1468_s27  ;;  %v3813_v15 = vld [vmem:[%s3205_s30] sm:$0xff]  ;;  %s2655_s30 = sld [smem:[#allocation5 + $0x8]] }
 0x41a   : > { %v3695_v44 = vadd.f32 %v1716_v35, %v1714_v41  ;;  %v1919_v28 = vmul.f32 %v1917_v59, %v1911_v39  ;;  %v1989_v59 = vstv %s3765_s24  ;;  %vm2015_vm1 = vcmp.eq.s32.totalorder %v3813_v15, 1 }
 0x41b   : > { %v1755_v37 = vpop.permute.xlu1 %1754  ;;  %v3817_v26 = vadd.f32 %v1469_v31, %v3477_v52  ;;  %vm2000_vm2 = vcmp.eq.s32.totalorder %v3813_v15, 0  ;;  %vm2029_vm3 = vcmp.eq.s32.totalorder %v3813_v15, 2  ;;  %vm2043_vm4 = vcmp.eq.s32.totalorder %v3813_v15, 3 }
 0x41c   : > { %v1757_v61 = vmul.f32 %v1755_v37, %v1749_v45  ;;  %1736 = vrot.lane.b32.xlu0 %v3691_v42, %s3039_s20  ;;  %1719 = vrot.lane.b32.xlu1 %v3695_v44, %s3038_s19  ;;  %v3779_v0 = vadd.f32 %v1921_v46, %v1919_v28  ;;  %vm2057_vm5 = vcmp.eq.s32.totalorder %v3813_v15, 4  ;;  %vm2071_vm6 = vcmp.eq.s32.totalorder %v3813_v15, 5 }
 0x41d   : > { %v1951_v41 = vpop.permute.xlu0 %1950  ;;  %vm2085_vm7 = vcmp.eq.s32.totalorder %v3813_v15, 6  ;;  %vm2099_vm8 = vcmp.eq.s32.totalorder %v3813_v15, 7  ;;  %vm2106_vm9 = vcmp.eq.s32.totalorder %v3813_v15, 8  ;;  %vm2117_vm10 = vcmp.eq.s32.totalorder %v3813_v15, 9 }
 0x41e   : > { %v3713_v4 = vadd.f32 %v1759_v48, %v1757_v61  ;;  %v1904_v48 = vstv %s3737_s21  ;;  %v1953_v3 = vmul.f32 %v1951_v41, %v1945_v49  ;;  %vm2128_vm11 = vcmp.eq.s32.totalorder %v3813_v15, 10 }
 0x41f   : > { %v1789_v27 = vpop.permute.xlu1 %1788  ;;  %vm2139_vm12 = vcmp.eq.s32.totalorder %v3813_v15, 11  ;;  %vm2150_vm13 = vcmp.eq.s32.totalorder %v3813_v15, 12  ;;  %vm2161_vm14 = vcmp.eq.s32.totalorder %v3813_v15, 13  ;;  %vm2172_vm15 = vcmp.eq.s32.totalorder %v3813_v15, 14 }
 0x420   : > { %v1791_v51 = vmul.f32 %v1789_v27, %v1783_v5  ;;  %1779 = vrot.lane.b32.xlu0 %v3709_v2, %s4067_s1  ;;  %1762 = vrot.lane.b32.xlu1 %v3713_v4, %s3034_s28  ;;  %v1938_v27 = vstv %s3755_s18  ;;  %v3793_v17 = vadd.f32 %v1955_v6, %v1953_v3 }
 0x422   : > { %v3731_v55 = vadd.f32 %v1793_v13, %v1791_v51  ;;  %v1985_v13 = vpop.permute.xlu0 %1984 }
 0x423   : > { %v1823_v22 = vpop.permute.xlu1 %1822 }
 0x424   : > { %v1825_v23 = vmul.f32 %v1823_v22, %v1817_v58  ;;  %1813 = vrot.lane.b32.xlu0 %v3727_v56, %s3036_s7  ;;  %1796 = vrot.lane.b32.xlu1 %v3731_v55, %s3035_s11  ;;  %v1987_v58 = vmul.f32 %v1985_v13, %v1979_v36  ;;  %v1618_v36 = vstv %s2655_s30 }
 0x426   : > { %v3749_v32 = vadd.f32 %v1827_v21, %v1825_v23  ;;  %v1972_v21 = vstv %s2699_s25  ;;  %v3804_v62 = vadd.f32 %v1989_v59, %v1987_v58 }
 0x427   : > { %v1857_v35 = vpop.permute.xlu1 %1856 }
 0x428   : > { %v1859_v40 = vmul.f32 %v1857_v35, %v1851_v33  ;;  %1847 = vrot.lane.b32.xlu0 %v3745_v1, %s3038_s19  ;;  %1830 = vrot.lane.b32.xlu1 %v3749_v32, %s3037_s14 }
 0x42a   : > { %v3767_v45 = vadd.f32 %v1861_v34, %v1859_v40  ;;  %v2001_v34 = vsel %vm2000_vm2, %v3817_v26, 0.0  ;;  %vm2190_vm2 = vcmp.eq.s32.totalorder %v3813_v15, 16 }
 0x42b   : > { %v1900_v37 = vpop.permute.xlu1 %1899 }
 0x42c   : > { %v1902_v61 = vmul.f32 %v1900_v37, %v1894_v9  ;;  %1890 = vrot.lane.b32.xlu0 %v3763_v29, %s3034_s28  ;;  %1864 = vrot.lane.b32.xlu1 %v3767_v45, %s3039_s20 }
 0x42e   : > { %v3781_v5 = vadd.f32 %v1904_v48, %v1902_v61 }
 0x42f   : > { %v1934_v11 = vpop.permute.xlu1 %1933 }
 0x430   : > { %v1936_v51 = vmul.f32 %v1934_v11, %v1928_v8  ;;  %1924 = vrot.lane.b32.xlu0 %v3779_v0, %s3035_s11  ;;  %1907 = vrot.lane.b32.xlu1 %v3781_v5, %s4067_s1 }
 0x432   : > { %v3795_v19 = vadd.f32 %v1938_v27, %v1936_v51 }
 0x433   : > { %v1968_v22 = vpop.permute.xlu1 %1967 }
 0x434   : > { %v1970_v57 = vmul.f32 %v1968_v22, %v1962_v10  ;;  %1958 = vrot.lane.b32.xlu0 %v3793_v17, %s3037_s14  ;;  %1941 = vrot.lane.b32.xlu1 %v3795_v19, %s3036_s7 }
 0x436   : > { %v3806_v23 = vadd.f32 %v1972_v21, %v1970_v57  ;;  %v3829_v21 = vadd.f32 %v1618_v36, %v3506_v16 }
 0x438   : > { %1992 = vrot.lane.b32.xlu0 %v3804_v62, %s3039_s20  ;;  %1975 = vrot.lane.b32.xlu1 %v3806_v23, %s3038_s19 }
 0x46a   : > { %v1489_v33 = vpop.permute.xlu1 %1488 }
 0x46b   : > { %v2016_v7 = vsel %vm2015_vm1, %v1489_v33, 0.0  ;;  %v1491_v48 = vmax.f32 %v3817_v26, %v1489_v33  ;;  %vm2183_vm1 = vcmp.eq.s32.totalorder %v3813_v15, 15 }
 0x46c   : > { %v2017_v35 = vadd.f32 %v2016_v7, %v2001_v34  ;;  %v2107_v34 = vsel %vm2106_vm9, %v3829_v21, 0.0  ;;  %vm2267_vm9 = vcmp.eq.s32.totalorder %v3813_v15, 23 }
 0x46e   : > { %v1509_v39 = vpop.permute.xlu0 %1508 }
 0x46f   : > { %v2030_v40 = vsel %vm2029_vm3, %v1509_v39, 0.0  ;;  %v1511_v61 = vmax.f32 %v1491_v48, %v1509_v39  ;;  %vm2201_vm3 = vcmp.eq.s32.totalorder %v3813_v15, 17 }
 0x470   : > { %v2031_v41 = vadd.f32 %v2030_v40, %v2017_v35 }
 0x472   : > { %v1529_v28 = vpop.permute.xlu1 %1528 }
 0x473   : > { %v2044_v9 = vsel %vm2043_vm4, %v1529_v28, 0.0  ;;  %v1531_v8 = vmax.f32 %v1511_v61, %v1529_v28  ;;  %vm2212_vm4 = vcmp.eq.s32.totalorder %v3813_v15, 18 }
 0x474   : > { %v2045_v46 = vadd.f32 %v2044_v9, %v2031_v41 }
 0x476   : > { %v1549_v52 = vpop.permute.xlu0 %1548 }
 0x477   : > { %v2058_v37 = vsel %vm2057_vm5, %v1549_v52, 0.0  ;;  %v1551_v27 = vmax.f32 %v1531_v8, %v1549_v52  ;;  %vm2223_vm5 = vcmp.eq.s32.totalorder %v3813_v15, 19 }
 0x478   : > { %v2059_v49 = vadd.f32 %v2058_v37, %v2045_v46 }
 0x47a   : > { %v1569_v3 = vpop.permute.xlu1 %1568 }
 0x47b   : > { %v2072_v6 = vsel %vm2071_vm6, %v1569_v3, 0.0  ;;  %v1571_v51 = vmax.f32 %v1551_v27, %v1569_v3  ;;  %vm2234_vm6 = vcmp.eq.s32.totalorder %v3813_v15, 20 }
 0x47c   : > { %v2073_v13 = vadd.f32 %v2072_v6, %v2059_v49 }
 0x47e   : > { %v1589_v11 = vpop.permute.xlu0 %1588 }
 0x47f   : > { %v2086_v58 = vsel %vm2085_vm7, %v1589_v11, 0.0  ;;  %v1591_v59 = vmax.f32 %v1571_v51, %v1589_v11  ;;  %v1746_v51 = vstv %s2671_s26  ;;  %vm2245_vm7 = vcmp.eq.s32.totalorder %v3813_v15, 21 }
 0x480   : > { %v2087_v10 = vadd.f32 %v2086_v58, %v2073_v13 }
 0x482   : > { %v1635_v22 = vpop.permute.xlu0 %1634  ;;  %v1609_v57 = vpop.permute.xlu1 %1608 }
 0x483   : > { %v1611_v31 = vmax.f32 %v1591_v59, %v1609_v57  ;;  %v2100_v33 = vsel %vm2099_vm8, %v1609_v57, 0.0  ;;  %v2118_v16 = vsel %vm2117_vm10, %v1635_v22, 0.0  ;;  %vm2256_vm8 = vcmp.eq.s32.totalorder %v3813_v15, 22 }
 0x484   : > { %v2101_v7 = vadd.f32 %v2100_v33, %v2087_v10  ;;  %vm2274_vm10 = vcmp.eq.s32.totalorder %v3813_v15, 24 }
 0x485   : > { %v1620_v35 = vmax.f32 %v1611_v31, %v3829_v21  ;;  %v3842_v31 = vadd.f32 %v1746_v51, %v3509_v53 }
 0x486   : > { %v2108_v39 = vadd.f32 %v2107_v34, %v2101_v7  ;;  %v1669_v40 = vpop.permute.xlu0 %1668  ;;  %v1652_v41 = vpop.permute.xlu1 %1651 }
 0x487   : > { %v1637_v28 = vmax.f32 %v1620_v35, %v1635_v22  ;;  %v2129_v52 = vsel %vm2128_vm11, %v1652_v41, 0.0  ;;  %v2140_v61 = vsel %vm2139_vm12, %v1669_v40, 0.0  ;;  %vm2285_vm11 = vcmp.eq.s32.totalorder %v3813_v15, 25 }
 0x488   : > { %v2119_v9 = vadd.f32 %v2118_v16, %v2108_v39  ;;  %vm2296_vm12 = vcmp.eq.s32.totalorder %v3813_v15, 26 }
 0x489   : > { %v1654_v46 = vmax.f32 %v1637_v28, %v1652_v41  ;;  %v2191_v41 = vsel %vm2190_vm2, %v3842_v31, 0.0  ;;  %vm1211_vm2 = vcmp.ne.s32.totalorder %v3813_v15, 4294967295 }
 0x48a   : > { %v2130_v48 = vadd.f32 %v2129_v52, %v2119_v9  ;;  %v1703_v37 = vpop.permute.xlu0 %1702  ;;  %v1686_v49 = vpop.permute.xlu1 %1685 }
 0x48b   : > { %v1671_v3 = vmax.f32 %v1654_v46, %v1669_v40  ;;  %v2151_v13 = vsel %vm2150_vm13, %v1686_v49, 0.0  ;;  %v2162_v58 = vsel %vm2161_vm14, %v1703_v37, 0.0  ;;  %vm2307_vm13 = vcmp.eq.s32.totalorder %v3813_v15, 27 }
 0x48c   : > { %v2141_v8 = vadd.f32 %v2140_v61, %v2130_v48  ;;  %vm2318_vm14 = vcmp.eq.s32.totalorder %v3813_v15, 28 }
 0x48d   : > { %v1688_v6 = vmax.f32 %v1671_v3, %v1686_v49 }
 0x48e   : > { %v2152_v27 = vadd.f32 %v2151_v13, %v2141_v8  ;;  %v1737_v11 = vpop.permute.xlu0 %1736  ;;  %v1720_v36 = vpop.permute.xlu1 %1719 }
 0x48f   : > { %v1705_v10 = vmax.f32 %v1688_v6, %v1703_v37  ;;  %v2173_v57 = vsel %vm2172_vm15, %v1720_v36, 0.0  ;;  %v2184_v35 = vsel %vm2183_vm1, %v1737_v11, 0.0  ;;  %vm2329_vm15 = vcmp.eq.s32.totalorder %v3813_v15, 29 }
 0x490   : > { %v2163_v59 = vadd.f32 %v2162_v58, %v2152_v27  ;;  %v1874_v58 = vstv %s2687_s13 }
 0x491   : > { %v1722_v22 = vmax.f32 %v1705_v10, %v1720_v36 }
 0x492   : > { %v2174_v33 = vadd.f32 %v2173_v57, %v2163_v59  ;;  %v1780_v7 = vpop.permute.xlu0 %1779  ;;  %v1763_v34 = vpop.permute.xlu1 %1762 }
 0x493   : > { %v1739_v39 = vmax.f32 %v1722_v22, %v1737_v11  ;;  %v2202_v52 = vsel %vm2201_vm3, %v1763_v34, 0.0  ;;  %v2213_v37 = vsel %vm2212_vm4, %v1780_v7, 0.0  ;;  %vm2340_vm4 = vcmp.eq.s32.totalorder %v3813_v15, 30 }
 0x494   : > { %v2185_v40 = vadd.f32 %v2184_v35, %v2174_v33 }
 0x495   : > { %v1748_v16 = vmax.f32 %v1739_v39, %v3842_v31 }
 0x496   : > { %v2192_v28 = vadd.f32 %v2191_v41, %v2185_v40  ;;  %v1814_v9 = vpop.permute.xlu0 %1813  ;;  %v1797_v53 = vpop.permute.xlu1 %1796 }
 0x497   : > { %v1765_v46 = vmax.f32 %v1748_v16, %v1763_v34  ;;  %v2224_v13 = vsel %vm2223_vm5, %v1797_v53, 0.0  ;;  %v2235_v11 = vsel %vm2234_vm6, %v1814_v9, 0.0  ;;  %v3855_v34 = vadd.f32 %v1874_v58, %v3511_v54 }
 0x498   : > { %v2203_v48 = vadd.f32 %v2202_v52, %v2192_v28  ;;  %vm2351_vm5 = vcmp.eq.s32.totalorder %v3813_v15, 31 }
 0x499   : > { %v1782_v49 = vmax.f32 %v1765_v46, %v1780_v7 }
 0x49a   : > { %v2214_v61 = vadd.f32 %v2213_v37, %v2203_v48  ;;  %v1848_v3 = vpop.permute.xlu0 %1847  ;;  %v1831_v8 = vpop.permute.xlu1 %1830 }
 0x49b   : > { %v1799_v6 = vmax.f32 %v1782_v49, %v1797_v53  ;;  %v2246_v22 = vsel %vm2245_vm7, %v1831_v8, 0.0  ;;  %v2257_v7 = vsel %vm2256_vm8, %v1848_v3, 0.0 }
 0x49c   : > { %v2225_v27 = vadd.f32 %v2224_v13, %v2214_v61 }
 0x49d   : > { %v1816_v36 = vmax.f32 %v1799_v6, %v1814_v9  ;;  %v2275_v9 = vsel %vm2274_vm10, %v3855_v34, 0.0 }
 0x49e   : > { %v2236_v51 = vadd.f32 %v2235_v11, %v2225_v27  ;;  %v1865_v10 = vpop.permute.xlu1 %1864  ;;  %v1891_v33 = vpop.permute.xlu0 %1890 }
 0x49f   : > { %v1833_v59 = vmax.f32 %v1816_v36, %v1831_v8  ;;  %v2268_v41 = vsel %vm2267_vm9, %v1865_v10, 0.0  ;;  %v2286_v54 = vsel %vm2285_vm11, %v1891_v33, 0.0 }
 0x4a0   : > { %v2247_v57 = vadd.f32 %v2246_v22, %v2236_v51 }
 0x4a1   : > { %v1850_v35 = vmax.f32 %v1833_v59, %v1848_v3 }
 0x4a2   : > { %v2258_v39 = vadd.f32 %v2257_v7, %v2247_v57  ;;  %v1908_v28 = vpop.permute.xlu1 %1907  ;;  %v1925_v52 = vpop.permute.xlu0 %1924 }
 0x4a3   : > { %v1867_v40 = vmax.f32 %v1850_v35, %v1865_v10  ;;  %v2297_v61 = vsel %vm2296_vm12, %v1908_v28, 0.0  ;;  %v2308_v6 = vsel %vm2307_vm13, %v1925_v52, 0.0 }
 0x4a4   : > { %v2269_v16 = vadd.f32 %v2268_v41, %v2258_v39  ;;  %v2876_v39 = vld [vmem:[%s4044_s6] sm:$0xff]  }
 0x4a5   : > { %v1876_v53 = vmax.f32 %v1867_v40, %v3855_v34  ;;  %v1151_v40 = vpop.f32.mrf.mxu0  ;;  %2768 = vmatpush3.bf16.msra.mxu1 %v2876_v39 }
 0x4a6   : > { %v2276_v46 = vadd.f32 %v2275_v9, %v2269_v16  ;;  %v1942_v8 = vpop.permute.xlu1 %1941  ;;  %v1959_v27 = vpop.permute.xlu0 %1958  ;;  %v1157_v41 = vpack.c.bf16 %v1151_v40, %v1151_v40 }
 0x4a7   : > { %v1893_v48 = vmax.f32 %v1876_v53, %v1891_v33  ;;  %v2319_v51 = vsel %vm2318_vm14, %v1942_v8, 0.0  ;;  %v2330_v10 = vsel %vm2329_vm15, %v1959_v27, 0.0  ;;  %v2765_v16 = vpop.f32.mrf.mxu0 }
 0x4a8   : > { %v2287_v37 = vadd.f32 %v2286_v54, %v2276_v46  ;;  %2770 = vmatmul.mubr.msk.bf16.vlgmr.msra.gmra.mxu1 %vm1113_vm0, %v1157_v41 }
 0x4a9   : > { %v1910_v49 = vmax.f32 %v1893_v48, %v1908_v28  ;;  %v1154_v28 = vpop.f32.mrf.mxu0 }
 0x4aa   : > { %v2298_v3 = vadd.f32 %v2297_v61, %v2287_v37  ;;  %v3865_v22 = vpop.permute.xlu1 %1975  ;;  %v3870_v7 = vpop.permute.xlu0 %1992 }
 0x4ab   : > { %v1927_v13 = vmax.f32 %v1910_v49, %v1925_v52  ;;  %v2766_v9 = vpop.f32.mrf.mxu0 }
 0x4ac   : > { %v2309_v11 = vadd.f32 %v2308_v6, %v2298_v3 }
 0x4ad   : > { %v1944_v36 = vmax.f32 %v1927_v13, %v1942_v8 }
 0x4ae   : > { %v2320_v58 = vadd.f32 %v2319_v51, %v2309_v11 }
 0x4af   : > { %v1961_v59 = vmax.f32 %v1944_v36, %v1959_v27 }
 0x4b0   : > { %v3867_v57 = vadd.f32 %v2330_v10, %v2320_v58 }
 0x4b1   : > { %v1978_v33 = vmax.f32 %v1961_v59, %v3865_v22 }
 0x4b3   : > { %v3873_v35 = vmax.f32 %v1978_v33, %v3870_v7 }
 0x4b5   : > { %2018 = vrot.lane.b32.xlu0 %v3873_v35, %s3038_s19  ;;  %2004 = vrot.lane.b32.xlu1 %v3873_v35, %s3039_s20 }
 0x4b9   : > { %2046 = vrot.lane.b32.xlu0 %v3873_v35, %s3036_s7  ;;  %2032 = vrot.lane.b32.xlu1 %v3873_v35, %s3037_s14 }
 0x4bd   : > { %2074 = vrot.lane.b32.xlu0 %v3873_v35, %s4067_s1  ;;  %2060 = vrot.lane.b32.xlu1 %v3873_v35, %s3035_s11 }
 0x4c1   : > { %2088 = vrot.lane.b32.xlu1 %v3873_v35, %s3034_s28 }
 0x527   : > { %v3893_v53 = vpop.permute.xlu0 %2018  ;;  %v3895_v46 = vpop.permute.xlu1 %2004 }
 0x528   : > { %v2021_v52 = vsub.f32 %v3592_v63, %v3893_v53  ;;  %v2007_v54 = vsub.f32 %v3585_v60, %v3895_v46  ;;  %v2109_v11 = vsub.f32 %v3637_v47, %v3895_v46 }
 0x52a   : > { %v2022_v48 = vmul.f32 1.442695, %v2021_v52  ;;  %v2008_v49 = vmul.f32 1.442695, %v2007_v54 }
 0x52b   : > { %v3901_v37 = vpop.permute.xlu0 %2046  ;;  %v3905_v3 = vpop.permute.xlu1 %2032 }
 0x52c   : > { %2879 = vpow2.f32 %v2022_v48  ;;  %v2049_v61 = vsub.f32 %v3606_v38, %v3901_v37  ;;  %v2035_v6 = vsub.f32 %v3598_v25, %v3905_v3  ;;  %v2110_v25 = vmul.f32 1.442695, %v2109_v11 }
 0x52d   : > { %2881 = vpow2.f32 %v2008_v49  ;;  %v2131_v10 = vsub.f32 %v3655_v18, %v3905_v3 }
 0x52e   : > { %v2050_v8 = vmul.f32 1.442695, %v2049_v61  ;;  %v2036_v60 = vmul.f32 1.442695, %v2035_v6  ;;  %v2226_v61 = vsub.f32 %v3727_v56, %v3901_v37  ;;  %v2215_v6 = vsub.f32 %v3731_v55, %v3905_v3 }
 0x52f   : > { %v3909_v13 = vpop.permute.xlu0 %2074  ;;  %v3911_v63 = vpop.permute.xlu1 %2060  ;;  %v2132_v33 = vmul.f32 1.442695, %v2131_v10  ;;  %v2277_v56 = vsub.f32 %v3763_v29, %v3895_v46  ;;  %v2299_v10 = vsub.f32 %v3779_v0, %v3905_v3 }
 0x530   : > { %2883 = vpow2.f32 %v2050_v8  ;;  %v2077_v27 = vsub.f32 %v3626_v50, %v3909_v13  ;;  %v2063_v36 = vsub.f32 %v3614_v43, %v3911_v63  ;;  %v2120_v43 = vsub.f32 %v3659_v20, %v3893_v53 }
 0x531   : > { %2885 = vpow2.f32 %v2036_v60  ;;  %v2153_v39 = vsub.f32 %v3673_v24, %v3911_v63  ;;  %v2204_v24 = vsub.f32 %v3709_v2, %v3893_v53  ;;  %v2164_v52 = vsub.f32 %v3695_v44, %v3909_v13 }
 0x532   : > { %v2078_v38 = vmul.f32 1.442695, %v2077_v27  ;;  %v2064_v59 = vmul.f32 1.442695, %v2063_v36  ;;  %v2121_v18 = vmul.f32 1.442695, %v2120_v43  ;;  %v2237_v55 = vsub.f32 %v3749_v32, %v3911_v63 }
 0x533   : > { %v3919_v58 = vpop.permute.xlu1 %2088  ;;  %v2154_v16 = vmul.f32 1.442695, %v2153_v39  ;;  %v2205_v48 = vmul.f32 1.442695, %v2204_v24  ;;  %v2165_v8 = vmul.f32 1.442695, %v2164_v52  ;;  %v2288_v32 = vsub.f32 %v3781_v5, %v3893_v53 }
 0x534   : > { %2887 = vpow2.f32 %v2078_v38  ;;  %v2091_v50 = vsub.f32 %v3641_v14, %v3919_v58  ;;  %v2142_v14 = vsub.f32 %v3677_v30, %v3901_v37  ;;  %v2175_v20 = vsub.f32 %v3691_v42, %v3919_v58 }
 0x535   : > { %2889 = vpow2.f32 %v2110_v25  ;;  %v2193_v42 = vsub.f32 %v3713_v4, %v3895_v46  ;;  %v2227_v27 = vmul.f32 1.442695, %v2226_v61  ;;  %v2248_v4 = vsub.f32 %v3745_v1, %v3909_v13 }
 0x536   : > { %2891 = vpow2.f32 %v2064_v59  ;;  %v2092_v40 = vmul.f32 1.442695, %v2091_v50  ;;  %v2143_v9 = vmul.f32 1.442695, %v2142_v14  ;;  %v2176_v54 = vmul.f32 1.442695, %v2175_v20 }
 0x537   : > { %2893 = vpow2.f32 %v2132_v33  ;;  %v2194_v44 = vmul.f32 1.442695, %v2193_v42  ;;  %v2216_v38 = vmul.f32 1.442695, %v2215_v6  ;;  %v2278_v1 = vmul.f32 1.442695, %v2277_v56 }
 0x538   : > { %2895 = vpow2.f32 %v2092_v40  ;;  %v2238_v29 = vmul.f32 1.442695, %v2237_v55  ;;  %v2259_v46 = vsub.f32 %v3767_v45, %v3919_v58  ;;  %v2321_v0 = vsub.f32 %v3793_v17, %v3911_v63 }
 0x539   : > { %v2880_v51 = vpop.eup %2879  ;;  %2897 = vpow2.f32 %v2121_v18  ;;  %v2289_v45 = vmul.f32 1.442695, %v2288_v32  ;;  %v2310_v39 = vsub.f32 %v3795_v19, %v3901_v37  ;;  %v2343_v53 = vsub.f32 %v3804_v62, %v3919_v58 }
 0x53a   : > { %2025 = vrot.lane.b32.xlu1 %v2880_v51, %s4067_s1  ;;  %v2882_v47 = vpop.eup %2881  ;;  %2899 = vpow2.f32 %v2154_v16  ;;  %v2249_v51 = vmul.f32 1.442695, %v2248_v4  ;;  %v2260_v3 = vmul.f32 1.442695, %v2259_v46  ;;  %v2322_v5 = vmul.f32 1.442695, %v2321_v0 }
 0x53b   : > { %2011 = vrot.lane.b32.xlu0 %v2882_v47, %s3034_s28  ;;  %2901 = vpow2.f32 %v2143_v9  ;;  %v2300_v47 = vmul.f32 1.442695, %v2299_v10  ;;  %v2311_v17 = vmul.f32 1.442695, %v2310_v39  ;;  %v2332_v18 = vsub.f32 %v3806_v23, %v3909_v13 }
 0x53c   : > { %2903 = vpow2.f32 %v2176_v54  ;;  %v2344_v19 = vmul.f32 1.442695, %v2343_v53  ;;  %v1996_v61 = vsub.f32 %v3817_v26, %v3873_v35 }
 0x53d   : > { %v2884_v41 = vpop.eup %2883  ;;  %2905 = vpow2.f32 %v2205_v48  ;;  %v2333_v58 = vmul.f32 1.442695, %v2332_v18 }
 0x53e   : > { %2053 = vrot.lane.b32.xlu1 %v2884_v41, %s3036_s7  ;;  %v2886_v28 = vpop.eup %2885  ;;  %2907 = vpow2.f32 %v2165_v8  ;;  %v1997_v8 = vmul.f32 1.442695, %v1996_v61 }
 0x53f   : > { %2039 = vrot.lane.b32.xlu0 %v2886_v28, %s3035_s11  ;;  %2909 = vpow2.f32 %v2194_v44 }
 0x540   : > { %2911 = vpow2.f32 %v2227_v27  ;;  %v2102_v27 = vsub.f32 %v3829_v21, %v3873_v35 }
 0x541   : > { %v2888_v30 = vpop.eup %2887  ;;  %2913 = vpow2.f32 %v2216_v38 }
 0x542   : > { %2081 = vrot.lane.b32.xlu1 %v2888_v30, %s3038_s19  ;;  %v2890_v49 = vpop.eup %2889  ;;  %2915 = vpow2.f32 %v2249_v51 }
 0x543   : > { %v2892_v2 = vpop.eup %2891  ;;  %2917 = vpow2.f32 %v2278_v1  ;;  %v2186_v1 = vsub.f32 %v3842_v31, %v3873_v35  ;;  %v2270_v31 = vsub.f32 %v3855_v34, %v3873_v35 }
 0x544   : > { %2067 = vrot.lane.b32.xlu0 %v2892_v2, %s3037_s14  ;;  %v2894_v60 = vpop.eup %2893  ;;  %2919 = vpow2.f32 %v2238_v29 }
 0x545   : > { %v2896_v11 = vpop.eup %2895  ;;  %2921 = vpow2.f32 %v2300_v47 }
 0x546   : > { %2113 = vrot.lane.b32.xlu1 %v2890_v49, %s3034_s28  ;;  %v2898_v36 = vpop.eup %2897  ;;  %2923 = vpow2.f32 %v2260_v3 }
 0x547   : > { %v2900_v25 = vpop.eup %2899  ;;  %2925 = vpow2.f32 %v2289_v45 }
 0x548   : > { %2095 = vrot.lane.b32.xlu0 %v2896_v11, %s3039_s20  ;;  %v2902_v59 = vpop.eup %2901  ;;  %2927 = vpow2.f32 %v2322_v5  ;;  %v2103_v11 = vmul.f32 1.442695, %v2102_v27 }
 0x549   : > { %v2904_v50 = vpop.eup %2903  ;;  %2929 = vpow2.f32 %v2311_v17 }
 0x54a   : > { %2135 = vrot.lane.b32.xlu1 %v2894_v60, %s3035_s11  ;;  %v2906_v43 = vpop.eup %2905  ;;  %2931 = vpow2.f32 %v2344_v19  ;;  %v2271_v19 = vmul.f32 1.442695, %v2270_v31 }
 0x54b   : > { %v2908_v33 = vpop.eup %2907  ;;  %2933 = vpow2.f32 %v2333_v58 }
 0x54c   : > { %2124 = vrot.lane.b32.xlu0 %v2898_v36, %s4067_s1  ;;  %v2910_v40 = vpop.eup %2909  ;;  %2935 = vpow2.f32 %v1997_v8 }
 0x54d   : > { %v2912_v41 = vpop.eup %2911  ;;  %2937 = vpow2.f32 %v2103_v11 }
 0x54e   : > { %2157 = vrot.lane.b32.xlu1 %v2900_v25, %s3037_s14  ;;  %v2914_v63 = vpop.eup %2913 }
 0x54f   : > { %v2916_v37 = vpop.eup %2915 }
 0x550   : > { %2146 = vrot.lane.b32.xlu0 %v2902_v59, %s3036_s7  ;;  %v2918_v62 = vpop.eup %2917 }
 0x551   : > { %v2920_v14 = vpop.eup %2919 }
 0x552   : > { %2179 = vrot.lane.b32.xlu1 %v2904_v50, %s3039_s20  ;;  %v2922_v16 = vpop.eup %2921  ;;  %v2187_v50 = vmul.f32 1.442695, %v2186_v1  ;;  %v2352_v1 = vsel %vm2351_vm5, %v3870_v7, 0.0 }
 0x553   : > { %v2924_v20 = vpop.eup %2923 }
 0x554   : > { %2168 = vrot.lane.b32.xlu0 %v2908_v33, %s3038_s19  ;;  %v2926_v23 = vpop.eup %2925  ;;  %2939 = vpow2.f32 %v2187_v50 }
 0x555   : > { %v2928_v13 = vpop.eup %2927  ;;  %2941 = vpow2.f32 %v2271_v19 }
 0x556   : > { %2208 = vrot.lane.b32.xlu1 %v2906_v43, %s4067_s1  ;;  %v2930_v28 = vpop.eup %2929 }
 0x557   : > { %v2932_v24 = vpop.eup %2931 }
 0x558   : > { %2197 = vrot.lane.b32.xlu0 %v2910_v40, %s3034_s28  ;;  %v2934_v9 = vpop.eup %2933 }
 0x559   : > { %v2936_v2 = vpop.eup %2935 }
 0x55a   : > { %2230 = vrot.lane.b32.xlu1 %v2912_v41, %s3036_s7  ;;  %v2938_v21 = vpop.eup %2937 }
 0x55c   : > { %2219 = vrot.lane.b32.xlu0 %v2914_v63, %s3035_s11 }
 0x55e   : > { %2252 = vrot.lane.b32.xlu1 %v2916_v37, %s3038_s19 }
 0x560   : > { %2241 = vrot.lane.b32.xlu0 %v2920_v14, %s3037_s14 }
 0x561   : > { %v2940_v37 = vpop.eup %2939 }
 0x562   : > { %2281 = vrot.lane.b32.xlu1 %v2918_v62, %s3034_s28 }
 0x564   : > { %2263 = vrot.lane.b32.xlu0 %v2924_v20, %s3039_s20 }
 0x566   : > { %2303 = vrot.lane.b32.xlu1 %v2922_v16, %s3035_s11 }
 0x568   : > { %2292 = vrot.lane.b32.xlu0 %v2926_v23, %s4067_s1  ;;  %v1203_v52 = vpop.f32.mrf.mxu1 }
 0x569   : > { %vm1210_vm1 = vcmp.gt.f32.partialorder %v1203_v52, 0.0 }
 0x56a   : > { %2325 = vrot.lane.b32.xlu1 %v2928_v13, %s3037_s14  ;;  %v2771_v54 = vpop.f32.mrf.mxu1  ;;  %vm1212_vm3 = vmand %vm1210_vm1, %vm1211_vm2 }
 0x56b   : > { %v3993_v42 = vsel %vm1212_vm3, 1.0, %v3040_v12 }
 0x56c   : > { %2314 = vrot.lane.b32.xlu0 %v2930_v28, %s3036_s7  ;;  %v1206_v30 = vpop.f32.mrf.mxu1  ;;  %v2372_v49 = vsel %vm1113_vm0, %v3993_v42, 0.0 }
 0x56e   : > { %2347 = vrot.lane.b32.xlu1 %v2932_v24, %s3039_s20  ;;  %v2772_v48 = vpop.f32.mrf.mxu1 }
 0x56f   : > { %v2942_v48 = vpop.eup %2941 }
 0x570   : > { %2336 = vrot.lane.b32.xlu0 %v2934_v9, %s3038_s19  ;;  %s4068_s19 = scalar_lea.vmem %s4047_s9, %s3190_s8 }
 0x592   : > { %2373 = vadd.xlane.f32.xlu1 %v2372_v49 }
 0x5ac   : > { %v2026_v6 = vpop.permute.xlu1 %2025 }
 0x5ad   : > { %v2012_v44 = vpop.permute.xlu0 %2011 }
 0x5ae   : > { %v2014_v60 = vadd.f32 %v2936_v2, %v2012_v44 }
 0x5b0   : > { %v2028_v4 = vadd.f32 %v2026_v6, %v2014_v60  ;;  %v2054_v12 = vpop.permute.xlu1 %2053 }
 0x5b1   : > { %v2040_v56 = vpop.permute.xlu0 %2039 }
 0x5b2   : > { %v2042_v38 = vadd.f32 %v2040_v56, %v2028_v4 }
 0x5b4   : > { %v2082_v36 = vpop.permute.xlu1 %2081  ;;  %v2056_v51 = vadd.f32 %v2054_v12, %v2042_v38 }
 0x5b6   : > { %v2068_v55 = vpop.permute.xlu0 %2067 }
 0x5b7   : > { %v2070_v26 = vadd.f32 %v2068_v55, %v2056_v51  ;;  %v2341_v51 = vsel %vm2340_vm4, %v3865_v22, 0.0 }
 0x5b8   : > { %v2114_v25 = vpop.permute.xlu1 %2113  ;;  %v2342_v55 = vadd.f32 %v2341_v51, %v3867_v57 }
 0x5b9   : > { %v2084_v10 = vadd.f32 %v2082_v36, %v2070_v26 }
 0x5ba   : > { %v2096_v59 = vpop.permute.xlu0 %2095 }
 0x5bb   : > { %v2098_v46 = vadd.f32 %v2096_v59, %v2084_v10  ;;  %v2353_v10 = vadd.f32 %v2352_v1, %v2342_v55 }
 0x5bc   : > { %v2136_v29 = vpop.permute.xlu1 %2135 }
 0x5bd   : > { %v2105_v32 = vadd.f32 %v2938_v21, %v2098_v46 }
 0x5be   : > { %v2125_v47 = vpop.permute.xlu0 %2124 }
 0x5bf   : > { %v2116_v0 = vadd.f32 %v2114_v25, %v2105_v32 }
 0x5c0   : > { %v2158_v43 = vpop.permute.xlu1 %2157 }
 0x5c1   : > { %v2127_v3 = vadd.f32 %v2125_v47, %v2116_v0 }
 0x5c2   : > { %v2147_v33 = vpop.permute.xlu0 %2146 }
 0x5c3   : > { %v2138_v39 = vadd.f32 %v2136_v29, %v2127_v3 }
 0x5c4   : > { %v2180_v45 = vpop.permute.xlu1 %2179 }
 0x5c5   : > { %v2149_v40 = vadd.f32 %v2147_v33, %v2138_v39 }
 0x5c6   : > { %v2169_v5 = vpop.permute.xlu0 %2168 }
 0x5c7   : > { %v2160_v41 = vadd.f32 %v2158_v43, %v2149_v40 }
 0x5c8   : > { %v2209_v53 = vpop.permute.xlu1 %2208 }
 0x5c9   : > { %v2171_v17 = vadd.f32 %v2169_v5, %v2160_v41 }
 0x5ca   : > { %v2198_v63 = vpop.permute.xlu0 %2197 }
 0x5cb   : > { %v2182_v18 = vadd.f32 %v2180_v45, %v2171_v17 }
 0x5cc   : > { %v2231_v62 = vpop.permute.xlu1 %2230 }
 0x5cd   : > { %v2189_v58 = vadd.f32 %v2940_v37, %v2182_v18 }
 0x5ce   : > { %v2220_v14 = vpop.permute.xlu0 %2219 }
 0x5cf   : > { %v2200_v16 = vadd.f32 %v2198_v63, %v2189_v58 }
 0x5d0   : > { %v2253_v13 = vpop.permute.xlu1 %2252 }
 0x5d1   : > { %v2211_v20 = vadd.f32 %v2209_v53, %v2200_v16 }
 0x5d2   : > { %v2242_v23 = vpop.permute.xlu0 %2241 }
 0x5d3   : > { %v2222_v28 = vadd.f32 %v2220_v14, %v2211_v20 }
 0x5d4   : > { %v2282_v54 = vpop.permute.xlu1 %2281 }
 0x5d5   : > { %v2233_v24 = vadd.f32 %v2231_v62, %v2222_v28 }
 0x5d6   : > { %v2264_v9 = vpop.permute.xlu0 %2263 }
 0x5d7   : > { %v2244_v52 = vadd.f32 %v2242_v23, %v2233_v24 }
 0x5d8   : > { %v2304_v8 = vpop.permute.xlu1 %2303 }
 0x5d9   : > { %v2255_v30 = vadd.f32 %v2253_v13, %v2244_v52 }
 0x5da   : > { %v2293_v49 = vpop.permute.xlu0 %2292 }
 0x5db   : > { %v2266_v34 = vadd.f32 %v2264_v9, %v2255_v30 }
 0x5dc   : > { %v2326_v27 = vpop.permute.xlu1 %2325 }
 0x5dd   : > { %v2273_v61 = vadd.f32 %v2942_v48, %v2266_v34 }
 0x5de   : > { %v2315_v6 = vpop.permute.xlu0 %2314 }
 0x5df   : > { %v2284_v2 = vadd.f32 %v2282_v54, %v2273_v61 }
 0x5e0   : > { %v2348_v38 = vpop.permute.xlu1 %2347 }
 0x5e1   : > { %v2295_v44 = vadd.f32 %v2293_v49, %v2284_v2 }
 0x5e2   : > { %v2337_v12 = vpop.permute.xlu0 %2336 }
 0x5e3   : > { %v2306_v60 = vadd.f32 %v2304_v8, %v2295_v44 }
 0x5e5   : > { %v2317_v4 = vadd.f32 %v2315_v6, %v2306_v60 }
 0x5e7   : > { %v2328_v11 = vadd.f32 %v2326_v27, %v2317_v4 }
 0x5e9   : > { %v2339_v56 = vadd.f32 %v2337_v12, %v2328_v11 }
 0x5eb   : > { %v2350_v36 = vadd.f32 %v2348_v38, %v2339_v56 }
 0x5ed   : > { %2943 = vlog2.f32 %v2350_v36 }
 0x5fa   : > { %v2944_v25 = vpop.eup %2943 }
 0x5fb   : > { %v2355_v26 = vmul.f32 0.6931472, %v2944_v25 }
 0x5fd   : > { %v2356_v59 = vadd.f32 %v2355_v26, %v3873_v35 }
 0x5ff   : > { %v2357_v29 = vsub.f32 %v2356_v59, %v2353_v10 }
 0x601   : > { %v2358_v46 = vmul.f32 %v3993_v42, %v2357_v29 }
 0x603   : > { %v2359_v50 = vsel %vm1113_vm0, %v2358_v46, 0.0  ;;  %vm2370_vm0 = vcmask 0  }
 0x604   : > { %2360 = vadd.xlane.f32.xlu0 %v2359_v50 }
 0x61b   : > { %v2374_v21 = vpop.xlane.xlu1 %2373 }
 0x61c   : > { %v2375_v32 = vrot.slane %v2374_v21, 4 }
 0x61e   : > { %v2376_v22 = vadd.f32 %v2375_v32, %v2374_v21 }
 0x620   : > { %v2377_v47 = vrot.slane %v2376_v22, 2 }
 0x622   : > { %v2378_v0 = vadd.f32 %v2377_v47, %v2376_v22 }
 0x624   : > { %v2379_v33 = vrot.slane %v2378_v0, 1 }
 0x626   : > { %v2380_v39 = vadd.f32 %v2379_v33, %v2378_v0 }
 0x68d   : > { %v2361_v15 = vpop.xlane.xlu0 %2360 }
 0x68e   : > { %v2362_v57 = vrot.slane %v2361_v15, 4 }
 0x690   : > { %v2363_v43 = vadd.f32 %v2362_v57, %v2361_v15 }
 0x692   : > { %v2364_v7 = vrot.slane %v2363_v43, 2 }
 0x694   : > { %v2365_v3 = vadd.f32 %v2364_v7, %v2363_v43 }
 0x696   : > { %v2366_v35 = vrot.slane %v2365_v3, 1 }
 0x698   : > { %v2367_v45 = vadd.f32 %v2366_v35, %v2365_v3 }
 0x69a   : > { %2777 = vpush %v2367_v45 }
 0x69b   : > { %2779 = vpush %v2380_v39 }
 0x6cb   : > { %s2778_s28 = spop %2777 }
 0x6cc   : > { %v2369_v42 = vstv %s2778_s28  ;;  %s2780_s11 = spop %2779 }
 0x6cd   : > { %2371 = vst.msk [vmem:[%s4068_s19] sm:$0x1] %vm2370_vm0, %v2369_v42  ;;  %v2382_v40 = vstv %s2780_s11 }
 0x6ce   : > { %2383 = vst.msk [vmem:[%s4069_s29] sm:$0x1] %vm2370_vm0, %v2382_v40 }
 0x6cf PF: > { %s23_s17 = sadd.s32 1, %s3021_s17   ;;  %s4070_s21 = sld [smem:[#allocation9_spill]] }
 0x6d0   : > { %p20_p9 = scmp.ge.s32.totalorder %s23_s17, 6   ;;  %s4071_s12 = sld [smem:[#allocation10_spill]] }
 0x6d1   : > { %s4072_s13 = smov %s3013_s15  ;;  %s4073_s14 = smov %s3017_s16 }
 0x6d2   :  { %22 = sbr.rel (!%p20_p9) target bundleno = 8 (0x8), region = 123 }
 0x6d5   : > { %s4074_s15 = smov %s4070_s21 }
 0x6d6   : > { %s4075_s16 = smov %s4071_s12 }
 0x6d7   :  { %2429 = vsyncpa [#allocation4], 1 }
 0x6d8   :  { %2431 = vsyncpa [#allocation4 + $0x1], 1 }
 0x6d9   :  { %2432 = vsyncpa [#allocation6], 1 }

</bundles_post_ra>
